<compile_context>
chip_gen: v7x
topology: tpu7x:2x2x1
jax: 0.10.0
libtpu: 0.0.40
codegen_flags: <defaults>
</compile_context>

<pallas_src>
import functools

import jax
import jax.numpy as jnp
from jax.experimental import pallas as pl
from jax.experimental.pallas import tpu as pltpu


# --------------------------------------------------------------------------
# Pallas matmul kernel:  out = act((A @ B) [* scale] + bias [+ res])
# --------------------------------------------------------------------------

def _mm_kernel(*refs, act, has_res, quantized):
    idx = 0
    a_ref, b_ref, bias_ref = refs[0], refs[1], refs[2]
    idx = 3
    scale_ref = None
    if quantized:
        scale_ref = refs[idx]
        idx += 1
    res_ref = None
    if has_res:
        res_ref = refs[idx]
        idx += 1
    o_ref, acc_ref = refs[idx], refs[idx + 1]

    @pl.when(pl.program_id(2) == 0)
    def _():
        acc_ref[...] = jnp.zeros_like(acc_ref)

    b_tile = b_ref[...]
    if quantized:
        # int8 -> bf16 is exact (|q| <= 127); per-OC scale is applied once in the
        # epilogue instead of per-element here.
        b_tile = b_tile.astype(jnp.bfloat16)
    acc_ref[...] += jnp.dot(a_ref[...], b_tile,
                            preferred_element_type=jnp.float32)

    @pl.when(pl.program_id(2) == pl.num_programs(2) - 1)
    def _():
        r = acc_ref[...]
        if scale_ref is not None:
            r = r * scale_ref[...]
        r = r + bias_ref[...]
        if res_ref is not None:
            r = r + res_ref[...]          # bf16 residual promotes to f32
        if act == "relu":
            r = jnp.maximum(r, 0.0)
        elif act == "tanh":
            r = jnp.tanh(r)
        o_ref[...] = r.astype(o_ref.dtype)


def _choose_tiles(M, K, N):
    """Pick (tm, tk, tn).  K is never padded: full-extent blocks, or an exact
    multiple-of-128 divisor for very large K (fc6: 25088 = 7 * 3584)."""
    if K <= 4608:
        tk = K
    else:
        tk = K  # TODO(synk): pathological K would need padding; not hit here
        for cand in range(4096, 127, -128):
            if K % cand == 0:
                tk = cand
                break
    # N: full extent up to 512; 1024 for the N=4096 fc6/fc7 layers.
    tn = N if N <= 512 else 1024
    # M: large tiles for the small-K / huge-M conv1/conv2 layers, 512 for
    # conv3_2..conv5 (K<=4608), 256 for the huge-K fc6 layer.
    if K <= 1152:
        cap = 1024
    elif K <= 4608:
        cap = 512
    else:
        cap = 256
    tm = min(M, cap)
    # v7x megacore / DMA pipelining: guarantee >=2 blocks along a "parallel"
    # axis whenever the layer is big enough to split (conv5_x, etc.).
    if pl.cdiv(M, tm) == 1 and pl.cdiv(N, tn) == 1:
        half_n = (N // 2) // 128 * 128
        if half_n >= 128:
            tn = half_n
    return tm, tk, tn


def _matmul_call(a, b_mat, bias, scale, residual, act, out_dtype):
    M, K = a.shape
    K2, N = b_mat.shape
    assert K == K2
    tm, tk, tn = _choose_tiles(M, K, N)
    nk = K // tk

    a = a.astype(jnp.bfloat16)
    if scale is None:
        b_mat = b_mat.astype(jnp.bfloat16)
    bias2 = bias.astype(jnp.float32).reshape(1, N)

    in_specs = [
        pl.BlockSpec((tm, tk), lambda i, j, k: (i, k)),
        pl.BlockSpec((tk, tn), lambda i, j, k: (k, j)),
        pl.BlockSpec((1, tn), lambda i, j, k: (0, j)),
    ]
    inputs = [a, b_mat, bias2]
    if scale is not None:
        in_specs.append(pl.BlockSpec((1, tn), lambda i, j, k: (0, j)))
        inputs.append(scale.astype(jnp.float32).reshape(1, N))
    if residual is not None:
        in_specs.append(pl.BlockSpec((tm, tn), lambda i, j, k: (i, j)))
        inputs.append(residual.astype(jnp.bfloat16))

    return pl.pallas_call(
        functools.partial(_mm_kernel, act=act, has_res=residual is not None,
                          quantized=scale is not None),
        out_shape=jax.ShapeDtypeStruct((M, N), out_dtype),
        grid_spec=pltpu.PrefetchScalarGridSpec(
            num_scalar_prefetch=0,
            grid=(pl.cdiv(M, tm), pl.cdiv(N, tn), nk),
            in_specs=in_specs,
            out_specs=pl.BlockSpec((tm, tn), lambda i, j, k: (i, j)),
            scratch_shapes=[pltpu.VMEM((tm, tn), jnp.float32)],
        ),
        compiler_params=pltpu.CompilerParams(
            dimension_semantics=("parallel", "parallel", "arbitrary"),
            # Largest working set ~21 MiB (conv4_2/4_3); 48 MiB is safe on
            # v5e/v6e (128 MiB physical) and v7x (64 MiB physical).
            vmem_limit_bytes=48 * 1024 * 1024),
    )(*inputs)


_INT8_MM_OK = True  # falls back to bf16 weights if int8 dequant fails to lower


def matmul_bias_act(a, b_mat, bias, *, act="none", residual=None, scale=None,
                    out_dtype=jnp.bfloat16):
    global _INT8_MM_OK
    if scale is not None and _INT8_MM_OK:
        try:
            return _matmul_call(a, b_mat, bias, scale, residual, act, out_dtype)
        except Exception:
            _INT8_MM_OK = False
    if scale is not None:
        # Fallback: dequantize outside the kernel and use the plain bf16 path.
        b_mat = (b_mat.astype(jnp.float32) * scale[None, :]).astype(jnp.bfloat16)
    return _matmul_call(a, b_mat, bias, None, residual, act, out_dtype)


# --------------------------------------------------------------------------
# 2x2 max-pool (stride 2, floor mode — matches nn.MaxPool2d defaults)
# --------------------------------------------------------------------------

def _pool_fused_kernel(x_ref, o_ref, *, W, Wo):
    # x_ref block: (bm, 2*W, C) — row r holds the two input rows (2r, 2r+1)
    # feeding output row r.  Four stride-2 sublane reads, single output store.
    a = x_ref[:, pl.ds(0, Wo, stride=2), :]
    b = x_ref[:, pl.ds(1, Wo, stride=2), :]
    c = x_ref[:, pl.ds(W, Wo, stride=2), :]
    d = x_ref[:, pl.ds(W + 1, Wo, stride=2), :]
    o_ref[...] = jnp.maximum(jnp.maximum(a, b), jnp.maximum(c, d))


def _maxpool2x2_fused(x):
    N, H, W, C = x.shape
    Ho, Wo = H // 2, W // 2
    # (N, 2*Ho, W, C) -> (N*Ho, 2*W, C): contiguous regroup (free when H is even,
    # a small crop copy when H is odd).
    xr = x[:, :2 * Ho, :, :].reshape(N * Ho, 2 * W, C)
    M = N * Ho
    row_bytes = 2 * W * C * x.dtype.itemsize
    bm = max(1, min(M, (4 * 1024 * 1024) // row_bytes))
    out = pl.pallas_call(
        functools.partial(_pool_fused_kernel, W=W, Wo=Wo),
        out_shape=jax.ShapeDtypeStruct((M, Wo, C), x.dtype),
        grid=(pl.cdiv(M, bm),),
        in_specs=[pl.BlockSpec((bm, 2 * W, C), lambda i: (i, 0, 0))],
        out_specs=pl.BlockSpec((bm, Wo, C), lambda i: (i, 0, 0)),
        compiler_params=pltpu.CompilerParams(
            dimension_semantics=("parallel",)),
    )(xr)
    return out.reshape(N, Ho, Wo, C)


def _max4_kernel(a_ref, b_ref, c_ref, d_ref, o_ref):
    o_ref[...] = jnp.maximum(jnp.maximum(a_ref[...], b_ref[...]),
                             jnp.maximum(c_ref[...], d_ref[...]))


def _maxpool2x2_split(x):
    """Legacy path: four HBM-materialized strided slices + elementwise max4."""
    N, H, W, C = x.shape
    Ho, Wo = H // 2, W // 2
    xc = x[:, :Ho * 2, :Wo * 2, :]
    a = xc[:, 0::2, 0::2, :].reshape(-1, C)
    b = xc[:, 0::2, 1::2, :].reshape(-1, C)
    c = xc[:, 1::2, 0::2, :].reshape(-1, C)
    d = xc[:, 1::2, 1::2, :].reshape(-1, C)
    M = a.shape[0]
    bm = 1024 if M >= 1024 else M
    out = pl.pallas_call(
        _max4_kernel,
        out_shape=jax.ShapeDtypeStruct((M, C), x.dtype),
        grid=(pl.cdiv(M, bm),),
        in_specs=[pl.BlockSpec((bm, C), lambda i: (i, 0))] * 4,
        out_specs=pl.BlockSpec((bm, C), lambda i: (i, 0)),
        compiler_params=pltpu.CompilerParams(
            dimension_semantics=("parallel",)),
    )(a, b, c, d)
    return out.reshape(N, Ho, Wo, C)


_FUSED_POOL_OK = True


def maxpool2x2(x):
    global _FUSED_POOL_OK
    if _FUSED_POOL_OK:
        try:
            return _maxpool2x2_fused(x)
        except Exception:
            _FUSED_POOL_OK = False
    return _maxpool2x2_split(x)


# --------------------------------------------------------------------------
# Layer wrappers (plain-JAX glue around the Pallas kernels)
# --------------------------------------------------------------------------

def conv2d(x, layer, *, stride=1, padding=0, act="none", residual=None,
           out_dtype=jnp.bfloat16):
    """x: NHWC.  layer: {'w': (k*k*IC, OC), 'b': (OC,), 'k': int[, 'scale']}."""
    N, H, W, C = x.shape
    k = layer["k"]
    K, OC = layer["w"].shape
    assert K == C * k * k
    if padding:
        x = jnp.pad(x, ((0, 0), (padding, padding), (padding, padding), (0, 0)))
    Hp, Wp = H + 2 * padding, W + 2 * padding
    OH = (Hp - k) // stride + 1
    OW = (Wp - k) // stride + 1
    if k == 1 and stride == 1:
        a = x.reshape(N * OH * OW, C)
    elif OH == 1 and OW == 1 and stride == 1 and Hp == k and Wp == k:
        # fc6-style "fully connected" conv: the whole map is one patch; the
        # (h, w, c) flatten already equals the (kh, kw, c) weight order.
        a = x.reshape(N, k * k * C)
    else:
        # TODO(synk): fuse this im2col into the matmul kernel (manual DMA of
        # halo'd row windows + per-tap accumulation) so the patch matrix is never
        # materialized in HBM — the remaining dominant HBM term for conv1-conv3.
        cols = []
        for kh in range(k):
            for kw in range(k):
                cols.append(x[:, kh:kh + stride * (OH - 1) + 1:stride,
                                 kw:kw + stride * (OW - 1) + 1:stride, :])
        # Tap-major, channel-contiguous feature order (kh, kw, c): plain
        # concatenation of contiguous channel slabs — no strided transpose.
        patches = jnp.concatenate(cols, axis=-1)       # (N, OH, OW, k*k*C)
        a = patches.reshape(N * OH * OW, k * k * C)
    res2 = None if residual is None else residual.reshape(N * OH * OW, OC)
    out = matmul_bias_act(a, layer["w"], layer["b"], act=act, residual=res2,
                          scale=layer.get("scale"), out_dtype=out_dtype)
    return out.reshape(N, OH, OW, OC)


def conv_transpose2d(x, layer, *, act="none", out_dtype=jnp.bfloat16):
    """PyTorch ConvTranspose2d (padding=0, bias=False); the weight was converted
    at init into the equivalent stride-1 conv's (IC*k*k, OC) matrix."""
    # TODO(synk): sub-pixel decomposition (stride^2 stride-1 convs) would skip the
    # all-zero taps of the dilated input (upscore8 is ~98% zeros); left as-is
    # because these decoder layers have only 3 channels at these sizes.
    N, H, W, C = x.shape
    k, s = layer["k"], layer["stride"]
    Hd, Wd = (H - 1) * s + 1, (W - 1) * s + 1
    xd = jnp.zeros((N, Hd, Wd, C), x.dtype).at[:, ::s, ::s, :].set(x)
    return conv2d(xd, layer, stride=1, padding=k - 1, act=act, out_dtype=out_dtype)


def crop(x, target, offset):
    """NHWC equivalent of the module's crop(): x[:, :, off:off+h, off:off+w]."""
    h, w = target.shape[1], target.shape[2]
    return x[:, offset:offset + h, offset:offset + w, :]


# --------------------------------------------------------------------------
# Parameters (deterministic synthetic init; shapes match the PyTorch module,
# pre-flattened to tap-major (kh, kw, c) matmul layout once at init;
# fc6_cs / fc7_cs stored int8 with per-output-channel scales)
# --------------------------------------------------------------------------

def _flatten_conv_weight(w_oikk):
    """(OC, IC, KH, KW) -> (KH*KW*IC, OC) with feature order (kh, kw, ic)."""
    oc = w_oikk.shape[0]
    return jnp.transpose(w_oikk, (0, 2, 3, 1)).reshape(oc, -1).T


def init_params(key):
    conv_defs = [
        ("conv1_1", 64, 3, 3), ("conv1_2", 64, 64, 3),
        ("conv2_1", 128, 64, 3), ("conv2_2", 128, 128, 3),
        ("conv3_1", 256, 128, 3), ("conv3_2", 256, 256, 3), ("conv3_3", 256, 256, 3),
        ("conv4_1", 512, 256, 3), ("conv4_2", 512, 512, 3), ("conv4_3", 512, 512, 3),
        ("conv5_1", 512, 512, 3), ("conv5_2", 512, 512, 3), ("conv5_3", 512, 512, 3),
        ("fc6_cs", 4096, 512, 7), ("fc7_cs", 4096, 4096, 1),
        ("score_fr", 3, 4096, 1), ("score_pool4", 3, 512, 1), ("score_pool3", 3, 256, 1),
    ]
    deconv_defs = [("upscore2", 3, 3, 4, 2), ("upscore_pool4", 3, 3, 4, 2),
                   ("upscore8", 3, 3, 16, 8)]
    quantized = {"fc6_cs", "fc7_cs"}   # dominant weight DMA -> int8 + per-OC scale
    params = {}
    keys = jax.random.split(key, len(conv_defs) + len(deconv_defs))
    for (name, oc, ic, k), kk in zip(conv_defs, keys[:len(conv_defs)]):
        fan_in = ic * k * k
        w = jax.random.normal(kk, (oc, ic, k, k), jnp.float32) * (2.0 / fan_in) ** 0.5
        flat = _flatten_conv_weight(w)                              # (K, OC) f32
        b = jnp.zeros((oc,), jnp.float32)
        if name in quantized:
            s = jnp.maximum(jnp.max(jnp.abs(flat), axis=0), 1e-8) / 127.0
            wq = jnp.clip(jnp.round(flat / s[None, :]), -127, 127).astype(jnp.int8)
            params[name] = {"w": wq, "scale": s, "b": b, "k": k}
        else:
            params[name] = {"w": flat.astype(jnp.bfloat16), "b": b, "k": k}
    # Deconv weights: PyTorch (IC, OC, k, k) -> equivalent conv (swap + flip) ->
    # (k*k*IC, OC).  ConvTranspose2d layers have bias=False.
    for (name, ic, oc, k, s), kk in zip(deconv_defs, keys[len(conv_defs):]):
        fan_in = ic * k * k
        w = jax.random.normal(kk, (ic, oc, k, k), jnp.float32) * (1.0 / fan_in) ** 0.5
        w_conv = jnp.transpose(w, (1, 0, 2, 3))[:, :, ::-1, ::-1]   # (oc, ic, k, k)
        params[name] = {"w": _flatten_conv_weight(w_conv).astype(jnp.bfloat16),
                        "b": jnp.zeros((oc,), jnp.float32), "k": k, "stride": s}
    return params


# --------------------------------------------------------------------------
# Forward pass (mirrors FullyConvNetwork.forward)
# --------------------------------------------------------------------------

def forward(x_nchw, p):
    x0 = jnp.transpose(x_nchw, (0, 2, 3, 1)).astype(jnp.bfloat16)  # -> NHWC
    input_nhwc = x0

    x = conv2d(x0, p["conv1_1"], padding=100, act="relu")
    x = conv2d(x, p["conv1_2"], padding=1, act="relu")
    x = maxpool2x2(x)

    x = conv2d(x, p["conv2_1"], padding=1, act="relu")
    x = conv2d(x, p["conv2_2"], padding=1, act="relu")
    x = maxpool2x2(x)

    x = conv2d(x, p["conv3_1"], padding=1, act="relu")
    x = conv2d(x, p["conv3_2"], padding=1, act="relu")
    x = conv2d(x, p["conv3_3"], padding=1, act="relu")
    pool3 = maxpool2x2(x)

    x = conv2d(pool3, p["conv4_1"], padding=1, act="relu")
    x = conv2d(x, p["conv4_2"], padding=1, act="relu")
    x = conv2d(x, p["conv4_3"], padding=1, act="relu")
    pool4 = maxpool2x2(x)

    x = conv2d(pool4, p["conv5_1"], padding=1, act="relu")
    x = conv2d(x, p["conv5_2"], padding=1, act="relu")
    x = conv2d(x, p["conv5_3"], padding=1, act="relu")
    x = maxpool2x2(x)

    x = conv2d(x, p["fc6_cs"], act="relu")    # 7x7, pad 0 (int8 weights)
    x = conv2d(x, p["fc7_cs"], act="relu")    # 1x1        (int8 weights)
    x = conv2d(x, p["score_fr"])              # 1x1

    upscore2 = conv_transpose2d(x, p["upscore2"])
    # Skip 1: crop commutes with the 1x1 score conv, so crop pool4 first and fuse
    # the elementwise add into the matmul epilogue (residual=upscore2, bf16).
    pool4c = crop(pool4, upscore2, 5)
    fuse_pool4 = conv2d(pool4c, p["score_pool4"], residual=upscore2)

    upscore_pool4 = conv_transpose2d(fuse_pool4, p["upscore_pool4"])
    pool3c = crop(pool3, upscore_pool4, 9)
    fuse_pool3 = conv2d(pool3c, p["score_pool3"], residual=upscore_pool4)

    # tanh fused into the Pallas epilogue of the final deconv (kept in f32).
    upscore8 = conv_transpose2d(fuse_pool3, p["upscore8"], act="tanh",
                                out_dtype=jnp.float32)
    score = crop(upscore8, input_nhwc, 31)

    return jnp.transpose(score, (0, 3, 1, 2)).astype(jnp.float32)  # back to NCHW


# --------------------------------------------------------------------------

if __name__ == "__main__":
    key = jax.random.PRNGKey(0)
    pkey, xkey = jax.random.split(key)
    params = init_params(pkey)

    # Smallest spatial size that survives the padding-100 / 5x pool / 7x7-fc6 chain.
    x = jax.random.normal(xkey, (1, 3, 32, 32), jnp.float32)  # NCHW, like PyTorch

    out = jax.block_until_ready(forward(x, params))

    assert out.shape == (1, 3, 32, 32), out.shape
    assert bool(jnp.all(jnp.isfinite(out)))
    print("KERNEL_OK")
</pallas_src>

<mosaic_0001>
module attributes {stable_mosaic.version = 11 : i64} {
  func.func @_mm_kernel(%arg0: i32, %arg1: i32, %arg2: i32, %arg3: memref<1024x27xbf16, #tpu.memory_space<vmem>>, %arg4: memref<27x64xbf16, #tpu.memory_space<vmem>>, %arg5: memref<1x64xf32, #tpu.memory_space<vmem>>, %arg6: memref<1024x64xbf16, #tpu.memory_space<vmem>>, %arg7: memref<1024x64xf32, #tpu.memory_space<vmem>>) attributes {dimension_semantics = [#tpu.dimension_semantics<parallel>, #tpu.dimension_semantics<parallel>, #tpu.dimension_semantics<arbitrary>], iteration_bounds = array<i64: 52, 1, 1>, scalar_prefetch = 0 : i64, scratch_operands = 1 : i64, tpu.core_type = #tpu.core_type<tc>, window_params = [{transform_indices = @transform_0, window_bounds = array<i64: 1024, 27>}, {transform_indices = @transform_1, window_bounds = array<i64: 27, 64>}, {transform_indices = @transform_2, window_bounds = array<i64: 1, 64>}, {transform_indices = @transform_3, window_bounds = array<i64: 1024, 64>}]} {
    %c0_i32 = arith.constant 0 : i32
    %0 = arith.cmpi eq, %arg2, %c0_i32 : i32
    %1 = arith.extui %0 : i1 to i32
    %c0_i32_0 = arith.constant 0 : i32
    %2 = arith.cmpi ne, %1, %c0_i32_0 : i32
    scf.if %2 {
      %cst_10 = arith.constant 0.000000e+00 : f32
      %12 = vector.broadcast %cst_10 : f32 to vector<1024x64xf32>
      %c0_11 = arith.constant 0 : index
      %c0_12 = arith.constant 0 : index
      %13 = vector.load %arg7[%c0_11, %c0_12] : memref<1024x64xf32, #tpu.memory_space<vmem>>, vector<1024x64xf32>
      tpu.vector_store %arg7[%c0_11, %c0_12], %12 {strides = array<i32>} : memref<1024x64xf32, #tpu.memory_space<vmem>>, vector<1024x64xf32>,
    } else {
    }
    %c0 = arith.constant 0 : index
    %c0_1 = arith.constant 0 : index
    %3 = vector.load %arg4[%c0, %c0_1] : memref<27x64xbf16, #tpu.memory_space<vmem>>, vector<27x64xbf16>
    %c0_2 = arith.constant 0 : index
    %c0_3 = arith.constant 0 : index
    %4 = vector.load %arg7[%c0_2, %c0_3] : memref<1024x64xf32, #tpu.memory_space<vmem>>, vector<1024x64xf32>
    %c0_4 = arith.constant 0 : index
    %c0_5 = arith.constant 0 : index
    %5 = vector.load %arg3[%c0_4, %c0_5] : memref<1024x27xbf16, #tpu.memory_space<vmem>>, vector<1024x27xbf16>
    %cst = arith.constant dense<0.000000e+00> : vector<1024x64xf32>
    %6 = tpu.matmul %5, %3, %cst {dimension_numbers = #tpu.dot_dimension_numbers<[1], [0], [0], [1], [0, 0, 1, 1], [], []>} : vector<1024x27xbf16>, vector<27x64xbf16>, vector<1024x64xf32> -> vector<1024x64xf32>
    %7 = arith.addf %4, %6 : vector<1024x64xf32>
    %c0_6 = arith.constant 0 : index
    %c0_7 = arith.constant 0 : index
    %8 = vector.load %arg7[%c0_6, %c0_7] : memref<1024x64xf32, #tpu.memory_space<vmem>>, vector<1024x64xf32>
    tpu.vector_store %arg7[%c0_6, %c0_7], %7 {strides = array<i32>} : memref<1024x64xf32, #tpu.memory_space<vmem>>, vector<1024x64xf32>,
    %c0_i32_8 = arith.constant 0 : i32
    %9 = arith.cmpi eq, %arg2, %c0_i32_8 : i32
    %10 = arith.extui %9 : i1 to i32
    %c0_i32_9 = arith.constant 0 : i32
    %11 = arith.cmpi ne, %10, %c0_i32_9 : i32
    scf.if %11 {
      %c0_10 = arith.constant 0 : index
      %c0_11 = arith.constant 0 : index
      %12 = vector.load %arg7[%c0_10, %c0_11] : memref<1024x64xf32, #tpu.memory_space<vmem>>, vector<1024x64xf32>
      %c0_12 = arith.constant 0 : index
      %c0_13 = arith.constant 0 : index
      %13 = vector.load %arg5[%c0_12, %c0_13] : memref<1x64xf32, #tpu.memory_space<vmem>>, vector<1x64xf32>
      %14 = vector.broadcast %13 : vector<1x64xf32> to vector<1024x64xf32>
      %15 = arith.addf %12, %14 : vector<1024x64xf32>
      %cst_14 = arith.constant 0.000000e+00 : f32
      %16 = vector.broadcast %cst_14 : f32 to vector<1024x64xf32>
      %17 = arith.maximumf %15, %16 : vector<1024x64xf32>
      %18 = arith.truncf %17 : vector<1024x64xf32> to vector<1024x64xbf16>
      %c0_15 = arith.constant 0 : index
      %c0_16 = arith.constant 0 : index
      %19 = vector.load %arg6[%c0_15, %c0_16] : memref<1024x64xbf16, #tpu.memory_space<vmem>>, vector<1024x64xbf16>
      tpu.vector_store %arg6[%c0_15, %c0_16], %18 {strides = array<i32>} : memref<1024x64xbf16, #tpu.memory_space<vmem>>, vector<1024x64xbf16>,
    } else {
    }
    return
  }
  func.func @transform_0(%arg0: i32, %arg1: i32, %arg2: i32) -> (i32, i32) {
    %c0_i32 = arith.constant 0 : i32
    return %arg0, %arg2 : i32, i32
  }
  func.func @transform_1(%arg0: i32, %arg1: i32, %arg2: i32) -> (i32, i32) {
    %c0_i32 = arith.constant 0 : i32
    return %arg2, %arg1 : i32, i32
  }
  func.func @transform_2(%arg0: i32, %arg1: i32, %arg2: i32) -> (i32, i32) {
    %c0_i32 = arith.constant 0 : i32
    %c0_i32_0 = arith.constant 0 : i32
    return %c0_i32, %arg1 : i32, i32
  }
  func.func @transform_3(%arg0: i32, %arg1: i32, %arg2: i32) -> (i32, i32) {
    %c0_i32 = arith.constant 0 : i32
    return %arg0, %arg1 : i32, i32
  }
}

</mosaic_0001>

<bundles_post_ra>
// kernel: tpu_custom_call.1
= control target key start
LH: loop header
LB: loop body
LE: loop exit
PB: predicated region body
PF: predicated region fallthrough
CT: control target
= control target key end

     0   :  { %8 = vsyncpa [#allocation4], 0  ;;  %s5768_s0 = inlined_call_operand.hbm [shape: bf16[52900,27], index: 0, kind: input, shape index: {}]   ;;  %s5769_s1 = inlined_call_operand.vmem [shape: bf16[27,64], index: 1, kind: input, shape index: {}]   ;;  %s5770_s2 = inlined_call_operand.vmem [shape: f32[1,64], index: 2, kind: input, shape index: {}]   ;;  %s5771_s3 = inlined_call_operand.vmem [shape: bf16[52900,64], index: 3, kind: output, shape index: {}]  }
   0x1   :  { %10 = vsyncpa [#allocation4 + $0x1], 0  ;;  %s4537_s12 = smov 0   ;;  %s4539_s13 = smov 0  }
   0x2   :  { %s4541_s14 = smov 0   ;;  %s4543_s15 = smov 0  }
   0x3   :  { %s4545_s16 = smov 0   ;;  %s4547_s17 = smov 0  }
   0x4 LB: > { %s3557_s18 = sadd.s32 4294967295, %s4478_s17   ;;  %s35_s19 = sadd.s32 1, %s4474_s16  ;;  %s4478_s17 = sphi %s4547_s17, %s16_s17   ;;  %s4474_s16 = sphi %s4545_s16, %s5781_s16   ;;  %s4470_s15 = sphi %s4543_s15, %s5780_s15   ;;  %s4466_s14 = sphi %s4541_s14, %s5779_s14   ;;  %s4462_s13 = sphi %s4539_s13, %s5778_s13   ;;  %s4458_s12 = sphi %s4537_s12, %s5777_s12  }
   0x5   : > { %p37_p0 = scmp.ge.s32.totalorder %s35_s19, 52  ;;  %s44_s20 = sadd.s32 1, %s4466_s14 }
   0x6   : > { %p51_p1 = scmp.ne.s32.totalorder %s4466_s14, %s4462_s13  ;;  %p52_p2 = scmp.eq.s32.totalorder %s4478_s17, 0 }
   0x7   : > { %s5783_s19 = smov (%p37_p0, %s35_s19), 0  ;;  %p57_p4 = scmp.ne.s32.totalorder %s4462_s13, %s4458_s12 }
   0x8   : > { %p53_p3 = por %p52_p2, %p51_p1  ;;  %s39_s21 = ssub.s32 %s4474_s16, %s5783_s19 }
   0x9   : > { %p58_p5 = scmp.eq.s32.totalorder %s3557_s18, 0  ;;  %p42_p6 = scmp.eq.s32.totalorder %s39_s21, 0 }
   0xa   : > { %p137_p7 = scmp.eq.s32.totalorder %s3557_s18, 51  ;;  %p3562_p10 = scmp.ge.s32.totalorder %s4478_s17, 52 }
   0xb   : > { %p4576_p8 = por %p58_p5, %p57_p4 }
   0xc   : > { %s4581_s23 = scalar_select %p42_p6, %s4466_s14, %s44_s20  }
   0xd   : > { %p4583_p9 = por %p137_p7, %p51_p1  ;;  %177 = sbr.rel (%p3562_p10) target bundleno = 55 (0x37), region = 24 }
  0x14   : > { %180 = sbr.rel (!%p53_p3) target bundleno = 55 (0x37), region = 28  ;;  %s181_s25 = sand.u32 (%p53_p3), 1, %s4466_s14  }
  0x15   : > { %s3564_s26 = sshll.u32 (%p53_p3), %s4474_s16, 7  ;;  %s3563_s27 = sshll.u32 (%p53_p3), %s181_s25, 9 }
  0x16   : > { %s187_s28 = ssub.s32 (%p53_p3), 6613, %s3564_s26  ;;  %s4593_s4 = scalar_lea.sflag (%p53_p3), [#allocation4], %s181_s25 }
  0x17   : > { %p188_p11 = scmp.lt.s32.totalorder (%p53_p3), %s187_s28, 128  ;;  %s185_s5 = scalar_lea.vmem (%p53_p3), [#allocation3], %s3563_s27 }
  0x1b   : > { %s5785_s28 = smov (!%p188_p11, %s187_s28), 128 }
  0x1c   : > { %s4590_s29 = sshll.u32 %s5785_s28, 6 }
  0x1d   : > { %s192_s30 = ssub.s32 8192, %s4590_s29 }
  0x1e   : > { %193 = vsyncadd %s4593_s4, %s192_s30  ;;  %p3566_p12 = scmp.ne.s32.totalorder %s4590_s29, 0  ;;  %s3849_s6 = sshll.u32 %s4474_s16, 13 }
  0x1f   : > { %s4601_s9 = scalar_lea.hbm %s5768_s0, %s3849_s6  ;;  %s199_s10 = sshll.u32 %s185_s5, 4  ;;  %s4603_s10 = int_to_ptr.vmem [resolvable:$true] %s199_s10 }
  0x20   : > { %s4368_s11 = scalar_lea.hbm %s4601_s9, %s4590_s29  ;;  %s4372_s20 = scalar_lea.hbm %s5768_s0, 423232 }
  0x21   : > { %p4369_p13 = scmp.ne.s32.totalorder %s4601_s9, %s4368_s11  ;;  %p4373_p2 = scmp.lt.u32.totalorder %s4601_s9, %s5768_s0 }
  0x22   : > { %p4374_p3 = scmp.lt.u32.totalorder %s4372_s20, %s4368_s11  ;;  %p4376_p5 = scmp.lt.u32.totalorder %s4368_s11, %s4601_s9 }
  0x23   : > { %p4370_p0 = pnand %p4369_p13, %p3566_p12 }
  0x24   : > { %p4375_p4 = por %p4374_p3, %p4373_p2 }
  0x25   : > { %p4371_p1 = pneg %p4370_p0 }
  0x26   : > { %p4377_p6 = por %p4376_p5, %p4375_p4 }
  0x28   : > { %p4378_p7 = pnand %p4377_p6, %p4371_p1 }
  0x2a   : > { %4381 = shalt.err (!%p4378_p7)
}
  0x2b   : > { %s4382_s26 = scalar_lea.vmem %s4603_s10, %s4590_s29  ;;  %s4512_s27 = smov [#allocation3]  }
  0x2c   : > { %p4383_p10 = scmp.ne.s32.totalorder %s4603_s10, %s4382_s26  ;;  %s4386_s28 = sshll.u32 %s4512_s27, 4  ;;  %s4387_s28 = int_to_ptr.vmem [resolvable:$false] %s4386_s28 }
  0x2d   : > { %s4388_s30 = scalar_lea.vmem %s4387_s28, 16384  ;;  %p4389_p0 = scmp.lt.s32.totalorder %s4603_s10, %s4387_s28 }
  0x2e   : > { %p4384_p11 = pnand %p4383_p10, %p3566_p12  ;;  %p4390_p2 = scmp.lt.s32.totalorder %s4388_s30, %s4382_s26 }
  0x30   : > { %p4385_p13 = pneg %p4384_p11  ;;  %p4391_p3 = por %p4390_p2, %p4389_p0 }
  0x32   : > { %p4392_p4 = pnand %p4391_p3, %p4385_p13 }
  0x34   : > { %4395 = shalt.err (!%p4392_p4)
}
  0x35   : > { %s4513_s5 = smov 64   ;;  %s4514_s6 = smov 4  }
  0x36   : > { %205 = dma.hbm_to_vmem [thread:$0]  (%p3566_p12), %s4601_s9, %s4590_s29, %s4603_s10, %s4593_s4, %s4513_s5, %s4513_s5, %s4514_s6  }
  0x37 PF: > { %p3570_p1 = scmp.ge.s32.totalorder %s4478_s17, 1  ;;  %p207_p5 = scmp.lt.s32.totalorder %s4478_s17, 53 }
  0x39   : > { %p208_p6 = pnand %p3570_p1, %p207_p5 }
  0x3a   : > { %s213_s7 = sand.u32 (!%p208_p6), 1, %s4462_s13  }
  0x3b   : > { %211 = sbr.rel (%p208_p6) target bundleno = 542 (0x21e), region = 32  ;;  %s4633_s8 = sshll.u32 (!%p208_p6), %s213_s7, 9 }
  0x3c   : > { %s214_s11 = scalar_lea.sflag (!%p208_p6), [#allocation4], %s213_s7  ;;  %s4636_s12 = scalar_lea.vmem (!%p208_p6), [#allocation3], %s4633_s8 }
  0x42   : > { %4453 = dma.done.wait (%p4576_p8), %s214_s11, 8192  }
  0x43   : > { %4455 = vsyncadd (%p4576_p8), %s214_s11, 4294959104  ;;  %vm1190_vm0 = vcmask 1044480   ;;  %vm1191_vm1 = vcmask 1045504   ;;  %v4515_v0 = vmov 65535   ;;  %vm997_vm2 = vcmask 220160   ;;  %v4300_v2 = vld [vmem:[%s5769_s1] sm:$0xff]  }
  0x44   : > { %v1192_v1 = vsel %vm1190_vm0, 4294967295, %v4515_v0  ;;  %v4301_v4 = vld [vmem:[%s5769_s1 + $0x8] sm:$0x3f]   ;;  %4047 = vmatprep.subr.bf16.mxu0 %v4300_v2  ;;  %4179 = vmatprep.subr.bf16.mxu1 %v4300_v2  ;;  %v4302_v5 = vld [vmem:[%s4636_s12] sm:$0xff]   ;;  %vm277_vm3 = vcmask 523264   ;;  %v4516_v10 = vmov 0.0  }
  0x45   : > { %v1193_v3 = vsel %vm1191_vm1, %v1192_v1, 0  ;;  %4048 = vmatpush3.bf16.msra.mxu0 %v4300_v2  ;;  %4181 = vmatpush3.bf16.msra.mxu1 %v4300_v2  ;;  %v4652_v7 = vld [vmem:[%s4636_s12 + $0x100] sm:$0xff]   ;;  %v4656_v8 = vld [vmem:[%s4636_s12 + $0x8] sm:$0xff]   ;;  %280 = vst.msk [vmem:[#allocation2 + $0x10] sm:$0xff] %vm277_vm3, %v4516_v10  ;;  %278 = vst.msk [vmem:[#allocation2] sm:$0xff] %vm277_vm3, %v4516_v10  ;;  %vm2905_vm4 = vcmask 519168  }
  0x46   : > { %v4649_v6 = vand.u32 %v4301_v4, %v1193_v3  ;;  %4051 = vmatprep.mubr.msk.bf16.mxu0 %vm997_vm2, %v4302_v5  ;;  %v4661_v9 = vld [vmem:[%s4636_s12 + $0x108] sm:$0xff]   ;;  %279 = vst.msk [vmem:[#allocation2 + $0x8] sm:$0xff] %vm277_vm3, %v4516_v10  ;;  %281 = vst.msk [vmem:[#allocation2 + $0x18] sm:$0xff] %vm277_vm3, %v4516_v10  ;;  %4115 = vmatprep.mubr.msk.bf16.mxu1 %vm997_vm2, %v4652_v7  ;;  %v4306_v11 = vld [vmem:[%s4636_s12 + $0x10] sm:$0xff]   ;;  %s5077_s20 = scalar_lea.vmem [#allocation5], %s4633_s8   ;;  %s3833_s28 = sshll.u32 (%p4583_p9), %s4470_s15, 7 }
  0x47   : > { %282 = vst.msk [vmem:[#allocation2 + $0x20] sm:$0xff] %vm277_vm3, %v4516_v10  ;;  %283 = vst.msk [vmem:[#allocation2 + $0x28] sm:$0xff] %vm277_vm3, %v4516_v10  ;;  %v4307_v12 = vld [vmem:[%s4636_s12 + $0x110] sm:$0xff]   ;;  %v4308_v13 = vld [vmem:[%s4636_s12 + $0x18] sm:$0xff]   ;;  %s3978_s30 = sshll.u32 (%p4583_p9), %s4470_s15, 9  ;;  %s3042_s5 = ssub.s32 (%p4583_p9), 6613, %s3833_s28 }
  0x48   : > { %4049 = vmatprep.subr.bf16.mxu0 %v4649_v6  ;;  %4180 = vmatprep.subr.bf16.mxu1 %v4649_v6  ;;  %284 = vst.msk [vmem:[#allocation2 + $0x30] sm:$0xff] %vm277_vm3, %v4516_v10  ;;  %285 = vst.msk [vmem:[#allocation2 + $0x38] sm:$0xff] %vm277_vm3, %v4516_v10  ;;  %v4309_v14 = vld [vmem:[%s4636_s12 + $0x118] sm:$0xff]   ;;  %v4310_v15 = vld [vmem:[%s4636_s12 + $0x20] sm:$0xff]   ;;  %s5568_s8 = scalar_lea.vmem (%p4583_p9), %s5771_s3, %s3978_s30   ;;  %p3043_p8 = scmp.lt.s32.totalorder (%p4583_p9), %s3042_s5, 128 }
  0x49   : > { %286 = vst.msk [vmem:[#allocation2 + $0x40] sm:$0xff] %vm277_vm3, %v4516_v10  ;;  %287 = vst.msk [vmem:[#allocation2 + $0x48] sm:$0xff] %vm277_vm3, %v4516_v10  ;;  %4050 = vmatpush3.bf16.msra.mxu0 %v4649_v6  ;;  %4182 = vmatpush3.bf16.msra.mxu1 %v4649_v6  ;;  %v4311_v16 = vld [vmem:[%s4636_s12 + $0x120] sm:$0xff]   ;;  %v4312_v17 = vld [vmem:[%s4636_s12 + $0x28] sm:$0xff]  }
  0x4a   : > { %288 = vst.msk [vmem:[#allocation2 + $0x50] sm:$0xff] %vm277_vm3, %v4516_v10  ;;  %289 = vst.msk [vmem:[#allocation2 + $0x58] sm:$0xff] %vm277_vm3, %v4516_v10  ;;  %v4313_v18 = vld [vmem:[%s4636_s12 + $0x128] sm:$0xff]   ;;  %v4314_v19 = vld [vmem:[%s4636_s12 + $0x30] sm:$0xff]  }
  0x4b   : > { %290 = vst.msk [vmem:[#allocation2 + $0x60] sm:$0xff] %vm277_vm3, %v4516_v10  ;;  %291 = vst.msk [vmem:[#allocation2 + $0x68] sm:$0xff] %vm277_vm3, %v4516_v10  ;;  %v4315_v20 = vld [vmem:[%s4636_s12 + $0x130] sm:$0xff]   ;;  %v4316_v21 = vld [vmem:[%s4636_s12 + $0x38] sm:$0xff]  }
  0x4c   : > { %292 = vst.msk [vmem:[#allocation2 + $0x70] sm:$0xff] %vm277_vm3, %v4516_v10  ;;  %293 = vst.msk [vmem:[#allocation2 + $0x78] sm:$0xff] %vm277_vm3, %v4516_v10  ;;  %4052 = vmatmul.mubr.msk.bf16.vlgmr.msra.gmra.mrb[0].mxu0 %vm997_vm2, %v4656_v8  ;;  %4116 = vmatmul.mubr.msk.bf16.vlgmr.msra.gmra.mrb[0].mxu1 %vm997_vm2, %v4661_v9  ;;  %v4317_v22 = vld [vmem:[%s4636_s12 + $0x138] sm:$0xff]   ;;  %v4318_v23 = vld [vmem:[%s4636_s12 + $0x40] sm:$0xff]  }
  0x4d   : > { %294 = vst.msk [vmem:[#allocation2 + $0x80] sm:$0xff] %vm277_vm3, %v4516_v10  ;;  %295 = vst.msk [vmem:[#allocation2 + $0x88] sm:$0xff] %vm277_vm3, %v4516_v10  ;;  %4055 = vmatprep.mubr.msk.bf16.mxu0 %vm997_vm2, %v4306_v11  ;;  %4119 = vmatprep.mubr.msk.bf16.mxu1 %vm997_vm2, %v4307_v12  ;;  %v4319_v24 = vld [vmem:[%s4636_s12 + $0x140] sm:$0xff]   ;;  %v4320_v25 = vld [vmem:[%s4636_s12 + $0x48] sm:$0xff]  }
  0x4e   : > { %296 = vst.msk [vmem:[#allocation2 + $0x90] sm:$0xff] %vm277_vm3, %v4516_v10  ;;  %297 = vst.msk [vmem:[#allocation2 + $0x98] sm:$0xff] %vm277_vm3, %v4516_v10  ;;  %v4321_v26 = vld [vmem:[%s4636_s12 + $0x148] sm:$0xff]   ;;  %v4322_v27 = vld [vmem:[%s4636_s12 + $0x50] sm:$0xff]  }
  0x4f   : > { %298 = vst.msk [vmem:[#allocation2 + $0xa0] sm:$0xff] %vm277_vm3, %v4516_v10  ;;  %299 = vst.msk [vmem:[#allocation2 + $0xa8] sm:$0xff] %vm277_vm3, %v4516_v10  ;;  %v4323_v28 = vld [vmem:[%s4636_s12 + $0x150] sm:$0xff]   ;;  %v4324_v29 = vld [vmem:[%s4636_s12 + $0x58] sm:$0xff]  }
  0x50   : > { %300 = vst.msk [vmem:[#allocation2 + $0xb0] sm:$0xff] %vm277_vm3, %v4516_v10  ;;  %301 = vst.msk [vmem:[#allocation2 + $0xb8] sm:$0xff] %vm277_vm3, %v4516_v10  ;;  %v4325_v30 = vld [vmem:[%s4636_s12 + $0x158] sm:$0xff]   ;;  %v4326_v31 = vld [vmem:[%s4636_s12 + $0x60] sm:$0xff]  }
  0x51   : > { %302 = vst.msk [vmem:[#allocation2 + $0xc0] sm:$0xff] %vm277_vm3, %v4516_v10  ;;  %303 = vst.msk [vmem:[#allocation2 + $0xc8] sm:$0xff] %vm277_vm3, %v4516_v10  ;;  %v4327_v32 = vld [vmem:[%s4636_s12 + $0x160] sm:$0xff]   ;;  %v4328_v33 = vld [vmem:[%s4636_s12 + $0x68] sm:$0xff]  }
  0x52   : > { %304 = vst.msk [vmem:[#allocation2 + $0xd0] sm:$0xff] %vm277_vm3, %v4516_v10  ;;  %305 = vst.msk [vmem:[#allocation2 + $0xd8] sm:$0xff] %vm277_vm3, %v4516_v10  ;;  %v4329_v34 = vld [vmem:[%s4636_s12 + $0x168] sm:$0xff]   ;;  %v4330_v35 = vld [vmem:[%s4636_s12 + $0x70] sm:$0xff]  }
  0x53   : > { %306 = vst.msk [vmem:[#allocation2 + $0xe0] sm:$0xff] %vm277_vm3, %v4516_v10  ;;  %307 = vst.msk [vmem:[#allocation2 + $0xe8] sm:$0xff] %vm277_vm3, %v4516_v10  ;;  %v4331_v36 = vld [vmem:[%s4636_s12 + $0x170] sm:$0xff]   ;;  %v4332_v37 = vld [vmem:[%s4636_s12 + $0x78] sm:$0xff]  }
  0x54   : > { %308 = vst.msk [vmem:[#allocation2 + $0xf0] sm:$0xff] %vm277_vm3, %v4516_v10  ;;  %309 = vst.msk [vmem:[#allocation2 + $0xf8] sm:$0xff] %vm277_vm3, %v4516_v10  ;;  %4056 = vmatmul.mubr.msk.bf16.gmra.mrb[4].mxu0 %vm997_vm2, %v4308_v13  ;;  %4120 = vmatmul.mubr.msk.bf16.gmra.mrb[4].mxu1 %vm997_vm2, %v4309_v14  ;;  %v4333_v38 = vld [vmem:[%s4636_s12 + $0x178] sm:$0xff]   ;;  %v4334_v39 = vld [vmem:[%s4636_s12 + $0x80] sm:$0xff]  }
  0x55   : > { %310 = vst.msk [vmem:[#allocation2 + $0x100] sm:$0xff] %vm277_vm3, %v4516_v10  ;;  %311 = vst.msk [vmem:[#allocation2 + $0x108] sm:$0xff] %vm277_vm3, %v4516_v10  ;;  %4059 = vmatprep.mubr.msk.bf16.mxu0 %vm997_vm2, %v4310_v15  ;;  %4123 = vmatprep.mubr.msk.bf16.mxu1 %vm997_vm2, %v4311_v16  ;;  %v4335_v40 = vld [vmem:[%s4636_s12 + $0x180] sm:$0xff]   ;;  %v4336_v41 = vld [vmem:[%s4636_s12 + $0x88] sm:$0xff]  }
  0x56   : > { %312 = vst.msk [vmem:[#allocation2 + $0x110] sm:$0xff] %vm277_vm3, %v4516_v10  ;;  %313 = vst.msk [vmem:[#allocation2 + $0x118] sm:$0xff] %vm277_vm3, %v4516_v10  ;;  %v4337_v42 = vld [vmem:[%s4636_s12 + $0x188] sm:$0xff]   ;;  %v4338_v43 = vld [vmem:[%s4636_s12 + $0x90] sm:$0xff]  }
  0x57   : > { %314 = vst.msk [vmem:[#allocation2 + $0x120] sm:$0xff] %vm277_vm3, %v4516_v10  ;;  %315 = vst.msk [vmem:[#allocation2 + $0x128] sm:$0xff] %vm277_vm3, %v4516_v10  ;;  %v4339_v44 = vld [vmem:[%s4636_s12 + $0x190] sm:$0xff]   ;;  %v4340_v45 = vld [vmem:[%s4636_s12 + $0x98] sm:$0xff]  }
  0x58   : > { %316 = vst.msk [vmem:[#allocation2 + $0x130] sm:$0xff] %vm277_vm3, %v4516_v10  ;;  %317 = vst.msk [vmem:[#allocation2 + $0x138] sm:$0xff] %vm277_vm3, %v4516_v10  ;;  %v4341_v46 = vld [vmem:[%s4636_s12 + $0x198] sm:$0xff]   ;;  %v4342_v47 = vld [vmem:[%s4636_s12 + $0xa0] sm:$0xff]  }
  0x59   : > { %318 = vst.msk [vmem:[#allocation2 + $0x140] sm:$0xff] %vm277_vm3, %v4516_v10  ;;  %319 = vst.msk [vmem:[#allocation2 + $0x148] sm:$0xff] %vm277_vm3, %v4516_v10  ;;  %v4343_v48 = vld [vmem:[%s4636_s12 + $0x1a0] sm:$0xff]   ;;  %v4344_v49 = vld [vmem:[%s4636_s12 + $0xa8] sm:$0xff]  }
  0x5a   : > { %320 = vst.msk [vmem:[#allocation2 + $0x150] sm:$0xff] %vm277_vm3, %v4516_v10  ;;  %321 = vst.msk [vmem:[#allocation2 + $0x158] sm:$0xff] %vm277_vm3, %v4516_v10  ;;  %v4345_v50 = vld [vmem:[%s4636_s12 + $0x1a8] sm:$0xff]   ;;  %v4346_v51 = vld [vmem:[%s4636_s12 + $0xb0] sm:$0xff]  }
  0x5b   : > { %322 = vst.msk [vmem:[#allocation2 + $0x160] sm:$0xff] %vm277_vm3, %v4516_v10  ;;  %323 = vst.msk [vmem:[#allocation2 + $0x168] sm:$0xff] %vm277_vm3, %v4516_v10  ;;  %v4347_v52 = vld [vmem:[%s4636_s12 + $0x1b0] sm:$0xff]   ;;  %v4348_v53 = vld [vmem:[%s4636_s12 + $0xb8] sm:$0xff]  }
  0x5c   : > { %324 = vst.msk [vmem:[#allocation2 + $0x170] sm:$0xff] %vm277_vm3, %v4516_v10  ;;  %325 = vst.msk [vmem:[#allocation2 + $0x178] sm:$0xff] %vm277_vm3, %v4516_v10  ;;  %4060 = vmatmul.mubr.msk.bf16.gmra.mrb[8].mxu0 %vm997_vm2, %v4312_v17  ;;  %4124 = vmatmul.mubr.msk.bf16.gmra.mrb[8].mxu1 %vm997_vm2, %v4313_v18  ;;  %v4349_v54 = vld [vmem:[%s4636_s12 + $0x1b8] sm:$0xff]   ;;  %v4350_v55 = vld [vmem:[%s4636_s12 + $0xc0] sm:$0xff]  }
  0x5d   : > { %326 = vst.msk [vmem:[#allocation2 + $0x180] sm:$0xff] %vm277_vm3, %v4516_v10  ;;  %327 = vst.msk [vmem:[#allocation2 + $0x188] sm:$0xff] %vm277_vm3, %v4516_v10  ;;  %4063 = vmatprep.mubr.msk.bf16.mxu0 %vm997_vm2, %v4314_v19  ;;  %4127 = vmatprep.mubr.msk.bf16.mxu1 %vm997_vm2, %v4315_v20  ;;  %v4351_v56 = vld [vmem:[%s4636_s12 + $0x1c0] sm:$0xff]   ;;  %v4352_v57 = vld [vmem:[%s4636_s12 + $0xc8] sm:$0xff]  }
  0x5e   : > { %328 = vst.msk [vmem:[#allocation2 + $0x190] sm:$0xff] %vm277_vm3, %v4516_v10  ;;  %329 = vst.msk [vmem:[#allocation2 + $0x198] sm:$0xff] %vm277_vm3, %v4516_v10  ;;  %v4353_v58 = vld [vmem:[%s4636_s12 + $0x1c8] sm:$0xff]   ;;  %v4354_v59 = vld [vmem:[%s4636_s12 + $0xd0] sm:$0xff]  }
  0x5f   : > { %330 = vst.msk [vmem:[#allocation2 + $0x1a0] sm:$0xff] %vm277_vm3, %v4516_v10  ;;  %331 = vst.msk [vmem:[#allocation2 + $0x1a8] sm:$0xff] %vm277_vm3, %v4516_v10  ;;  %v4355_v60 = vld [vmem:[%s4636_s12 + $0x1d0] sm:$0xff]   ;;  %v4356_v61 = vld [vmem:[%s4636_s12 + $0xd8] sm:$0xff]  }
  0x60   : > { %332 = vst.msk [vmem:[#allocation2 + $0x1b0] sm:$0xff] %vm277_vm3, %v4516_v10  ;;  %333 = vst.msk [vmem:[#allocation2 + $0x1b8] sm:$0xff] %vm277_vm3, %v4516_v10  ;;  %v4357_v62 = vld [vmem:[%s4636_s12 + $0x1d8] sm:$0xff]   ;;  %v4358_v63 = vld [vmem:[%s4636_s12 + $0xe0] sm:$0xff]  }
  0x61   : > { %334 = vst.msk [vmem:[#allocation2 + $0x1c0] sm:$0xff] %vm277_vm3, %v4516_v10  ;;  %335 = vst.msk [vmem:[#allocation2 + $0x1c8] sm:$0xff] %vm277_vm3, %v4516_v10  ;;  %v4359_v0 = vld [vmem:[%s4636_s12 + $0x1e0] sm:$0xff]   ;;  %v4360_v1 = vld [vmem:[%s4636_s12 + $0xe8] sm:$0xff]  }
  0x62   : > { %336 = vst.msk [vmem:[#allocation2 + $0x1d0] sm:$0xff] %vm277_vm3, %v4516_v10  ;;  %337 = vst.msk [vmem:[#allocation2 + $0x1d8] sm:$0xff] %vm277_vm3, %v4516_v10  ;;  %v4361_v2 = vld [vmem:[%s4636_s12 + $0x1e8] sm:$0xff]   ;;  %v4362_v3 = vld [vmem:[%s4636_s12 + $0xf0] sm:$0xff]  }
  0x63   : > { %338 = vst.msk [vmem:[#allocation2 + $0x1e0] sm:$0xff] %vm277_vm3, %v4516_v10  ;;  %339 = vst.msk [vmem:[#allocation2 + $0x1e8] sm:$0xff] %vm277_vm3, %v4516_v10  ;;  %v4363_v4 = vld [vmem:[%s4636_s12 + $0x1f0] sm:$0xff]   ;;  %v4364_v5 = vld [vmem:[%s4636_s12 + $0xf8] sm:$0xff]  }
  0x64   : > { %340 = vst.msk [vmem:[#allocation2 + $0x1f0] sm:$0xff] %vm277_vm3, %v4516_v10  ;;  %341 = vst.msk [vmem:[#allocation2 + $0x1f8] sm:$0xff] %vm277_vm3, %v4516_v10  ;;  %4064 = vmatmul.mubr.msk.bf16.gmra.mrb[12].mxu0 %vm997_vm2, %v4316_v21  ;;  %4128 = vmatmul.mubr.msk.bf16.gmra.mrb[12].mxu1 %vm997_vm2, %v4317_v22  ;;  %v4365_v6 = vld [vmem:[%s4636_s12 + $0x1f8] sm:$0xff]   ;;  %v412_v7 = vld [vmem:[#allocation2 + $0x10] sm:$0xff] }
  0x65   : > { %342 = vst.msk [vmem:[#allocation2 + $0x200] sm:$0xff] %vm277_vm3, %v4516_v10  ;;  %343 = vst.msk [vmem:[#allocation2 + $0x208] sm:$0xff] %vm277_vm3, %v4516_v10  ;;  %4067 = vmatprep.mubr.msk.bf16.mxu0 %vm997_vm2, %v4318_v23  ;;  %4131 = vmatprep.mubr.msk.bf16.mxu1 %vm997_vm2, %v4319_v24  ;;  %v410_v9 = vld [vmem:[#allocation2] sm:$0xff]  ;;  %v413_v13 = vld [vmem:[#allocation2 + $0x18] sm:$0xff] }
  0x66   : > { %344 = vst.msk [vmem:[#allocation2 + $0x210] sm:$0xff] %vm277_vm3, %v4516_v10  ;;  %345 = vst.msk [vmem:[#allocation2 + $0x218] sm:$0xff] %vm277_vm3, %v4516_v10  ;;  %v411_v19 = vld [vmem:[#allocation2 + $0x8] sm:$0xff] }
  0x67   : > { %346 = vst.msk [vmem:[#allocation2 + $0x220] sm:$0xff] %vm277_vm3, %v4516_v10  ;;  %347 = vst.msk [vmem:[#allocation2 + $0x228] sm:$0xff] %vm277_vm3, %v4516_v10 }
  0x68   : > { %348 = vst.msk [vmem:[#allocation2 + $0x230] sm:$0xff] %vm277_vm3, %v4516_v10  ;;  %349 = vst.msk [vmem:[#allocation2 + $0x238] sm:$0xff] %vm277_vm3, %v4516_v10 }
  0x69   : > { %350 = vst.msk [vmem:[#allocation2 + $0x240] sm:$0xff] %vm277_vm3, %v4516_v10  ;;  %351 = vst.msk [vmem:[#allocation2 + $0x248] sm:$0xff] %vm277_vm3, %v4516_v10 }
  0x6a   : > { %352 = vst.msk [vmem:[#allocation2 + $0x250] sm:$0xff] %vm277_vm3, %v4516_v10  ;;  %353 = vst.msk [vmem:[#allocation2 + $0x258] sm:$0xff] %vm277_vm3, %v4516_v10 }
  0x6b   : > { %354 = vst.msk [vmem:[#allocation2 + $0x260] sm:$0xff] %vm277_vm3, %v4516_v10  ;;  %355 = vst.msk [vmem:[#allocation2 + $0x268] sm:$0xff] %vm277_vm3, %v4516_v10 }
  0x6c   : > { %356 = vst.msk [vmem:[#allocation2 + $0x270] sm:$0xff] %vm277_vm3, %v4516_v10  ;;  %357 = vst.msk [vmem:[#allocation2 + $0x278] sm:$0xff] %vm277_vm3, %v4516_v10  ;;  %4068 = vmatmul.mubr.msk.bf16.gmra.mrb[16].mxu0 %vm997_vm2, %v4320_v25  ;;  %4132 = vmatmul.mubr.msk.bf16.gmra.mrb[16].mxu1 %vm997_vm2, %v4321_v26  ;;  %v475_v20 = vld [vmem:[#allocation2 + $0x208] sm:$0xff] }
  0x6d   : > { %358 = vst.msk [vmem:[#allocation2 + $0x280] sm:$0xff] %vm277_vm3, %v4516_v10  ;;  %359 = vst.msk [vmem:[#allocation2 + $0x288] sm:$0xff] %vm277_vm3, %v4516_v10  ;;  %4071 = vmatprep.mubr.msk.bf16.mxu0 %vm997_vm2, %v4322_v27  ;;  %4135 = vmatprep.mubr.msk.bf16.mxu1 %vm997_vm2, %v4323_v28  ;;  %v476_v8 = vld [vmem:[#allocation2 + $0x210] sm:$0xff]  ;;  %v477_v14 = vld [vmem:[#allocation2 + $0x218] sm:$0xff] }
  0x6e   : > { %360 = vst.msk [vmem:[#allocation2 + $0x290] sm:$0xff] %vm277_vm3, %v4516_v10  ;;  %361 = vst.msk [vmem:[#allocation2 + $0x298] sm:$0xff] %vm277_vm3, %v4516_v10 }
  0x6f   : > { %362 = vst.msk [vmem:[#allocation2 + $0x2a0] sm:$0xff] %vm277_vm3, %v4516_v10  ;;  %363 = vst.msk [vmem:[#allocation2 + $0x2a8] sm:$0xff] %vm277_vm3, %v4516_v10 }
  0x70   : > { %364 = vst.msk [vmem:[#allocation2 + $0x2b0] sm:$0xff] %vm277_vm3, %v4516_v10  ;;  %365 = vst.msk [vmem:[#allocation2 + $0x2b8] sm:$0xff] %vm277_vm3, %v4516_v10 }
  0x71   : > { %366 = vst.msk [vmem:[#allocation2 + $0x2c0] sm:$0xff] %vm277_vm3, %v4516_v10  ;;  %367 = vst.msk [vmem:[#allocation2 + $0x2c8] sm:$0xff] %vm277_vm3, %v4516_v10 }
  0x72   : > { %368 = vst.msk [vmem:[#allocation2 + $0x2d0] sm:$0xff] %vm277_vm3, %v4516_v10  ;;  %369 = vst.msk [vmem:[#allocation2 + $0x2d8] sm:$0xff] %vm277_vm3, %v4516_v10 }
  0x73   : > { %370 = vst.msk [vmem:[#allocation2 + $0x2e0] sm:$0xff] %vm277_vm3, %v4516_v10  ;;  %371 = vst.msk [vmem:[#allocation2 + $0x2e8] sm:$0xff] %vm277_vm3, %v4516_v10 }
  0x74   : > { %372 = vst.msk [vmem:[#allocation2 + $0x2f0] sm:$0xff] %vm277_vm3, %v4516_v10  ;;  %373 = vst.msk [vmem:[#allocation2 + $0x2f8] sm:$0xff] %vm277_vm3, %v4516_v10  ;;  %4072 = vmatmul.mubr.msk.bf16.gmra.mrb[20].mxu0 %vm997_vm2, %v4324_v29  ;;  %4136 = vmatmul.mubr.msk.bf16.gmra.mrb[20].mxu1 %vm997_vm2, %v4325_v30 }
  0x75   : > { %374 = vst.msk [vmem:[#allocation2 + $0x300] sm:$0xff] %vm277_vm3, %v4516_v10  ;;  %375 = vst.msk [vmem:[#allocation2 + $0x308] sm:$0xff] %vm277_vm3, %v4516_v10  ;;  %4075 = vmatprep.mubr.msk.bf16.mxu0 %vm997_vm2, %v4326_v31  ;;  %4139 = vmatprep.mubr.msk.bf16.mxu1 %vm997_vm2, %v4327_v32  ;;  %v416_v31 = vld [vmem:[#allocation2 + $0x30] sm:$0xff] }
  0x76   : > { %376 = vst.msk [vmem:[#allocation2 + $0x310] sm:$0xff] %vm277_vm3, %v4516_v10  ;;  %377 = vst.msk [vmem:[#allocation2 + $0x318] sm:$0xff] %vm277_vm3, %v4516_v10  ;;  %v480_v32 = vld [vmem:[#allocation2 + $0x230] sm:$0xff] }
  0x77   : > { %378 = vst.msk [vmem:[#allocation2 + $0x320] sm:$0xff] %vm277_vm3, %v4516_v10  ;;  %379 = vst.msk [vmem:[#allocation2 + $0x328] sm:$0xff] %vm277_vm3, %v4516_v10 }
  0x78   : > { %380 = vst.msk [vmem:[#allocation2 + $0x330] sm:$0xff] %vm277_vm3, %v4516_v10  ;;  %381 = vst.msk [vmem:[#allocation2 + $0x338] sm:$0xff] %vm277_vm3, %v4516_v10 }
  0x79   : > { %382 = vst.msk [vmem:[#allocation2 + $0x340] sm:$0xff] %vm277_vm3, %v4516_v10  ;;  %383 = vst.msk [vmem:[#allocation2 + $0x348] sm:$0xff] %vm277_vm3, %v4516_v10 }
  0x7a   : > { %384 = vst.msk [vmem:[#allocation2 + $0x350] sm:$0xff] %vm277_vm3, %v4516_v10  ;;  %385 = vst.msk [vmem:[#allocation2 + $0x358] sm:$0xff] %vm277_vm3, %v4516_v10 }
  0x7b   : > { %386 = vst.msk [vmem:[#allocation2 + $0x360] sm:$0xff] %vm277_vm3, %v4516_v10  ;;  %387 = vst.msk [vmem:[#allocation2 + $0x368] sm:$0xff] %vm277_vm3, %v4516_v10 }
  0x7c   : > { %388 = vst.msk [vmem:[#allocation2 + $0x370] sm:$0xff] %vm277_vm3, %v4516_v10  ;;  %389 = vst.msk [vmem:[#allocation2 + $0x378] sm:$0xff] %vm277_vm3, %v4516_v10  ;;  %4076 = vmatmul.mubr.msk.bf16.gmra.mrb[24].mxu0 %vm997_vm2, %v4328_v33  ;;  %4140 = vmatmul.mubr.msk.bf16.gmra.mrb[24].mxu1 %vm997_vm2, %v4329_v34  ;;  %v414_v33 = vld [vmem:[#allocation2 + $0x20] sm:$0xff] }
  0x7d   : > { %390 = vst.msk [vmem:[#allocation2 + $0x380] sm:$0xff] %vm277_vm3, %v4516_v10  ;;  %391 = vst.msk [vmem:[#allocation2 + $0x388] sm:$0xff] %vm277_vm3, %v4516_v10  ;;  %4079 = vmatprep.mubr.msk.bf16.mxu0 %vm997_vm2, %v4330_v35  ;;  %4143 = vmatprep.mubr.msk.bf16.mxu1 %vm997_vm2, %v4331_v36  ;;  %v478_v34 = vld [vmem:[#allocation2 + $0x220] sm:$0xff] }
  0x7e   : > { %392 = vst.msk [vmem:[#allocation2 + $0x390] sm:$0xff] %vm277_vm3, %v4516_v10  ;;  %393 = vst.msk [vmem:[#allocation2 + $0x398] sm:$0xff] %vm277_vm3, %v4516_v10  ;;  %v5058_v35 = vld [vmem:[%s5770_s2] ss:$0 sm:$0xff] }
  0x7f   : > { %394 = vst.msk [vmem:[#allocation2 + $0x3a0] sm:$0xff] %vm277_vm3, %v4516_v10  ;;  %395 = vst.msk [vmem:[#allocation2 + $0x3a8] sm:$0xff] %vm277_vm3, %v4516_v10 }
  0x80   : > { %396 = vst.msk [vmem:[#allocation2 + $0x3b0] sm:$0xff] %vm277_vm3, %v4516_v10  ;;  %397 = vst.msk [vmem:[#allocation2 + $0x3b8] sm:$0xff] %vm277_vm3, %v4516_v10 }
  0x81   : > { %398 = vst.msk [vmem:[#allocation2 + $0x3c0] sm:$0xff] %vm277_vm3, %v4516_v10  ;;  %399 = vst.msk [vmem:[#allocation2 + $0x3c8] sm:$0xff] %vm277_vm3, %v4516_v10 }
  0x82   : > { %400 = vst.msk [vmem:[#allocation2 + $0x3d0] sm:$0xff] %vm277_vm3, %v4516_v10  ;;  %401 = vst.msk [vmem:[#allocation2 + $0x3d8] sm:$0xff] %vm277_vm3, %v4516_v10 }
  0x83   : > { %402 = vst.msk [vmem:[#allocation2 + $0x3e0] sm:$0xff] %vm277_vm3, %v4516_v10  ;;  %403 = vst.msk [vmem:[#allocation2 + $0x3e8] sm:$0xff] %vm277_vm3, %v4516_v10 }
  0x84   : > { %404 = vst.msk [vmem:[#allocation2 + $0x3f0] sm:$0xff] %vm277_vm3, %v4516_v10  ;;  %405 = vst.msk [vmem:[#allocation2 + $0x3f8] sm:$0xff] %vm277_vm3, %v4516_v10  ;;  %4080 = vmatmul.mubr.msk.bf16.gmra.mrb[28].mxu0 %vm997_vm2, %v4332_v37  ;;  %4144 = vmatmul.mubr.msk.bf16.gmra.mrb[28].mxu1 %vm997_vm2, %v4333_v38  ;;  %v474_v10 = vld [vmem:[#allocation2 + $0x200] sm:$0xff]  ;;  %v417_v38 = vld [vmem:[#allocation2 + $0x38] sm:$0xff] }
  0x85   : > { %4083 = vmatprep.mubr.msk.bf16.mxu0 %vm997_vm2, %v4334_v39  ;;  %4147 = vmatprep.mubr.msk.bf16.mxu1 %vm997_vm2, %v4335_v40  ;;  %v481_v39 = vld [vmem:[#allocation2 + $0x238] sm:$0xff] }
  0x8c   : > { %4084 = vmatmul.mubr.msk.bf16.gmra.mrb[32].mxu0 %vm997_vm2, %v4336_v41  ;;  %4148 = vmatmul.mubr.msk.bf16.gmra.mrb[32].mxu1 %vm997_vm2, %v4337_v42 }
  0x8d   : > { %4087 = vmatprep.mubr.msk.bf16.mxu0 %vm997_vm2, %v4338_v43  ;;  %4151 = vmatprep.mubr.msk.bf16.mxu1 %vm997_vm2, %v4339_v44  ;;  %v415_v44 = vld [vmem:[#allocation2 + $0x28] sm:$0xff] }
  0x94   : > { %4088 = vmatmul.mubr.msk.bf16.gmra.mrb[36].mxu0 %vm997_vm2, %v4340_v45  ;;  %4152 = vmatmul.mubr.msk.bf16.gmra.mrb[36].mxu1 %vm997_vm2, %v4341_v46  ;;  %v479_v45 = vld [vmem:[#allocation2 + $0x228] sm:$0xff] }
  0x95   : > { %4091 = vmatprep.mubr.msk.bf16.mxu0 %vm997_vm2, %v4342_v47  ;;  %4155 = vmatprep.mubr.msk.bf16.mxu1 %vm997_vm2, %v4343_v48 }
  0x9c   : > { %4092 = vmatmul.mubr.msk.bf16.gmra.mrb[40].mxu0 %vm997_vm2, %v4344_v49  ;;  %4156 = vmatmul.mubr.msk.bf16.gmra.mrb[40].mxu1 %vm997_vm2, %v4345_v50 }
  0x9d   : > { %4095 = vmatprep.mubr.msk.bf16.mxu0 %vm997_vm2, %v4346_v51  ;;  %4159 = vmatprep.mubr.msk.bf16.mxu1 %vm997_vm2, %v4347_v52 }
  0xa4   : > { %4096 = vmatmul.mubr.msk.bf16.gmra.mrb[44].mxu0 %vm997_vm2, %v4348_v53  ;;  %4160 = vmatmul.mubr.msk.bf16.gmra.mrb[44].mxu1 %vm997_vm2, %v4349_v54 }
  0xa5   : > { %4099 = vmatprep.mubr.msk.bf16.mxu0 %vm997_vm2, %v4350_v55  ;;  %4163 = vmatprep.mubr.msk.bf16.mxu1 %vm997_vm2, %v4351_v56 }
  0xac   : > { %4100 = vmatmul.mubr.msk.bf16.gmra.mrb[48].mxu0 %vm997_vm2, %v4352_v57  ;;  %4164 = vmatmul.mubr.msk.bf16.gmra.mrb[48].mxu1 %vm997_vm2, %v4353_v58 }
  0xad   : > { %4103 = vmatprep.mubr.msk.bf16.mxu0 %vm997_vm2, %v4354_v59  ;;  %4167 = vmatprep.mubr.msk.bf16.mxu1 %vm997_vm2, %v4355_v60 }
  0xb4   : > { %4104 = vmatmul.mubr.msk.bf16.gmra.mrb[52].mxu0 %vm997_vm2, %v4356_v61  ;;  %4168 = vmatmul.mubr.msk.bf16.gmra.mrb[52].mxu1 %vm997_vm2, %v4357_v62 }
  0xb5   : > { %4107 = vmatprep.mubr.msk.bf16.mxu0 %vm997_vm2, %v4358_v63  ;;  %4171 = vmatprep.mubr.msk.bf16.mxu1 %vm997_vm2, %v4359_v0 }
  0xbc   : > { %4108 = vmatmul.mubr.msk.bf16.gmra.mrb[56].mxu0 %vm997_vm2, %v4360_v1  ;;  %4172 = vmatmul.mubr.msk.bf16.gmra.mrb[56].mxu1 %vm997_vm2, %v4361_v2 }
  0xbd   : > { %4111 = vmatprep.mubr.msk.bf16.mxu0 %vm997_vm2, %v4362_v3  ;;  %4175 = vmatprep.mubr.msk.bf16.mxu1 %vm997_vm2, %v4363_v4 }
  0xc4   : > { %4112 = vmatmul.mubr.msk.bf16.gmra.mrb[60].mxu0 %vm997_vm2, %v4364_v5  ;;  %4176 = vmatmul.mubr.msk.bf16.gmra.mrb[60].mxu1 %vm997_vm2, %v4365_v6 }
 0x11f   : > { %v4053_v11 = vpop.f32.mrb[0].mxu0  ;;  %v4117_v12 = vpop.f32.mrb[0].mxu1 }
 0x120   : > { %v1744_v15 = vadd.f32 %v4053_v11, %v412_v7  ;;  %v1808_v16 = vadd.f32 %v4117_v12, %v476_v8  ;;  %v1231_v17 = vpop.f32.mrb[1].mxu0  ;;  %v1487_v18 = vpop.f32.mrb[1].mxu1  ;;  %v420_v12 = vld [vmem:[#allocation2 + $0x50] sm:$0xff] }
 0x121   : > { %v1742_v21 = vadd.f32 %v1231_v17, %v410_v9  ;;  %v1806_v22 = vadd.f32 %v1487_v18, %v474_v10  ;;  %v4054_v23 = vpop.f32.mrb[2].mxu0  ;;  %v4118_v24 = vpop.f32.mrb[2].mxu1  ;;  %v418_v18 = vld [vmem:[#allocation2 + $0x40] sm:$0xff] }
 0x122   : > { %1873 = vst.msk [vmem:[#allocation2 + $0x10] sm:$0xff] %vm277_vm3, %v1744_v15  ;;  %1937 = vst.msk [vmem:[#allocation2 + $0x210] sm:$0xff] %vm277_vm3, %v1808_v16  ;;  %v1745_v25 = vadd.f32 %v4054_v23, %v413_v13  ;;  %v1809_v26 = vadd.f32 %v4118_v24, %v477_v14  ;;  %v1234_v27 = vpop.f32.mrb[3].mxu0  ;;  %v1490_v28 = vpop.f32.mrb[3].mxu1  ;;  %v484_v13 = vld [vmem:[#allocation2 + $0x250] sm:$0xff] }
 0x123   : > { %1871 = vst.msk [vmem:[#allocation2] sm:$0xff] %vm277_vm3, %v1742_v21  ;;  %1935 = vst.msk [vmem:[#allocation2 + $0x200] sm:$0xff] %vm277_vm3, %v1806_v22  ;;  %v1743_v29 = vadd.f32 %v1234_v27, %v411_v19  ;;  %v1807_v30 = vadd.f32 %v1490_v28, %v475_v20  ;;  %v482_v19 = vld [vmem:[#allocation2 + $0x240] sm:$0xff]  ;;  %v485_v27 = vld [vmem:[#allocation2 + $0x258] sm:$0xff] }
 0x124   : > { %1874 = vst.msk [vmem:[#allocation2 + $0x18] sm:$0xff] %vm277_vm3, %v1745_v25  ;;  %1938 = vst.msk [vmem:[#allocation2 + $0x218] sm:$0xff] %vm277_vm3, %v1809_v26  ;;  %v421_v26 = vld [vmem:[#allocation2 + $0x58] sm:$0xff] }
 0x125   : > { %1872 = vst.msk [vmem:[#allocation2 + $0x8] sm:$0xff] %vm277_vm3, %v1743_v29  ;;  %1936 = vst.msk [vmem:[#allocation2 + $0x208] sm:$0xff] %vm277_vm3, %v1807_v30 }
 0x127   : > { %v4057_v36 = vpop.f32.mrb[4].mxu0  ;;  %v4121_v37 = vpop.f32.mrb[4].mxu1 }
 0x128   : > { %v1748_v40 = vadd.f32 %v4057_v36, %v416_v31  ;;  %v1812_v41 = vadd.f32 %v4121_v37, %v480_v32  ;;  %v1247_v42 = vpop.f32.mrb[5].mxu0  ;;  %v1503_v43 = vpop.f32.mrb[5].mxu1  ;;  %v483_v36 = vld [vmem:[#allocation2 + $0x248] sm:$0xff] }
 0x129   : > { %v2004_v46 = vld [vmem:[#allocation2 + $0x10] sm:$0xff]  ;;  %v1746_v48 = vadd.f32 %v1247_v42, %v414_v33  ;;  %v1810_v49 = vadd.f32 %v1503_v43, %v478_v34  ;;  %v4058_v50 = vpop.f32.mrb[6].mxu0  ;;  %v4122_v51 = vpop.f32.mrb[6].mxu1  ;;  %v419_v34 = vld [vmem:[#allocation2 + $0x48] sm:$0xff] }
 0x12a   : > { %v2068_v47 = vld [vmem:[#allocation2 + $0x210] sm:$0xff]  ;;  %v2139_v52 = vadd.f32 %v5058_v35, %v2004_v46  ;;  %v2002_v54 = vld [vmem:[#allocation2] sm:$0xff]  ;;  %1877 = vst.msk [vmem:[#allocation2 + $0x30] sm:$0xff] %vm277_vm3, %v1748_v40  ;;  %1941 = vst.msk [vmem:[#allocation2 + $0x230] sm:$0xff] %vm277_vm3, %v1812_v41  ;;  %v1749_v56 = vadd.f32 %v4058_v50, %v417_v38  ;;  %v1813_v57 = vadd.f32 %v4122_v51, %v481_v39  ;;  %v1250_v58 = vpop.f32.mrb[7].mxu0  ;;  %v1506_v59 = vpop.f32.mrb[7].mxu1 }
 0x12b   : > { %v2203_v53 = vadd.f32 %v5058_v35, %v2068_v47  ;;  %v2066_v55 = vld [vmem:[#allocation2 + $0x200] sm:$0xff]  ;;  %v2137_v60 = vadd.f32 %v5058_v35, %v2002_v54  ;;  %v2005_v62 = vld [vmem:[#allocation2 + $0x18] sm:$0xff]  ;;  %1875 = vst.msk [vmem:[#allocation2 + $0x20] sm:$0xff] %vm277_vm3, %v1746_v48  ;;  %1939 = vst.msk [vmem:[#allocation2 + $0x220] sm:$0xff] %vm277_vm3, %v1810_v49  ;;  %v1747_v0 = vadd.f32 %v1250_v58, %v415_v44 }
 0x12c   : > { %v2201_v61 = vadd.f32 %v5058_v35, %v2066_v55  ;;  %v2069_v63 = vld [vmem:[#allocation2 + $0x218] sm:$0xff]  ;;  %v1811_v1 = vadd.f32 %v1506_v59, %v479_v45  ;;  %v2267_v2 = vmax.f32 %v2139_v52, 0.0  ;;  %v2140_v4 = vadd.f32 %v5058_v35, %v2005_v62  ;;  %v2003_v6 = vld [vmem:[#allocation2 + $0x8] sm:$0xff]  ;;  %1878 = vst.msk [vmem:[#allocation2 + $0x38] sm:$0xff] %vm277_vm3, %v1749_v56  ;;  %1942 = vst.msk [vmem:[#allocation2 + $0x238] sm:$0xff] %vm277_vm3, %v1813_v57 }
 0x12d   : > { %v2331_v3 = vmax.f32 %v2203_v53, 0.0  ;;  %v2204_v5 = vadd.f32 %v5058_v35, %v2069_v63  ;;  %v2067_v7 = vld [vmem:[#allocation2 + $0x208] sm:$0xff]  ;;  %v2265_v8 = vmax.f32 %v2137_v60, 0.0  ;;  %v2138_v10 = vadd.f32 %v5058_v35, %v2003_v6  ;;  %1876 = vst.msk [vmem:[#allocation2 + $0x28] sm:$0xff] %vm277_vm3, %v1747_v0  ;;  %v488_v6 = vld [vmem:[#allocation2 + $0x270] sm:$0xff] }
 0x12e   : > { %v2329_v9 = vmax.f32 %v2201_v61, 0.0  ;;  %v2202_v11 = vadd.f32 %v5058_v35, %v2067_v7  ;;  %1940 = vst.msk [vmem:[#allocation2 + $0x228] sm:$0xff] %vm277_vm3, %v1811_v1  ;;  %v3852_v14 = vpack.c.bf16 %v2267_v2, %v2267_v2  ;;  %v2268_v16 = vmax.f32 %v2140_v4, 0.0 }
 0x12f   : > { %v3916_v15 = vpack.c.bf16 %v2331_v3, %v2331_v3  ;;  %v2332_v17 = vmax.f32 %v2204_v5, 0.0  ;;  %v3850_v20 = vpack.c.bf16 %v2265_v8, %v2265_v8  ;;  %v2266_v22 = vmax.f32 %v2138_v10, 0.0  ;;  %v4061_v24 = vpop.f32.mrb[8].mxu0  ;;  %v4125_v25 = vpop.f32.mrb[8].mxu1  ;;  %v424_v5 = vld [vmem:[#allocation2 + $0x70] sm:$0xff] }
 0x130   : > { %v3914_v21 = vpack.c.bf16 %v2329_v9, %v2329_v9  ;;  %v2330_v23 = vmax.f32 %v2202_v11, 0.0  ;;  %2908 = vst.msk [vmem:[%s5077_s20 + $0x8] sm:$0xf] %vm2905_vm4, %v3852_v14  ;;  %v3853_v28 = vpack.c.bf16 %v2268_v16, %v2268_v16  ;;  %v1752_v30 = vadd.f32 %v4061_v24, %v420_v12  ;;  %v1263_v32 = vpop.f32.mrb[9].mxu0  ;;  %v1519_v33 = vpop.f32.mrb[9].mxu1  ;;  %v422_v11 = vld [vmem:[#allocation2 + $0x60] sm:$0xff] }
 0x131   : > { %2972 = vst.msk [vmem:[%s5077_s20 + $0x108] sm:$0xf] %vm2905_vm4, %v3916_v15  ;;  %v3917_v29 = vpack.c.bf16 %v2332_v17, %v2332_v17  ;;  %v1816_v31 = vadd.f32 %v4125_v25, %v484_v13  ;;  %2906 = vst.msk [vmem:[%s5077_s20] sm:$0xf] %vm2905_vm4, %v3850_v20  ;;  %v3851_v37 = vpack.c.bf16 %v2266_v22, %v2266_v22  ;;  %v2008_v39 = vld [vmem:[#allocation2 + $0x30] sm:$0xff]  ;;  %v4062_v43 = vpop.f32.mrb[10].mxu0 }
 0x132   : > { %2970 = vst.msk [vmem:[%s5077_s20 + $0x100] sm:$0xf] %vm2905_vm4, %v3914_v21  ;;  %v3915_v38 = vpack.c.bf16 %v2330_v23, %v2330_v23  ;;  %v2072_v40 = vld [vmem:[#allocation2 + $0x230] sm:$0xff]  ;;  %v1750_v41 = vadd.f32 %v1263_v32, %v418_v18  ;;  %v1814_v42 = vadd.f32 %v1519_v33, %v482_v19  ;;  %v4126_v44 = vpop.f32.mrb[10].mxu1  ;;  %2909 = vst.msk [vmem:[%s5077_s20 + $0xc] sm:$0xf] %vm2905_vm4, %v3853_v28 }
 0x133   : > { %2973 = vst.msk [vmem:[%s5077_s20 + $0x10c] sm:$0xf] %vm2905_vm4, %v3917_v29  ;;  %v2143_v45 = vadd.f32 %v5058_v35, %v2008_v39  ;;  %v2207_v46 = vadd.f32 %v5058_v35, %v2072_v40  ;;  %v2006_v47 = vld [vmem:[#allocation2 + $0x20] sm:$0xff]  ;;  %v1753_v49 = vadd.f32 %v4062_v43, %v421_v26  ;;  %v1817_v50 = vadd.f32 %v4126_v44, %v485_v27  ;;  %v1266_v51 = vpop.f32.mrb[11].mxu0  ;;  %v1522_v52 = vpop.f32.mrb[11].mxu1  ;;  %v2009_v55 = vld [vmem:[#allocation2 + $0x38] sm:$0xff] }
 0x134   : > { %v2070_v48 = vld [vmem:[#allocation2 + $0x220] sm:$0xff]  ;;  %1881 = vst.msk [vmem:[#allocation2 + $0x50] sm:$0xff] %vm277_vm3, %v1752_v30  ;;  %1945 = vst.msk [vmem:[#allocation2 + $0x250] sm:$0xff] %vm277_vm3, %v1816_v31  ;;  %v2141_v53 = vadd.f32 %v5058_v35, %v2006_v47  ;;  %v2073_v56 = vld [vmem:[#allocation2 + $0x238] sm:$0xff]  ;;  %v1751_v57 = vadd.f32 %v1266_v51, %v419_v34  ;;  %v1815_v58 = vadd.f32 %v1522_v52, %v483_v36 }
 0x135   : > { %2907 = vst.msk [vmem:[%s5077_s20 + $0x4] sm:$0xf] %vm2905_vm4, %v3851_v37  ;;  %2971 = vst.msk [vmem:[%s5077_s20 + $0x104] sm:$0xf] %vm2905_vm4, %v3915_v38  ;;  %v2205_v54 = vadd.f32 %v5058_v35, %v2070_v48  ;;  %v2271_v59 = vmax.f32 %v2143_v45, 0.0  ;;  %v2335_v60 = vmax.f32 %v2207_v46, 0.0  ;;  %v2144_v61 = vadd.f32 %v5058_v35, %v2009_v55 }
 0x136   : > { %1879 = vst.msk [vmem:[#allocation2 + $0x40] sm:$0xff] %vm277_vm3, %v1750_v41  ;;  %1943 = vst.msk [vmem:[#allocation2 + $0x240] sm:$0xff] %vm277_vm3, %v1814_v42  ;;  %v2208_v62 = vadd.f32 %v5058_v35, %v2073_v56  ;;  %v2007_v63 = vld [vmem:[#allocation2 + $0x28] sm:$0xff]  ;;  %v2269_v1 = vmax.f32 %v2141_v53, 0.0  ;;  %v486_v12 = vld [vmem:[#allocation2 + $0x260] sm:$0xff] }
 0x137   : > { %v2071_v0 = vld [vmem:[#allocation2 + $0x228] sm:$0xff]  ;;  %1882 = vst.msk [vmem:[#allocation2 + $0x58] sm:$0xff] %vm277_vm3, %v1753_v49  ;;  %1946 = vst.msk [vmem:[#allocation2 + $0x258] sm:$0xff] %vm277_vm3, %v1817_v50  ;;  %v2333_v2 = vmax.f32 %v2205_v54, 0.0  ;;  %v2142_v3 = vadd.f32 %v5058_v35, %v2007_v63  ;;  %v3856_v7 = vpack.c.bf16 %v2271_v59, %v2271_v59  ;;  %v3920_v8 = vpack.c.bf16 %v2335_v60, %v2335_v60  ;;  %v4065_v17 = vpop.f32.mrb[12].mxu0  ;;  %v4129_v18 = vpop.f32.mrb[12].mxu1 }
 0x138   : > { %v2206_v4 = vadd.f32 %v5058_v35, %v2071_v0  ;;  %1880 = vst.msk [vmem:[#allocation2 + $0x48] sm:$0xff] %vm277_vm3, %v1751_v57  ;;  %1944 = vst.msk [vmem:[#allocation2 + $0x248] sm:$0xff] %vm277_vm3, %v1815_v58  ;;  %v2272_v9 = vmax.f32 %v2144_v61, 0.0  ;;  %v2336_v10 = vmax.f32 %v2208_v62, 0.0  ;;  %v3854_v13 = vpack.c.bf16 %v2269_v1, %v2269_v1  ;;  %v425_v19 = vld [vmem:[#allocation2 + $0x78] sm:$0xff]  ;;  %v1279_v25 = vpop.f32.mrb[13].mxu0 }
 0x139   : > { %v3918_v14 = vpack.c.bf16 %v2333_v2, %v2333_v2  ;;  %v2270_v15 = vmax.f32 %v2142_v3, 0.0  ;;  %v489_v20 = vld [vmem:[#allocation2 + $0x278] sm:$0xff]  ;;  %2912 = vst.msk [vmem:[%s5077_s20 + $0x18] sm:$0xf] %vm2905_vm4, %v3856_v7  ;;  %2976 = vst.msk [vmem:[%s5077_s20 + $0x118] sm:$0xf] %vm2905_vm4, %v3920_v8  ;;  %v1756_v23 = vadd.f32 %v4065_v17, %v424_v5  ;;  %v1820_v24 = vadd.f32 %v4129_v18, %v488_v6 }
 0x13a   : > { %v2334_v16 = vmax.f32 %v2206_v4, 0.0  ;;  %v3857_v21 = vpack.c.bf16 %v2272_v9, %v2272_v9  ;;  %v3921_v22 = vpack.c.bf16 %v2336_v10, %v2336_v10  ;;  %v1535_v26 = vpop.f32.mrb[13].mxu1  ;;  %v423_v27 = vld [vmem:[#allocation2 + $0x68] sm:$0xff]  ;;  %2910 = vst.msk [vmem:[%s5077_s20 + $0x10] sm:$0xf] %vm2905_vm4, %v3854_v13  ;;  %v1754_v33 = vadd.f32 %v1279_v25, %v422_v11  ;;  %v4066_v36 = vpop.f32.mrb[14].mxu0 }
 0x13b   : > { %v487_v28 = vld [vmem:[#allocation2 + $0x268] sm:$0xff]  ;;  %2974 = vst.msk [vmem:[%s5077_s20 + $0x110] sm:$0xf] %vm2905_vm4, %v3918_v14  ;;  %v3855_v29 = vpack.c.bf16 %v2270_v15, %v2270_v15  ;;  %v2012_v31 = vld [vmem:[#allocation2 + $0x50] sm:$0xff]  ;;  %v1818_v34 = vadd.f32 %v1535_v26, %v486_v12  ;;  %v4130_v37 = vpop.f32.mrb[14].mxu1  ;;  %v1757_v42 = vadd.f32 %v4066_v36, %v425_v19  ;;  %v1282_v44 = vpop.f32.mrb[15].mxu0 }
 0x13c   : > { %v3919_v30 = vpack.c.bf16 %v2334_v16, %v2334_v16  ;;  %v2076_v32 = vld [vmem:[#allocation2 + $0x250] sm:$0xff]  ;;  %2913 = vst.msk [vmem:[%s5077_s20 + $0x1c] sm:$0xf] %vm2905_vm4, %v3857_v21  ;;  %2977 = vst.msk [vmem:[%s5077_s20 + $0x11c] sm:$0xf] %vm2905_vm4, %v3921_v22  ;;  %v2147_v38 = vadd.f32 %v5058_v35, %v2012_v31  ;;  %v1821_v43 = vadd.f32 %v4130_v37, %v489_v20  ;;  %v1538_v45 = vpop.f32.mrb[15].mxu1 }
 0x13d   : > { %v2211_v39 = vadd.f32 %v5058_v35, %v2076_v32  ;;  %v2010_v40 = vld [vmem:[#allocation2 + $0x40] sm:$0xff]  ;;  %1885 = vst.msk [vmem:[#allocation2 + $0x70] sm:$0xff] %vm277_vm3, %v1756_v23  ;;  %1949 = vst.msk [vmem:[#allocation2 + $0x270] sm:$0xff] %vm277_vm3, %v1820_v24  ;;  %v1755_v50 = vadd.f32 %v1282_v44, %v423_v27  ;;  %v1819_v51 = vadd.f32 %v1538_v45, %v487_v28  ;;  %v428_v62 = vld [vmem:[#allocation2 + $0x90] sm:$0xff] }
 0x13e   : > { %v2074_v41 = vld [vmem:[#allocation2 + $0x240] sm:$0xff]  ;;  %2911 = vst.msk [vmem:[%s5077_s20 + $0x14] sm:$0xf] %vm2905_vm4, %v3855_v29  ;;  %2975 = vst.msk [vmem:[%s5077_s20 + $0x114] sm:$0xf] %vm2905_vm4, %v3919_v30  ;;  %v2145_v46 = vadd.f32 %v5058_v35, %v2010_v40  ;;  %v2013_v48 = vld [vmem:[#allocation2 + $0x58] sm:$0xff] }
 0x13f   : > { %v2209_v47 = vadd.f32 %v5058_v35, %v2074_v41  ;;  %v2077_v49 = vld [vmem:[#allocation2 + $0x258] sm:$0xff]  ;;  %1883 = vst.msk [vmem:[#allocation2 + $0x60] sm:$0xff] %vm277_vm3, %v1754_v33  ;;  %1947 = vst.msk [vmem:[#allocation2 + $0x260] sm:$0xff] %vm277_vm3, %v1818_v34  ;;  %v2275_v52 = vmax.f32 %v2147_v38, 0.0  ;;  %v2339_v53 = vmax.f32 %v2211_v39, 0.0  ;;  %v2148_v54 = vadd.f32 %v5058_v35, %v2013_v48  ;;  %v2011_v56 = vld [vmem:[#allocation2 + $0x48] sm:$0xff] }
 0x140   : > { %v2212_v55 = vadd.f32 %v5058_v35, %v2077_v49  ;;  %v2075_v57 = vld [vmem:[#allocation2 + $0x248] sm:$0xff]  ;;  %1886 = vst.msk [vmem:[#allocation2 + $0x78] sm:$0xff] %vm277_vm3, %v1757_v42  ;;  %1950 = vst.msk [vmem:[#allocation2 + $0x278] sm:$0xff] %vm277_vm3, %v1821_v43  ;;  %v2273_v58 = vmax.f32 %v2145_v46, 0.0  ;;  %v2146_v60 = vadd.f32 %v5058_v35, %v2011_v56  ;;  %v492_v63 = vld [vmem:[#allocation2 + $0x290] sm:$0xff]  ;;  %v4069_v10 = vpop.f32.mrb[16].mxu0 }
 0x141   : > { %v2337_v59 = vmax.f32 %v2209_v47, 0.0  ;;  %v2210_v61 = vadd.f32 %v5058_v35, %v2075_v57  ;;  %1884 = vst.msk [vmem:[#allocation2 + $0x68] sm:$0xff] %vm277_vm3, %v1755_v50  ;;  %1948 = vst.msk [vmem:[#allocation2 + $0x268] sm:$0xff] %vm277_vm3, %v1819_v51  ;;  %v3860_v0 = vpack.c.bf16 %v2275_v52, %v2275_v52  ;;  %v3924_v1 = vpack.c.bf16 %v2339_v53, %v2339_v53  ;;  %v426_v4 = vld [vmem:[#allocation2 + $0x80] sm:$0xff]  ;;  %v4133_v11 = vpop.f32.mrb[16].mxu1  ;;  %v429_v12 = vld [vmem:[#allocation2 + $0x98] sm:$0xff] }
 0x142   : > { %v2276_v2 = vmax.f32 %v2148_v54, 0.0  ;;  %v2340_v3 = vmax.f32 %v2212_v55, 0.0  ;;  %v490_v5 = vld [vmem:[#allocation2 + $0x280] sm:$0xff]  ;;  %v3858_v6 = vpack.c.bf16 %v2273_v58, %v2273_v58  ;;  %v2274_v8 = vmax.f32 %v2146_v60, 0.0  ;;  %v493_v13 = vld [vmem:[#allocation2 + $0x298] sm:$0xff]  ;;  %v1295_v18 = vpop.f32.mrb[17].mxu0 }
 0x143   : > { %v3922_v7 = vpack.c.bf16 %v2337_v59, %v2337_v59  ;;  %v2338_v9 = vmax.f32 %v2210_v61, 0.0  ;;  %2916 = vst.msk [vmem:[%s5077_s20 + $0x28] sm:$0xf] %vm2905_vm4, %v3860_v0  ;;  %2980 = vst.msk [vmem:[%s5077_s20 + $0x128] sm:$0xf] %vm2905_vm4, %v3924_v1  ;;  %v1760_v16 = vadd.f32 %v4069_v10, %v428_v62  ;;  %v1824_v17 = vadd.f32 %v4133_v11, %v492_v63  ;;  %v1551_v19 = vpop.f32.mrb[17].mxu1 }
 0x144   : > { %v3861_v14 = vpack.c.bf16 %v2276_v2, %v2276_v2  ;;  %v3925_v15 = vpack.c.bf16 %v2340_v3, %v2340_v3  ;;  %v427_v20 = vld [vmem:[#allocation2 + $0x88] sm:$0xff]  ;;  %2914 = vst.msk [vmem:[%s5077_s20 + $0x20] sm:$0xf] %vm2905_vm4, %v3858_v6  ;;  %v3859_v22 = vpack.c.bf16 %v2274_v8, %v2274_v8  ;;  %v2016_v24 = vld [vmem:[#allocation2 + $0x70] sm:$0xff]  ;;  %v1758_v26 = vadd.f32 %v1295_v18, %v426_v4  ;;  %v4070_v28 = vpop.f32.mrb[18].mxu0  ;;  %v4134_v29 = vpop.f32.mrb[18].mxu1 }
 0x145   : > { %v491_v21 = vld [vmem:[#allocation2 + $0x288] sm:$0xff]  ;;  %2978 = vst.msk [vmem:[%s5077_s20 + $0x120] sm:$0xf] %vm2905_vm4, %v3922_v7  ;;  %v3923_v23 = vpack.c.bf16 %v2338_v9, %v2338_v9  ;;  %v2080_v25 = vld [vmem:[#allocation2 + $0x270] sm:$0xff]  ;;  %v1822_v27 = vadd.f32 %v1551_v19, %v490_v5  ;;  %v2151_v30 = vadd.f32 %v5058_v35, %v2016_v24  ;;  %v1761_v34 = vadd.f32 %v4070_v28, %v429_v12  ;;  %v1298_v37 = vpop.f32.mrb[19].mxu0  ;;  %v1554_v38 = vpop.f32.mrb[19].mxu1 }
 0x146   : > { %2917 = vst.msk [vmem:[%s5077_s20 + $0x2c] sm:$0xf] %vm2905_vm4, %v3861_v14  ;;  %2981 = vst.msk [vmem:[%s5077_s20 + $0x12c] sm:$0xf] %vm2905_vm4, %v3925_v15  ;;  %v2215_v31 = vadd.f32 %v5058_v35, %v2080_v25  ;;  %v2014_v32 = vld [vmem:[#allocation2 + $0x60] sm:$0xff]  ;;  %v1825_v36 = vadd.f32 %v4134_v29, %v493_v13  ;;  %v1759_v43 = vadd.f32 %v1298_v37, %v427_v20  ;;  %v432_v55 = vld [vmem:[#allocation2 + $0xb0] sm:$0xff] }
 0x147   : > { %v2078_v33 = vld [vmem:[#allocation2 + $0x260] sm:$0xff]  ;;  %1889 = vst.msk [vmem:[#allocation2 + $0x90] sm:$0xff] %vm277_vm3, %v1760_v16  ;;  %1953 = vst.msk [vmem:[#allocation2 + $0x290] sm:$0xff] %vm277_vm3, %v1824_v17  ;;  %v2149_v39 = vadd.f32 %v5058_v35, %v2014_v32  ;;  %v2017_v41 = vld [vmem:[#allocation2 + $0x78] sm:$0xff]  ;;  %v1823_v44 = vadd.f32 %v1554_v38, %v491_v21  ;;  %v2279_v45 = vmax.f32 %v2151_v30, 0.0  ;;  %v4073_v3 = vpop.f32.mrb[20].mxu0 }
 0x148   : > { %2915 = vst.msk [vmem:[%s5077_s20 + $0x24] sm:$0xf] %vm2905_vm4, %v3859_v22  ;;  %2979 = vst.msk [vmem:[%s5077_s20 + $0x124] sm:$0xf] %vm2905_vm4, %v3923_v23  ;;  %v2213_v40 = vadd.f32 %v5058_v35, %v2078_v33  ;;  %v2081_v42 = vld [vmem:[#allocation2 + $0x278] sm:$0xff]  ;;  %v2343_v46 = vmax.f32 %v2215_v31, 0.0  ;;  %v2152_v47 = vadd.f32 %v5058_v35, %v2017_v41  ;;  %v1764_v9 = vadd.f32 %v4073_v3, %v432_v55 }
 0x149   : > { %1887 = vst.msk [vmem:[#allocation2 + $0x80] sm:$0xff] %vm277_vm3, %v1758_v26  ;;  %1951 = vst.msk [vmem:[#allocation2 + $0x280] sm:$0xff] %vm277_vm3, %v1822_v27  ;;  %v2216_v48 = vadd.f32 %v5058_v35, %v2081_v42  ;;  %v2015_v49 = vld [vmem:[#allocation2 + $0x68] sm:$0xff]  ;;  %v2277_v51 = vmax.f32 %v2149_v39, 0.0  ;;  %v496_v56 = vld [vmem:[#allocation2 + $0x2b0] sm:$0xff]  ;;  %v3864_v57 = vpack.c.bf16 %v2279_v45, %v2279_v45  ;;  %v4137_v4 = vpop.f32.mrb[20].mxu1 }
 0x14a   : > { %v2079_v50 = vld [vmem:[#allocation2 + $0x268] sm:$0xff]  ;;  %1890 = vst.msk [vmem:[#allocation2 + $0x98] sm:$0xff] %vm277_vm3, %v1761_v34  ;;  %1954 = vst.msk [vmem:[#allocation2 + $0x298] sm:$0xff] %vm277_vm3, %v1825_v36  ;;  %v2341_v52 = vmax.f32 %v2213_v40, 0.0  ;;  %v2150_v53 = vadd.f32 %v5058_v35, %v2015_v49  ;;  %v3928_v58 = vpack.c.bf16 %v2343_v46, %v2343_v46  ;;  %v2280_v59 = vmax.f32 %v2152_v47, 0.0  ;;  %v430_v61 = vld [vmem:[#allocation2 + $0xa0] sm:$0xff] }
 0x14b   : > { %v2214_v54 = vadd.f32 %v5058_v35, %v2079_v50  ;;  %1888 = vst.msk [vmem:[#allocation2 + $0x88] sm:$0xff] %vm277_vm3, %v1759_v43  ;;  %1952 = vst.msk [vmem:[#allocation2 + $0x288] sm:$0xff] %vm277_vm3, %v1823_v44  ;;  %v2344_v60 = vmax.f32 %v2216_v48, 0.0  ;;  %v494_v62 = vld [vmem:[#allocation2 + $0x2a0] sm:$0xff]  ;;  %v3862_v63 = vpack.c.bf16 %v2277_v51, %v2277_v51  ;;  %v433_v5 = vld [vmem:[#allocation2 + $0xb8] sm:$0xff]  ;;  %v1828_v10 = vadd.f32 %v4137_v4, %v496_v56  ;;  %v1311_v11 = vpop.f32.mrb[21].mxu0 }
 0x14c   : > { %v3926_v0 = vpack.c.bf16 %v2341_v52, %v2341_v52  ;;  %v2278_v1 = vmax.f32 %v2150_v53, 0.0  ;;  %v497_v6 = vld [vmem:[#allocation2 + $0x2b8] sm:$0xff]  ;;  %2920 = vst.msk [vmem:[%s5077_s20 + $0x38] sm:$0xf] %vm2905_vm4, %v3864_v57  ;;  %2984 = vst.msk [vmem:[%s5077_s20 + $0x138] sm:$0xf] %vm2905_vm4, %v3928_v58  ;;  %v3865_v7 = vpack.c.bf16 %v2280_v59, %v2280_v59  ;;  %v1762_v19 = vadd.f32 %v1311_v11, %v430_v61 }
 0x14d   : > { %v2342_v2 = vmax.f32 %v2214_v54, 0.0  ;;  %v3929_v8 = vpack.c.bf16 %v2344_v60, %v2344_v60  ;;  %v1567_v12 = vpop.f32.mrb[21].mxu1  ;;  %v431_v13 = vld [vmem:[#allocation2 + $0xa8] sm:$0xff]  ;;  %2918 = vst.msk [vmem:[%s5077_s20 + $0x30] sm:$0xf] %vm2905_vm4, %v3862_v63  ;;  %v4074_v21 = vpop.f32.mrb[22].mxu0 }
 0x14e   : > { %v495_v14 = vld [vmem:[#allocation2 + $0x2a8] sm:$0xff]  ;;  %2982 = vst.msk [vmem:[%s5077_s20 + $0x130] sm:$0xf] %vm2905_vm4, %v3926_v0  ;;  %v3863_v15 = vpack.c.bf16 %v2278_v1, %v2278_v1  ;;  %v2020_v17 = vld [vmem:[#allocation2 + $0x90] sm:$0xff]  ;;  %v1826_v20 = vadd.f32 %v1567_v12, %v494_v62  ;;  %v4138_v22 = vpop.f32.mrb[22].mxu1  ;;  %v1765_v27 = vadd.f32 %v4074_v21, %v433_v5  ;;  %v1314_v29 = vpop.f32.mrb[23].mxu0 }
 0x14f   : > { %v3927_v16 = vpack.c.bf16 %v2342_v2, %v2342_v2  ;;  %v2084_v18 = vld [vmem:[#allocation2 + $0x290] sm:$0xff]  ;;  %2921 = vst.msk [vmem:[%s5077_s20 + $0x3c] sm:$0xf] %vm2905_vm4, %v3865_v7  ;;  %2985 = vst.msk [vmem:[%s5077_s20 + $0x13c] sm:$0xf] %vm2905_vm4, %v3929_v8  ;;  %v2155_v23 = vadd.f32 %v5058_v35, %v2020_v17  ;;  %v1829_v28 = vadd.f32 %v4138_v22, %v497_v6  ;;  %v1570_v30 = vpop.f32.mrb[23].mxu1 }
 0x150   : > { %v2219_v24 = vadd.f32 %v5058_v35, %v2084_v18  ;;  %v2018_v25 = vld [vmem:[#allocation2 + $0x80] sm:$0xff]  ;;  %1893 = vst.msk [vmem:[#allocation2 + $0xb0] sm:$0xff] %vm277_vm3, %v1764_v9  ;;  %1957 = vst.msk [vmem:[#allocation2 + $0x2b0] sm:$0xff] %vm277_vm3, %v1828_v10  ;;  %v1763_v36 = vadd.f32 %v1314_v29, %v431_v13  ;;  %v1827_v37 = vadd.f32 %v1570_v30, %v495_v14  ;;  %v436_v48 = vld [vmem:[#allocation2 + $0xd0] sm:$0xff]  ;;  %v4077_v60 = vpop.f32.mrb[24].mxu0  ;;  %v4141_v61 = vpop.f32.mrb[24].mxu1 }
 0x151   : > { %v2082_v26 = vld [vmem:[#allocation2 + $0x280] sm:$0xff]  ;;  %2919 = vst.msk [vmem:[%s5077_s20 + $0x34] sm:$0xf] %vm2905_vm4, %v3863_v15  ;;  %2983 = vst.msk [vmem:[%s5077_s20 + $0x134] sm:$0xf] %vm2905_vm4, %v3927_v16  ;;  %v2153_v31 = vadd.f32 %v5058_v35, %v2018_v25  ;;  %v2021_v33 = vld [vmem:[#allocation2 + $0x98] sm:$0xff]  ;;  %v1768_v2 = vadd.f32 %v4077_v60, %v436_v48 }
 0x152   : > { %v2217_v32 = vadd.f32 %v5058_v35, %v2082_v26  ;;  %v2085_v34 = vld [vmem:[#allocation2 + $0x298] sm:$0xff]  ;;  %1891 = vst.msk [vmem:[#allocation2 + $0xa0] sm:$0xff] %vm277_vm3, %v1762_v19  ;;  %1955 = vst.msk [vmem:[#allocation2 + $0x2a0] sm:$0xff] %vm277_vm3, %v1826_v20  ;;  %v2283_v38 = vmax.f32 %v2155_v23, 0.0  ;;  %v2347_v39 = vmax.f32 %v2219_v24, 0.0  ;;  %v2156_v40 = vadd.f32 %v5058_v35, %v2021_v33  ;;  %v2019_v42 = vld [vmem:[#allocation2 + $0x88] sm:$0xff] }
 0x153   : > { %v2220_v41 = vadd.f32 %v5058_v35, %v2085_v34  ;;  %v2083_v43 = vld [vmem:[#allocation2 + $0x288] sm:$0xff]  ;;  %1894 = vst.msk [vmem:[#allocation2 + $0xb8] sm:$0xff] %vm277_vm3, %v1765_v27  ;;  %1958 = vst.msk [vmem:[#allocation2 + $0x2b8] sm:$0xff] %vm277_vm3, %v1829_v28  ;;  %v2281_v44 = vmax.f32 %v2153_v31, 0.0  ;;  %v2154_v46 = vadd.f32 %v5058_v35, %v2019_v42  ;;  %v500_v49 = vld [vmem:[#allocation2 + $0x2d0] sm:$0xff]  ;;  %v1327_v4 = vpop.f32.mrb[25].mxu0 }
 0x154   : > { %v2345_v45 = vmax.f32 %v2217_v32, 0.0  ;;  %v2218_v47 = vadd.f32 %v5058_v35, %v2083_v43  ;;  %1892 = vst.msk [vmem:[#allocation2 + $0xa8] sm:$0xff] %vm277_vm3, %v1763_v36  ;;  %1956 = vst.msk [vmem:[#allocation2 + $0x2a8] sm:$0xff] %vm277_vm3, %v1827_v37  ;;  %v3868_v50 = vpack.c.bf16 %v2283_v38, %v2283_v38  ;;  %v3932_v51 = vpack.c.bf16 %v2347_v39, %v2347_v39  ;;  %v434_v54 = vld [vmem:[#allocation2 + $0xc0] sm:$0xff]  ;;  %v437_v62 = vld [vmem:[#allocation2 + $0xd8] sm:$0xff]  ;;  %v1583_v5 = vpop.f32.mrb[25].mxu1 }
 0x155   : > { %v2284_v52 = vmax.f32 %v2156_v40, 0.0  ;;  %v2348_v53 = vmax.f32 %v2220_v41, 0.0  ;;  %v498_v55 = vld [vmem:[#allocation2 + $0x2c0] sm:$0xff]  ;;  %v3866_v56 = vpack.c.bf16 %v2281_v44, %v2281_v44  ;;  %v2282_v58 = vmax.f32 %v2154_v46, 0.0  ;;  %v501_v63 = vld [vmem:[#allocation2 + $0x2d8] sm:$0xff]  ;;  %v435_v6 = vld [vmem:[#allocation2 + $0xc8] sm:$0xff] }
 0x156   : > { %v3930_v57 = vpack.c.bf16 %v2345_v45, %v2345_v45  ;;  %v2346_v59 = vmax.f32 %v2218_v47, 0.0  ;;  %2924 = vst.msk [vmem:[%s5077_s20 + $0x48] sm:$0xf] %vm2905_vm4, %v3868_v50  ;;  %2988 = vst.msk [vmem:[%s5077_s20 + $0x148] sm:$0xf] %vm2905_vm4, %v3932_v51  ;;  %v1832_v3 = vadd.f32 %v4141_v61, %v500_v49  ;;  %v499_v7 = vld [vmem:[#allocation2 + $0x2c8] sm:$0xff]  ;;  %v1766_v12 = vadd.f32 %v1327_v4, %v434_v54 }
 0x157   : > { %v3869_v0 = vpack.c.bf16 %v2284_v52, %v2284_v52  ;;  %v3933_v1 = vpack.c.bf16 %v2348_v53, %v2348_v53  ;;  %2922 = vst.msk [vmem:[%s5077_s20 + $0x40] sm:$0xf] %vm2905_vm4, %v3866_v56  ;;  %v3867_v8 = vpack.c.bf16 %v2282_v58, %v2282_v58  ;;  %v2024_v10 = vld [vmem:[#allocation2 + $0xb0] sm:$0xff]  ;;  %v1830_v13 = vadd.f32 %v1583_v5, %v498_v55  ;;  %v4078_v14 = vpop.f32.mrb[26].mxu0  ;;  %v4142_v15 = vpop.f32.mrb[26].mxu1  ;;  %v438_v47 = vld [vmem:[#allocation2 + $0xe0] sm:$0xff] }
 0x158   : > { %2986 = vst.msk [vmem:[%s5077_s20 + $0x140] sm:$0xf] %vm2905_vm4, %v3930_v57  ;;  %v3931_v9 = vpack.c.bf16 %v2346_v59, %v2346_v59  ;;  %v2088_v11 = vld [vmem:[#allocation2 + $0x2b0] sm:$0xff]  ;;  %v2159_v16 = vadd.f32 %v5058_v35, %v2024_v10  ;;  %v1769_v20 = vadd.f32 %v4078_v14, %v437_v62  ;;  %v1833_v21 = vadd.f32 %v4142_v15, %v501_v63  ;;  %v1330_v22 = vpop.f32.mrb[27].mxu0  ;;  %v1586_v23 = vpop.f32.mrb[27].mxu1  ;;  %v502_v48 = vld [vmem:[#allocation2 + $0x2e0] sm:$0xff] }
 0x159   : > { %2925 = vst.msk [vmem:[%s5077_s20 + $0x4c] sm:$0xf] %vm2905_vm4, %v3869_v0  ;;  %2989 = vst.msk [vmem:[%s5077_s20 + $0x14c] sm:$0xf] %vm2905_vm4, %v3933_v1  ;;  %v2223_v17 = vadd.f32 %v5058_v35, %v2088_v11  ;;  %v2022_v18 = vld [vmem:[#allocation2 + $0xa0] sm:$0xff]  ;;  %v1767_v28 = vadd.f32 %v1330_v22, %v435_v6  ;;  %v1831_v29 = vadd.f32 %v1586_v23, %v499_v7  ;;  %v440_v41 = vld [vmem:[#allocation2 + $0xf0] sm:$0xff] }
 0x15a   : > { %v2086_v19 = vld [vmem:[#allocation2 + $0x2a0] sm:$0xff]  ;;  %1897 = vst.msk [vmem:[#allocation2 + $0xd0] sm:$0xff] %vm277_vm3, %v1768_v2  ;;  %1961 = vst.msk [vmem:[#allocation2 + $0x2d0] sm:$0xff] %vm277_vm3, %v1832_v3  ;;  %v2157_v24 = vadd.f32 %v5058_v35, %v2022_v18  ;;  %v2025_v26 = vld [vmem:[#allocation2 + $0xb8] sm:$0xff]  ;;  %v2287_v30 = vmax.f32 %v2159_v16, 0.0  ;;  %v4081_v53 = vpop.f32.mrb[28].mxu0 }
 0x15b   : > { %2923 = vst.msk [vmem:[%s5077_s20 + $0x44] sm:$0xf] %vm2905_vm4, %v3867_v8  ;;  %2987 = vst.msk [vmem:[%s5077_s20 + $0x144] sm:$0xf] %vm2905_vm4, %v3931_v9  ;;  %v2221_v25 = vadd.f32 %v5058_v35, %v2086_v19  ;;  %v2089_v27 = vld [vmem:[#allocation2 + $0x2b8] sm:$0xff]  ;;  %v2351_v31 = vmax.f32 %v2223_v17, 0.0  ;;  %v2160_v32 = vadd.f32 %v5058_v35, %v2025_v26  ;;  %v1772_v59 = vadd.f32 %v4081_v53, %v440_v41 }
 0x15c   : > { %1895 = vst.msk [vmem:[#allocation2 + $0xc0] sm:$0xff] %vm277_vm3, %v1766_v12  ;;  %1959 = vst.msk [vmem:[#allocation2 + $0x2c0] sm:$0xff] %vm277_vm3, %v1830_v13  ;;  %v2224_v33 = vadd.f32 %v5058_v35, %v2089_v27  ;;  %v2023_v34 = vld [vmem:[#allocation2 + $0xa8] sm:$0xff]  ;;  %v2285_v37 = vmax.f32 %v2157_v24, 0.0  ;;  %v504_v42 = vld [vmem:[#allocation2 + $0x2f0] sm:$0xff]  ;;  %v3872_v43 = vpack.c.bf16 %v2287_v30, %v2287_v30  ;;  %v4145_v54 = vpop.f32.mrb[28].mxu1 }
 0x15d   : > { %v2087_v36 = vld [vmem:[#allocation2 + $0x2a8] sm:$0xff]  ;;  %1898 = vst.msk [vmem:[#allocation2 + $0xd8] sm:$0xff] %vm277_vm3, %v1769_v20  ;;  %1962 = vst.msk [vmem:[#allocation2 + $0x2d8] sm:$0xff] %vm277_vm3, %v1833_v21  ;;  %v2349_v38 = vmax.f32 %v2221_v25, 0.0  ;;  %v2158_v39 = vadd.f32 %v5058_v35, %v2023_v34  ;;  %v3936_v44 = vpack.c.bf16 %v2351_v31, %v2351_v31  ;;  %v2288_v45 = vmax.f32 %v2160_v32, 0.0  ;;  %v441_v55 = vld [vmem:[#allocation2 + $0xf8] sm:$0xff] }
 0x15e   : > { %v2222_v40 = vadd.f32 %v5058_v35, %v2087_v36  ;;  %1896 = vst.msk [vmem:[#allocation2 + $0xc8] sm:$0xff] %vm277_vm3, %v1767_v28  ;;  %1960 = vst.msk [vmem:[#allocation2 + $0x2c8] sm:$0xff] %vm277_vm3, %v1831_v29  ;;  %v2352_v46 = vmax.f32 %v2224_v33, 0.0  ;;  %v3870_v49 = vpack.c.bf16 %v2285_v37, %v2285_v37  ;;  %v505_v56 = vld [vmem:[#allocation2 + $0x2f8] sm:$0xff]  ;;  %v1836_v60 = vadd.f32 %v4145_v54, %v504_v42  ;;  %v1343_v61 = vpop.f32.mrb[29].mxu0  ;;  %v1599_v62 = vpop.f32.mrb[29].mxu1 }
 0x15f   : > { %v3934_v50 = vpack.c.bf16 %v2349_v38, %v2349_v38  ;;  %v2286_v51 = vmax.f32 %v2158_v39, 0.0  ;;  %2928 = vst.msk [vmem:[%s5077_s20 + $0x58] sm:$0xf] %vm2905_vm4, %v3872_v43  ;;  %2992 = vst.msk [vmem:[%s5077_s20 + $0x158] sm:$0xf] %vm2905_vm4, %v3936_v44  ;;  %v3873_v57 = vpack.c.bf16 %v2288_v45, %v2288_v45  ;;  %v439_v63 = vld [vmem:[#allocation2 + $0xe8] sm:$0xff]  ;;  %v1770_v5 = vadd.f32 %v1343_v61, %v438_v47 }
 0x160   : > { %v2350_v52 = vmax.f32 %v2222_v40, 0.0  ;;  %v3937_v58 = vpack.c.bf16 %v2352_v46, %v2352_v46  ;;  %v503_v0 = vld [vmem:[#allocation2 + $0x2e8] sm:$0xff]  ;;  %2926 = vst.msk [vmem:[%s5077_s20 + $0x50] sm:$0xf] %vm2905_vm4, %v3870_v49  ;;  %v1834_v6 = vadd.f32 %v1599_v62, %v502_v48  ;;  %v4082_v7 = vpop.f32.mrb[30].mxu0  ;;  %v4146_v8 = vpop.f32.mrb[30].mxu1 }
 0x161   : > { %2990 = vst.msk [vmem:[%s5077_s20 + $0x150] sm:$0xf] %vm2905_vm4, %v3934_v50  ;;  %v3871_v1 = vpack.c.bf16 %v2286_v51, %v2286_v51  ;;  %v2028_v3 = vld [vmem:[#allocation2 + $0xd0] sm:$0xff]  ;;  %2929 = vst.msk [vmem:[%s5077_s20 + $0x5c] sm:$0xf] %vm2905_vm4, %v3873_v57  ;;  %v1773_v13 = vadd.f32 %v4082_v7, %v441_v55  ;;  %v1837_v14 = vadd.f32 %v4146_v8, %v505_v56  ;;  %v1346_v15 = vpop.f32.mrb[31].mxu0 }
 0x162   : > { %v3935_v2 = vpack.c.bf16 %v2350_v52, %v2350_v52  ;;  %v2092_v4 = vld [vmem:[#allocation2 + $0x2d0] sm:$0xff]  ;;  %2993 = vst.msk [vmem:[%s5077_s20 + $0x15c] sm:$0xf] %vm2905_vm4, %v3937_v58  ;;  %v2163_v9 = vadd.f32 %v5058_v35, %v2028_v3  ;;  %v1602_v16 = vpop.f32.mrb[31].mxu1  ;;  %v1771_v21 = vadd.f32 %v1346_v15, %v439_v63  ;;  %v442_v40 = vld [vmem:[#allocation2 + $0x100] sm:$0xff]  ;;  %v445_v47 = vld [vmem:[#allocation2 + $0x118] sm:$0xff] }
 0x163   : > { %v2227_v10 = vadd.f32 %v5058_v35, %v2092_v4  ;;  %v2026_v11 = vld [vmem:[#allocation2 + $0xc0] sm:$0xff]  ;;  %1901 = vst.msk [vmem:[#allocation2 + $0xf0] sm:$0xff] %vm277_vm3, %v1772_v59  ;;  %1965 = vst.msk [vmem:[#allocation2 + $0x2f0] sm:$0xff] %vm277_vm3, %v1836_v60  ;;  %v1835_v22 = vadd.f32 %v1602_v16, %v503_v0  ;;  %v444_v33 = vld [vmem:[#allocation2 + $0x110] sm:$0xff]  ;;  %v4149_v46 = vpop.f32.mrb[32].mxu1 }
 0x164   : > { %v2090_v12 = vld [vmem:[#allocation2 + $0x2c0] sm:$0xff]  ;;  %2927 = vst.msk [vmem:[%s5077_s20 + $0x54] sm:$0xf] %vm2905_vm4, %v3871_v1  ;;  %2991 = vst.msk [vmem:[%s5077_s20 + $0x154] sm:$0xf] %vm2905_vm4, %v3935_v2  ;;  %v2161_v17 = vadd.f32 %v5058_v35, %v2026_v11  ;;  %v2029_v19 = vld [vmem:[#allocation2 + $0xd8] sm:$0xff] }
 0x165   : > { %v2225_v18 = vadd.f32 %v5058_v35, %v2090_v12  ;;  %v2093_v20 = vld [vmem:[#allocation2 + $0x2d8] sm:$0xff]  ;;  %1899 = vst.msk [vmem:[#allocation2 + $0xe0] sm:$0xff] %vm277_vm3, %v1770_v5  ;;  %1963 = vst.msk [vmem:[#allocation2 + $0x2e0] sm:$0xff] %vm277_vm3, %v1834_v6  ;;  %v2291_v23 = vmax.f32 %v2163_v9, 0.0  ;;  %v2355_v24 = vmax.f32 %v2227_v10, 0.0  ;;  %v2164_v25 = vadd.f32 %v5058_v35, %v2029_v19  ;;  %v2027_v27 = vld [vmem:[#allocation2 + $0xc8] sm:$0xff] }
 0x166   : > { %v2228_v26 = vadd.f32 %v5058_v35, %v2093_v20  ;;  %v2091_v28 = vld [vmem:[#allocation2 + $0x2c8] sm:$0xff]  ;;  %1902 = vst.msk [vmem:[#allocation2 + $0xf8] sm:$0xff] %vm277_vm3, %v1773_v13  ;;  %1966 = vst.msk [vmem:[#allocation2 + $0x2f8] sm:$0xff] %vm277_vm3, %v1837_v14  ;;  %v2289_v29 = vmax.f32 %v2161_v17, 0.0  ;;  %v2162_v31 = vadd.f32 %v5058_v35, %v2027_v27  ;;  %v508_v34 = vld [vmem:[#allocation2 + $0x310] sm:$0xff]  ;;  %v1615_v54 = vpop.f32.mrb[33].mxu1 }
 0x167   : > { %v2353_v30 = vmax.f32 %v2225_v18, 0.0  ;;  %v2226_v32 = vadd.f32 %v5058_v35, %v2091_v28  ;;  %1900 = vst.msk [vmem:[#allocation2 + $0xe8] sm:$0xff] %vm277_vm3, %v1771_v21  ;;  %1964 = vst.msk [vmem:[#allocation2 + $0x2e8] sm:$0xff] %vm277_vm3, %v1835_v22  ;;  %v3876_v36 = vpack.c.bf16 %v2291_v23, %v2291_v23  ;;  %v3940_v37 = vpack.c.bf16 %v2355_v24, %v2355_v24  ;;  %v506_v41 = vld [vmem:[#allocation2 + $0x300] sm:$0xff]  ;;  %v4085_v35 = vpop.f32.mrb[32].mxu0  ;;  %v509_v48 = vld [vmem:[#allocation2 + $0x318] sm:$0xff] }
 0x168   : > { %v2292_v38 = vmax.f32 %v2164_v25, 0.0  ;;  %v2356_v39 = vmax.f32 %v2228_v26, 0.0  ;;  %v3874_v42 = vpack.c.bf16 %v2289_v29, %v2289_v29  ;;  %v2290_v44 = vmax.f32 %v2162_v31, 0.0  ;;  %v1359_v53 = vpop.f32.mrb[33].mxu0  ;;  %v443_v55 = vld [vmem:[#allocation2 + $0x108] sm:$0xff]  ;;  %v4150_v0 = vpop.f32.mrb[34].mxu1 }
 0x169   : > { %v3938_v43 = vpack.c.bf16 %v2353_v30, %v2353_v30  ;;  %v2354_v45 = vmax.f32 %v2226_v32, 0.0  ;;  %2932 = vst.msk [vmem:[%s5077_s20 + $0x68] sm:$0xf] %vm2905_vm4, %v3876_v36  ;;  %2996 = vst.msk [vmem:[%s5077_s20 + $0x168] sm:$0xf] %vm2905_vm4, %v3940_v37  ;;  %v1776_v51 = vadd.f32 %v4085_v35, %v444_v33  ;;  %v1840_v52 = vadd.f32 %v4149_v46, %v508_v34  ;;  %v507_v56 = vld [vmem:[#allocation2 + $0x308] sm:$0xff] }
 0x16a   : > { %v3877_v49 = vpack.c.bf16 %v2292_v38, %v2292_v38  ;;  %v3941_v50 = vpack.c.bf16 %v2356_v39, %v2356_v39  ;;  %2930 = vst.msk [vmem:[%s5077_s20 + $0x60] sm:$0xf] %vm2905_vm4, %v3874_v42  ;;  %v3875_v57 = vpack.c.bf16 %v2290_v44, %v2290_v44  ;;  %v2032_v59 = vld [vmem:[#allocation2 + $0xf0] sm:$0xff]  ;;  %v1774_v61 = vadd.f32 %v1359_v53, %v442_v40  ;;  %v4086_v63 = vpop.f32.mrb[34].mxu0  ;;  %v5286_v1 = vld [vmem:[%s5770_s2] ss:$0 sm:$0xff] }
 0x16b   : > { %2994 = vst.msk [vmem:[%s5077_s20 + $0x160] sm:$0xf] %vm2905_vm4, %v3938_v43  ;;  %v3939_v58 = vpack.c.bf16 %v2354_v45, %v2354_v45  ;;  %v2096_v60 = vld [vmem:[#allocation2 + $0x2f0] sm:$0xff]  ;;  %v1838_v62 = vadd.f32 %v1615_v54, %v506_v41  ;;  %v2167_v2 = vadd.f32 %v5286_v1, %v2032_v59  ;;  %v1777_v6 = vadd.f32 %v4086_v63, %v445_v47  ;;  %v1362_v8 = vpop.f32.mrb[35].mxu0  ;;  %v1618_v9 = vpop.f32.mrb[35].mxu1  ;;  %v446_v32 = vld [vmem:[#allocation2 + $0x120] sm:$0xff] }
 0x16c   : > { %2933 = vst.msk [vmem:[%s5077_s20 + $0x6c] sm:$0xf] %vm2905_vm4, %v3877_v49  ;;  %2997 = vst.msk [vmem:[%s5077_s20 + $0x16c] sm:$0xf] %vm2905_vm4, %v3941_v50  ;;  %v2231_v3 = vadd.f32 %v5286_v1, %v2096_v60  ;;  %v2030_v4 = vld [vmem:[#allocation2 + $0xe0] sm:$0xff]  ;;  %v1841_v7 = vadd.f32 %v4150_v0, %v509_v48  ;;  %v1775_v14 = vadd.f32 %v1362_v8, %v443_v55  ;;  %v448_v26 = vld [vmem:[#allocation2 + $0x130] sm:$0xff] }
 0x16d   : > { %v2094_v5 = vld [vmem:[#allocation2 + $0x2e0] sm:$0xff]  ;;  %1905 = vst.msk [vmem:[#allocation2 + $0x110] sm:$0xff] %vm277_vm3, %v1776_v51  ;;  %1969 = vst.msk [vmem:[#allocation2 + $0x310] sm:$0xff] %vm277_vm3, %v1840_v52  ;;  %v2165_v10 = vadd.f32 %v5286_v1, %v2030_v4  ;;  %v2033_v12 = vld [vmem:[#allocation2 + $0xf8] sm:$0xff]  ;;  %v1839_v15 = vadd.f32 %v1618_v9, %v507_v56  ;;  %v2295_v16 = vmax.f32 %v2167_v2, 0.0  ;;  %v4089_v39 = vpop.f32.mrb[36].mxu0 }
 0x16e   : > { %2931 = vst.msk [vmem:[%s5077_s20 + $0x64] sm:$0xf] %vm2905_vm4, %v3875_v57  ;;  %2995 = vst.msk [vmem:[%s5077_s20 + $0x164] sm:$0xf] %vm2905_vm4, %v3939_v58  ;;  %v2229_v11 = vadd.f32 %v5286_v1, %v2094_v5  ;;  %v2097_v13 = vld [vmem:[#allocation2 + $0x2f8] sm:$0xff]  ;;  %v2359_v17 = vmax.f32 %v2231_v3, 0.0  ;;  %v2168_v18 = vadd.f32 %v5286_v1, %v2033_v12  ;;  %v1780_v45 = vadd.f32 %v4089_v39, %v448_v26 }
 0x16f   : > { %1903 = vst.msk [vmem:[#allocation2 + $0x100] sm:$0xff] %vm277_vm3, %v1774_v61  ;;  %1967 = vst.msk [vmem:[#allocation2 + $0x300] sm:$0xff] %vm277_vm3, %v1838_v62  ;;  %v2232_v19 = vadd.f32 %v5286_v1, %v2097_v13  ;;  %v2031_v20 = vld [vmem:[#allocation2 + $0xe8] sm:$0xff]  ;;  %v2293_v22 = vmax.f32 %v2165_v10, 0.0  ;;  %v512_v27 = vld [vmem:[#allocation2 + $0x330] sm:$0xff]  ;;  %v3880_v28 = vpack.c.bf16 %v2295_v16, %v2295_v16  ;;  %v4153_v40 = vpop.f32.mrb[36].mxu1 }
 0x170   : > { %v2095_v21 = vld [vmem:[#allocation2 + $0x2e8] sm:$0xff]  ;;  %1906 = vst.msk [vmem:[#allocation2 + $0x118] sm:$0xff] %vm277_vm3, %v1777_v6  ;;  %1970 = vst.msk [vmem:[#allocation2 + $0x318] sm:$0xff] %vm277_vm3, %v1841_v7  ;;  %v2357_v23 = vmax.f32 %v2229_v11, 0.0  ;;  %v2166_v24 = vadd.f32 %v5286_v1, %v2031_v20  ;;  %v3944_v29 = vpack.c.bf16 %v2359_v17, %v2359_v17  ;;  %v2296_v30 = vmax.f32 %v2168_v18, 0.0  ;;  %v510_v33 = vld [vmem:[#allocation2 + $0x320] sm:$0xff] }
 0x171   : > { %v2230_v25 = vadd.f32 %v5286_v1, %v2095_v21  ;;  %1904 = vst.msk [vmem:[#allocation2 + $0x108] sm:$0xff] %vm277_vm3, %v1775_v14  ;;  %1968 = vst.msk [vmem:[#allocation2 + $0x308] sm:$0xff] %vm277_vm3, %v1839_v15  ;;  %v2360_v31 = vmax.f32 %v2232_v19, 0.0  ;;  %v3878_v34 = vpack.c.bf16 %v2293_v22, %v2293_v22  ;;  %v449_v41 = vld [vmem:[#allocation2 + $0x138] sm:$0xff]  ;;  %v1844_v35 = vadd.f32 %v4153_v40, %v512_v27  ;;  %v1375_v46 = vpop.f32.mrb[37].mxu0  ;;  %v1631_v47 = vpop.f32.mrb[37].mxu1 }
 0x172   : > { %v3942_v36 = vpack.c.bf16 %v2357_v23, %v2357_v23  ;;  %v2294_v37 = vmax.f32 %v2166_v24, 0.0  ;;  %v513_v42 = vld [vmem:[#allocation2 + $0x338] sm:$0xff]  ;;  %2936 = vst.msk [vmem:[%s5077_s20 + $0x78] sm:$0xf] %vm2905_vm4, %v3880_v28  ;;  %3000 = vst.msk [vmem:[%s5077_s20 + $0x178] sm:$0xf] %vm2905_vm4, %v3944_v29  ;;  %v3881_v43 = vpack.c.bf16 %v2296_v30, %v2296_v30  ;;  %v1778_v54 = vadd.f32 %v1375_v46, %v446_v32 }
 0x173   : > { %v2358_v38 = vmax.f32 %v2230_v25, 0.0  ;;  %v3945_v44 = vpack.c.bf16 %v2360_v31, %v2360_v31  ;;  %v447_v48 = vld [vmem:[#allocation2 + $0x128] sm:$0xff]  ;;  %2934 = vst.msk [vmem:[%s5077_s20 + $0x70] sm:$0xf] %vm2905_vm4, %v3878_v34  ;;  %v1842_v55 = vadd.f32 %v1631_v47, %v510_v33  ;;  %v4090_v56 = vpop.f32.mrb[38].mxu0  ;;  %v4154_v57 = vpop.f32.mrb[38].mxu1 }
 0x174   : > { %v511_v49 = vld [vmem:[#allocation2 + $0x328] sm:$0xff]  ;;  %2998 = vst.msk [vmem:[%s5077_s20 + $0x170] sm:$0xf] %vm2905_vm4, %v3942_v36  ;;  %v3879_v50 = vpack.c.bf16 %v2294_v37, %v2294_v37  ;;  %v2036_v52 = vld [vmem:[#allocation2 + $0x110] sm:$0xff]  ;;  %2937 = vst.msk [vmem:[%s5077_s20 + $0x7c] sm:$0xf] %vm2905_vm4, %v3881_v43  ;;  %v1781_v62 = vadd.f32 %v4090_v56, %v449_v41  ;;  %v1845_v63 = vadd.f32 %v4154_v57, %v513_v42 }
 0x175   : > { %v3943_v51 = vpack.c.bf16 %v2358_v38, %v2358_v38  ;;  %v2100_v53 = vld [vmem:[#allocation2 + $0x310] sm:$0xff]  ;;  %3001 = vst.msk [vmem:[%s5077_s20 + $0x17c] sm:$0xf] %vm2905_vm4, %v3945_v44  ;;  %v2171_v58 = vadd.f32 %v5286_v1, %v2036_v52  ;;  %v1378_v0 = vpop.f32.mrb[39].mxu0  ;;  %v1634_v2 = vpop.f32.mrb[39].mxu1  ;;  %v450_v25 = vld [vmem:[#allocation2 + $0x140] sm:$0xff] }
 0x176   : > { %v2235_v59 = vadd.f32 %v5286_v1, %v2100_v53  ;;  %v2034_v60 = vld [vmem:[#allocation2 + $0x100] sm:$0xff]  ;;  %1909 = vst.msk [vmem:[#allocation2 + $0x130] sm:$0xff] %vm277_vm3, %v1780_v45  ;;  %1973 = vst.msk [vmem:[#allocation2 + $0x330] sm:$0xff] %vm277_vm3, %v1844_v35  ;;  %v1779_v7 = vadd.f32 %v1378_v0, %v447_v48  ;;  %v1843_v8 = vadd.f32 %v1634_v2, %v511_v49  ;;  %v452_v19 = vld [vmem:[#allocation2 + $0x150] sm:$0xff]  ;;  %v4093_v31 = vpop.f32.mrb[40].mxu0  ;;  %v4157_v32 = vpop.f32.mrb[40].mxu1 }
 0x177   : > { %v2098_v61 = vld [vmem:[#allocation2 + $0x300] sm:$0xff]  ;;  %2935 = vst.msk [vmem:[%s5077_s20 + $0x74] sm:$0xf] %vm2905_vm4, %v3879_v50  ;;  %2999 = vst.msk [vmem:[%s5077_s20 + $0x174] sm:$0xf] %vm2905_vm4, %v3943_v51  ;;  %v2169_v3 = vadd.f32 %v5286_v1, %v2034_v60  ;;  %v2037_v5 = vld [vmem:[#allocation2 + $0x118] sm:$0xff]  ;;  %v1784_v38 = vadd.f32 %v4093_v31, %v452_v19 }
 0x178   : > { %v2233_v4 = vadd.f32 %v5286_v1, %v2098_v61  ;;  %v2101_v6 = vld [vmem:[#allocation2 + $0x318] sm:$0xff]  ;;  %1907 = vst.msk [vmem:[#allocation2 + $0x120] sm:$0xff] %vm277_vm3, %v1778_v54  ;;  %1971 = vst.msk [vmem:[#allocation2 + $0x320] sm:$0xff] %vm277_vm3, %v1842_v55  ;;  %v2299_v9 = vmax.f32 %v2171_v58, 0.0  ;;  %v2363_v10 = vmax.f32 %v2235_v59, 0.0  ;;  %v2172_v11 = vadd.f32 %v5286_v1, %v2037_v5  ;;  %v2035_v13 = vld [vmem:[#allocation2 + $0x108] sm:$0xff] }
 0x179   : > { %v2236_v12 = vadd.f32 %v5286_v1, %v2101_v6  ;;  %v2099_v14 = vld [vmem:[#allocation2 + $0x308] sm:$0xff]  ;;  %1910 = vst.msk [vmem:[#allocation2 + $0x138] sm:$0xff] %vm277_vm3, %v1781_v62  ;;  %1974 = vst.msk [vmem:[#allocation2 + $0x338] sm:$0xff] %vm277_vm3, %v1845_v63  ;;  %v2297_v15 = vmax.f32 %v2169_v3, 0.0  ;;  %v2170_v17 = vadd.f32 %v5286_v1, %v2035_v13  ;;  %v516_v20 = vld [vmem:[#allocation2 + $0x350] sm:$0xff]  ;;  %v1391_v40 = vpop.f32.mrb[41].mxu0 }
 0x17a   : > { %v2361_v16 = vmax.f32 %v2233_v4, 0.0  ;;  %v2234_v18 = vadd.f32 %v5286_v1, %v2099_v14  ;;  %1908 = vst.msk [vmem:[#allocation2 + $0x128] sm:$0xff] %vm277_vm3, %v1779_v7  ;;  %1972 = vst.msk [vmem:[#allocation2 + $0x328] sm:$0xff] %vm277_vm3, %v1843_v8  ;;  %v3884_v21 = vpack.c.bf16 %v2299_v9, %v2299_v9  ;;  %v3948_v22 = vpack.c.bf16 %v2363_v10, %v2363_v10  ;;  %v514_v26 = vld [vmem:[#allocation2 + $0x340] sm:$0xff]  ;;  %v453_v33 = vld [vmem:[#allocation2 + $0x158] sm:$0xff]  ;;  %v1647_v41 = vpop.f32.mrb[41].mxu1 }
 0x17b   : > { %v2300_v23 = vmax.f32 %v2172_v11, 0.0  ;;  %v2364_v24 = vmax.f32 %v2236_v12, 0.0  ;;  %v3882_v27 = vpack.c.bf16 %v2297_v15, %v2297_v15  ;;  %v2298_v29 = vmax.f32 %v2170_v17, 0.0  ;;  %v517_v34 = vld [vmem:[#allocation2 + $0x358] sm:$0xff]  ;;  %v451_v42 = vld [vmem:[#allocation2 + $0x148] sm:$0xff]  ;;  %v4094_v49 = vpop.f32.mrb[42].mxu0 }
 0x17c   : > { %v3946_v28 = vpack.c.bf16 %v2361_v16, %v2361_v16  ;;  %v2362_v30 = vmax.f32 %v2234_v18, 0.0  ;;  %2940 = vst.msk [vmem:[%s5077_s20 + $0x88] sm:$0xf] %vm2905_vm4, %v3884_v21  ;;  %3004 = vst.msk [vmem:[%s5077_s20 + $0x188] sm:$0xf] %vm2905_vm4, %v3948_v22  ;;  %v1848_v39 = vadd.f32 %v4157_v32, %v516_v20  ;;  %v515_v43 = vld [vmem:[#allocation2 + $0x348] sm:$0xff]  ;;  %v1782_v47 = vadd.f32 %v1391_v40, %v450_v25 }
 0x17d   : > { %v3885_v36 = vpack.c.bf16 %v2300_v23, %v2300_v23  ;;  %v3949_v37 = vpack.c.bf16 %v2364_v24, %v2364_v24  ;;  %2938 = vst.msk [vmem:[%s5077_s20 + $0x80] sm:$0xf] %vm2905_vm4, %v3882_v27  ;;  %v3883_v44 = vpack.c.bf16 %v2298_v29, %v2298_v29  ;;  %v2040_v35 = vld [vmem:[#allocation2 + $0x130] sm:$0xff]  ;;  %v1846_v48 = vadd.f32 %v1647_v41, %v514_v26  ;;  %v4158_v50 = vpop.f32.mrb[42].mxu1  ;;  %v1394_v57 = vpop.f32.mrb[43].mxu0  ;;  %v454_v18 = vld [vmem:[#allocation2 + $0x160] sm:$0xff] }
 0x17e   : > { %3002 = vst.msk [vmem:[%s5077_s20 + $0x180] sm:$0xf] %vm2905_vm4, %v3946_v28  ;;  %v3947_v45 = vpack.c.bf16 %v2362_v30, %v2362_v30  ;;  %v2104_v46 = vld [vmem:[#allocation2 + $0x330] sm:$0xff]  ;;  %v2175_v51 = vadd.f32 %v5286_v1, %v2040_v35  ;;  %v1785_v55 = vadd.f32 %v4094_v49, %v453_v33  ;;  %v1849_v56 = vadd.f32 %v4158_v50, %v517_v34  ;;  %v1650_v58 = vpop.f32.mrb[43].mxu1  ;;  %v518_v19 = vld [vmem:[#allocation2 + $0x360] sm:$0xff]  ;;  %v4097_v24 = vpop.f32.mrb[44].mxu0 }
 0x17f   : > { %2941 = vst.msk [vmem:[%s5077_s20 + $0x8c] sm:$0xf] %vm2905_vm4, %v3885_v36  ;;  %3005 = vst.msk [vmem:[%s5077_s20 + $0x18c] sm:$0xf] %vm2905_vm4, %v3949_v37  ;;  %v2239_v52 = vadd.f32 %v5286_v1, %v2104_v46  ;;  %v2038_v53 = vld [vmem:[#allocation2 + $0x120] sm:$0xff]  ;;  %v1783_v63 = vadd.f32 %v1394_v57, %v451_v42  ;;  %v1847_v0 = vadd.f32 %v1650_v58, %v515_v43  ;;  %v456_v12 = vld [vmem:[#allocation2 + $0x170] sm:$0xff] }
 0x180   : > { %v2102_v54 = vld [vmem:[#allocation2 + $0x320] sm:$0xff]  ;;  %1913 = vst.msk [vmem:[#allocation2 + $0x150] sm:$0xff] %vm277_vm3, %v1784_v38  ;;  %1977 = vst.msk [vmem:[#allocation2 + $0x350] sm:$0xff] %vm277_vm3, %v1848_v39  ;;  %v2173_v59 = vadd.f32 %v5286_v1, %v2038_v53  ;;  %v2041_v61 = vld [vmem:[#allocation2 + $0x138] sm:$0xff]  ;;  %v2303_v2 = vmax.f32 %v2175_v51, 0.0  ;;  %v4161_v25 = vpop.f32.mrb[44].mxu1  ;;  %v1788_v30 = vadd.f32 %v4097_v24, %v456_v12 }
 0x181   : > { %2939 = vst.msk [vmem:[%s5077_s20 + $0x84] sm:$0xf] %vm2905_vm4, %v3883_v44  ;;  %3003 = vst.msk [vmem:[%s5077_s20 + $0x184] sm:$0xf] %vm2905_vm4, %v3947_v45  ;;  %v2237_v60 = vadd.f32 %v5286_v1, %v2102_v54  ;;  %v2105_v62 = vld [vmem:[#allocation2 + $0x338] sm:$0xff]  ;;  %v2367_v3 = vmax.f32 %v2239_v52, 0.0  ;;  %v2176_v4 = vadd.f32 %v5286_v1, %v2041_v61 }
 0x182   : > { %1911 = vst.msk [vmem:[#allocation2 + $0x140] sm:$0xff] %vm277_vm3, %v1782_v47  ;;  %1975 = vst.msk [vmem:[#allocation2 + $0x340] sm:$0xff] %vm277_vm3, %v1846_v48  ;;  %v2240_v5 = vadd.f32 %v5286_v1, %v2105_v62  ;;  %v2039_v6 = vld [vmem:[#allocation2 + $0x128] sm:$0xff]  ;;  %v2301_v8 = vmax.f32 %v2173_v59, 0.0  ;;  %v520_v13 = vld [vmem:[#allocation2 + $0x370] sm:$0xff]  ;;  %v3888_v14 = vpack.c.bf16 %v2303_v2, %v2303_v2  ;;  %v1407_v32 = vpop.f32.mrb[45].mxu0 }
 0x183   : > { %v2103_v7 = vld [vmem:[#allocation2 + $0x328] sm:$0xff]  ;;  %1914 = vst.msk [vmem:[#allocation2 + $0x158] sm:$0xff] %vm277_vm3, %v1785_v55  ;;  %1978 = vst.msk [vmem:[#allocation2 + $0x358] sm:$0xff] %vm277_vm3, %v1849_v56  ;;  %v2365_v9 = vmax.f32 %v2237_v60, 0.0  ;;  %v2174_v10 = vadd.f32 %v5286_v1, %v2039_v6  ;;  %v3952_v15 = vpack.c.bf16 %v2367_v3, %v2367_v3  ;;  %v2304_v16 = vmax.f32 %v2176_v4, 0.0  ;;  %v457_v26 = vld [vmem:[#allocation2 + $0x178] sm:$0xff] }
 0x184   : > { %v2238_v11 = vadd.f32 %v5286_v1, %v2103_v7  ;;  %1912 = vst.msk [vmem:[#allocation2 + $0x148] sm:$0xff] %vm277_vm3, %v1783_v63  ;;  %1976 = vst.msk [vmem:[#allocation2 + $0x348] sm:$0xff] %vm277_vm3, %v1847_v0  ;;  %v2368_v17 = vmax.f32 %v2240_v5, 0.0  ;;  %v3886_v20 = vpack.c.bf16 %v2301_v8, %v2301_v8  ;;  %v521_v27 = vld [vmem:[#allocation2 + $0x378] sm:$0xff]  ;;  %v1852_v31 = vadd.f32 %v4161_v25, %v520_v13  ;;  %v1663_v33 = vpop.f32.mrb[45].mxu1  ;;  %v455_v34 = vld [vmem:[#allocation2 + $0x168] sm:$0xff] }
 0x185   : > { %v3950_v21 = vpack.c.bf16 %v2365_v9, %v2365_v9  ;;  %v2302_v22 = vmax.f32 %v2174_v10, 0.0  ;;  %2944 = vst.msk [vmem:[%s5077_s20 + $0x98] sm:$0xf] %vm2905_vm4, %v3888_v14  ;;  %3008 = vst.msk [vmem:[%s5077_s20 + $0x198] sm:$0xf] %vm2905_vm4, %v3952_v15  ;;  %v3889_v28 = vpack.c.bf16 %v2304_v16, %v2304_v16  ;;  %v519_v36 = vld [vmem:[#allocation2 + $0x368] sm:$0xff]  ;;  %v1786_v41 = vadd.f32 %v1407_v32, %v454_v18 }
 0x186   : > { %v2366_v23 = vmax.f32 %v2238_v11, 0.0  ;;  %v3953_v29 = vpack.c.bf16 %v2368_v17, %v2368_v17  ;;  %2942 = vst.msk [vmem:[%s5077_s20 + $0x90] sm:$0xf] %vm2905_vm4, %v3886_v20  ;;  %v1850_v42 = vadd.f32 %v1663_v33, %v518_v19  ;;  %v4098_v43 = vpop.f32.mrb[46].mxu0  ;;  %v4162_v44 = vpop.f32.mrb[46].mxu1  ;;  %v460_v5 = vld [vmem:[#allocation2 + $0x190] sm:$0xff] }
 0x187   : > { %3006 = vst.msk [vmem:[%s5077_s20 + $0x190] sm:$0xf] %vm2905_vm4, %v3950_v21  ;;  %v3887_v37 = vpack.c.bf16 %v2302_v22, %v2302_v22  ;;  %v2044_v39 = vld [vmem:[#allocation2 + $0x150] sm:$0xff]  ;;  %2945 = vst.msk [vmem:[%s5077_s20 + $0x9c] sm:$0xf] %vm2905_vm4, %v3889_v28  ;;  %v1789_v48 = vadd.f32 %v4098_v43, %v457_v26  ;;  %v1853_v49 = vadd.f32 %v4162_v44, %v521_v27  ;;  %v1410_v50 = vpop.f32.mrb[47].mxu0 }
 0x188   : > { %v3951_v38 = vpack.c.bf16 %v2366_v23, %v2366_v23  ;;  %v2108_v40 = vld [vmem:[#allocation2 + $0x350] sm:$0xff]  ;;  %3009 = vst.msk [vmem:[%s5077_s20 + $0x19c] sm:$0xf] %vm2905_vm4, %v3953_v29  ;;  %v2179_v45 = vadd.f32 %v5286_v1, %v2044_v39  ;;  %v1666_v51 = vpop.f32.mrb[47].mxu1  ;;  %v1787_v56 = vadd.f32 %v1410_v50, %v455_v34  ;;  %v458_v11 = vld [vmem:[#allocation2 + $0x180] sm:$0xff]  ;;  %v4101_v17 = vpop.f32.mrb[48].mxu0 }
 0x189   : > { %v2243_v35 = vadd.f32 %v5286_v1, %v2108_v40  ;;  %v2042_v46 = vld [vmem:[#allocation2 + $0x140] sm:$0xff]  ;;  %1917 = vst.msk [vmem:[#allocation2 + $0x170] sm:$0xff] %vm277_vm3, %v1788_v30  ;;  %1981 = vst.msk [vmem:[#allocation2 + $0x370] sm:$0xff] %vm277_vm3, %v1852_v31  ;;  %v1851_v57 = vadd.f32 %v1666_v51, %v519_v36  ;;  %v524_v6 = vld [vmem:[#allocation2 + $0x390] sm:$0xff]  ;;  %v4165_v18 = vpop.f32.mrb[48].mxu1  ;;  %v1792_v23 = vadd.f32 %v4101_v17, %v460_v5  ;;  %v1423_v25 = vpop.f32.mrb[49].mxu0 }
 0x18a   : > { %v2106_v47 = vld [vmem:[#allocation2 + $0x340] sm:$0xff]  ;;  %2943 = vst.msk [vmem:[%s5077_s20 + $0x94] sm:$0xf] %vm2905_vm4, %v3887_v37  ;;  %3007 = vst.msk [vmem:[%s5077_s20 + $0x194] sm:$0xf] %vm2905_vm4, %v3951_v38  ;;  %v2177_v52 = vadd.f32 %v5286_v1, %v2042_v46  ;;  %v2045_v54 = vld [vmem:[#allocation2 + $0x158] sm:$0xff]  ;;  %v1856_v24 = vadd.f32 %v4165_v18, %v524_v6  ;;  %v1790_v33 = vadd.f32 %v1423_v25, %v458_v11 }
 0x18b   : > { %v2241_v53 = vadd.f32 %v5286_v1, %v2106_v47  ;;  %v2109_v55 = vld [vmem:[#allocation2 + $0x358] sm:$0xff]  ;;  %1915 = vst.msk [vmem:[#allocation2 + $0x160] sm:$0xff] %vm277_vm3, %v1786_v41  ;;  %1979 = vst.msk [vmem:[#allocation2 + $0x360] sm:$0xff] %vm277_vm3, %v1850_v42  ;;  %v2307_v58 = vmax.f32 %v2179_v45, 0.0  ;;  %v2371_v59 = vmax.f32 %v2243_v35, 0.0  ;;  %v2180_v60 = vadd.f32 %v5286_v1, %v2045_v54  ;;  %v2043_v62 = vld [vmem:[#allocation2 + $0x148] sm:$0xff] }
 0x18c   : > { %v2244_v61 = vadd.f32 %v5286_v1, %v2109_v55  ;;  %v2107_v63 = vld [vmem:[#allocation2 + $0x348] sm:$0xff]  ;;  %1918 = vst.msk [vmem:[#allocation2 + $0x178] sm:$0xff] %vm277_vm3, %v1789_v48  ;;  %1982 = vst.msk [vmem:[#allocation2 + $0x378] sm:$0xff] %vm277_vm3, %v1853_v49  ;;  %v2305_v0 = vmax.f32 %v2177_v52, 0.0  ;;  %v2178_v3 = vadd.f32 %v5286_v1, %v2043_v62  ;;  %v522_v12 = vld [vmem:[#allocation2 + $0x380] sm:$0xff]  ;;  %v1679_v26 = vpop.f32.mrb[49].mxu1 }
 0x18d   : > { %v2369_v2 = vmax.f32 %v2241_v53, 0.0  ;;  %v2242_v4 = vadd.f32 %v5286_v1, %v2107_v63  ;;  %1916 = vst.msk [vmem:[#allocation2 + $0x168] sm:$0xff] %vm277_vm3, %v1787_v56  ;;  %1980 = vst.msk [vmem:[#allocation2 + $0x368] sm:$0xff] %vm277_vm3, %v1851_v57  ;;  %v3892_v7 = vpack.c.bf16 %v2307_v58, %v2307_v58  ;;  %v3956_v8 = vpack.c.bf16 %v2371_v59, %v2371_v59  ;;  %v461_v19 = vld [vmem:[#allocation2 + $0x198] sm:$0xff]  ;;  %v459_v27 = vld [vmem:[#allocation2 + $0x188] sm:$0xff]  ;;  %v4102_v36 = vpop.f32.mrb[50].mxu0 }
 0x18e   : > { %v2308_v9 = vmax.f32 %v2180_v60, 0.0  ;;  %v2372_v10 = vmax.f32 %v2244_v61, 0.0  ;;  %v3890_v13 = vpack.c.bf16 %v2305_v0, %v2305_v0  ;;  %v2306_v15 = vmax.f32 %v2178_v3, 0.0  ;;  %v525_v20 = vld [vmem:[#allocation2 + $0x398] sm:$0xff]  ;;  %v523_v28 = vld [vmem:[#allocation2 + $0x388] sm:$0xff]  ;;  %v4166_v37 = vpop.f32.mrb[50].mxu1 }
 0x18f   : > { %v3954_v14 = vpack.c.bf16 %v2369_v2, %v2369_v2  ;;  %v2370_v16 = vmax.f32 %v2242_v4, 0.0  ;;  %2948 = vst.msk [vmem:[%s5077_s20 + $0xa8] sm:$0xf] %vm2905_vm4, %v3892_v7  ;;  %3012 = vst.msk [vmem:[%s5077_s20 + $0x1a8] sm:$0xf] %vm2905_vm4, %v3956_v8  ;;  %v1854_v34 = vadd.f32 %v1679_v26, %v522_v12  ;;  %v1793_v42 = vadd.f32 %v4102_v36, %v461_v19  ;;  %v1426_v44 = vpop.f32.mrb[51].mxu0 }
 0x190   : > { %v3893_v21 = vpack.c.bf16 %v2308_v9, %v2308_v9  ;;  %v3957_v22 = vpack.c.bf16 %v2372_v10, %v2372_v10  ;;  %2946 = vst.msk [vmem:[%s5077_s20 + $0xa0] sm:$0xf] %vm2905_vm4, %v3890_v13  ;;  %v3891_v29 = vpack.c.bf16 %v2306_v15, %v2306_v15  ;;  %v2048_v31 = vld [vmem:[#allocation2 + $0x170] sm:$0xff]  ;;  %v1857_v43 = vadd.f32 %v4166_v37, %v525_v20  ;;  %v1682_v45 = vpop.f32.mrb[51].mxu1  ;;  %v462_v4 = vld [vmem:[#allocation2 + $0x1a0] sm:$0xff]  ;;  %v4105_v10 = vpop.f32.mrb[52].mxu0 }
 0x191   : > { %3010 = vst.msk [vmem:[%s5077_s20 + $0x1a0] sm:$0xf] %vm2905_vm4, %v3954_v14  ;;  %v3955_v30 = vpack.c.bf16 %v2370_v16, %v2370_v16  ;;  %v2112_v32 = vld [vmem:[#allocation2 + $0x370] sm:$0xff]  ;;  %v2183_v38 = vadd.f32 %v5286_v1, %v2048_v31  ;;  %v1791_v49 = vadd.f32 %v1426_v44, %v459_v27  ;;  %v1855_v50 = vadd.f32 %v1682_v45, %v523_v28  ;;  %v526_v5 = vld [vmem:[#allocation2 + $0x3a0] sm:$0xff]  ;;  %v4169_v11 = vpop.f32.mrb[52].mxu1  ;;  %v465_v12 = vld [vmem:[#allocation2 + $0x1b8] sm:$0xff] }
 0x192   : > { %2949 = vst.msk [vmem:[%s5077_s20 + $0xac] sm:$0xf] %vm2905_vm4, %v3893_v21  ;;  %3013 = vst.msk [vmem:[%s5077_s20 + $0x1ac] sm:$0xf] %vm2905_vm4, %v3957_v22  ;;  %v2247_v39 = vadd.f32 %v5286_v1, %v2112_v32  ;;  %v2046_v40 = vld [vmem:[#allocation2 + $0x160] sm:$0xff]  ;;  %v464_v61 = vld [vmem:[#allocation2 + $0x1b0] sm:$0xff] }
 0x193   : > { %v2110_v41 = vld [vmem:[#allocation2 + $0x360] sm:$0xff]  ;;  %1921 = vst.msk [vmem:[#allocation2 + $0x190] sm:$0xff] %vm277_vm3, %v1792_v23  ;;  %1985 = vst.msk [vmem:[#allocation2 + $0x390] sm:$0xff] %vm277_vm3, %v1856_v24  ;;  %v2181_v35 = vadd.f32 %v5286_v1, %v2046_v40  ;;  %v2049_v47 = vld [vmem:[#allocation2 + $0x178] sm:$0xff]  ;;  %v2311_v51 = vmax.f32 %v2183_v38, 0.0  ;;  %v1796_v16 = vadd.f32 %v4105_v10, %v464_v61  ;;  %v1439_v18 = vpop.f32.mrb[53].mxu0 }
 0x194   : > { %2947 = vst.msk [vmem:[%s5077_s20 + $0xa4] sm:$0xf] %vm2905_vm4, %v3891_v29  ;;  %3011 = vst.msk [vmem:[%s5077_s20 + $0x1a4] sm:$0xf] %vm2905_vm4, %v3955_v30  ;;  %v2245_v46 = vadd.f32 %v5286_v1, %v2110_v41  ;;  %v2113_v48 = vld [vmem:[#allocation2 + $0x378] sm:$0xff]  ;;  %v2375_v52 = vmax.f32 %v2247_v39, 0.0  ;;  %v2184_v53 = vadd.f32 %v5286_v1, %v2049_v47  ;;  %v1794_v26 = vadd.f32 %v1439_v18, %v462_v4 }
 0x195   : > { %1919 = vst.msk [vmem:[#allocation2 + $0x180] sm:$0xff] %vm277_vm3, %v1790_v33  ;;  %1983 = vst.msk [vmem:[#allocation2 + $0x380] sm:$0xff] %vm277_vm3, %v1854_v34  ;;  %v2248_v54 = vadd.f32 %v5286_v1, %v2113_v48  ;;  %v2047_v55 = vld [vmem:[#allocation2 + $0x168] sm:$0xff]  ;;  %v2309_v57 = vmax.f32 %v2181_v35, 0.0  ;;  %v528_v62 = vld [vmem:[#allocation2 + $0x3b0] sm:$0xff]  ;;  %v3896_v63 = vpack.c.bf16 %v2311_v51, %v2311_v51  ;;  %v1695_v19 = vpop.f32.mrb[53].mxu1 }
 0x196   : > { %v2111_v56 = vld [vmem:[#allocation2 + $0x368] sm:$0xff]  ;;  %1922 = vst.msk [vmem:[#allocation2 + $0x198] sm:$0xff] %vm277_vm3, %v1793_v42  ;;  %1986 = vst.msk [vmem:[#allocation2 + $0x398] sm:$0xff] %vm277_vm3, %v1857_v43  ;;  %v2373_v58 = vmax.f32 %v2245_v46, 0.0  ;;  %v2182_v59 = vadd.f32 %v5286_v1, %v2047_v55  ;;  %v3960_v0 = vpack.c.bf16 %v2375_v52, %v2375_v52  ;;  %v2312_v2 = vmax.f32 %v2184_v53, 0.0  ;;  %v529_v13 = vld [vmem:[#allocation2 + $0x3b8] sm:$0xff] }
 0x197   : > { %v2246_v60 = vadd.f32 %v5286_v1, %v2111_v56  ;;  %1920 = vst.msk [vmem:[#allocation2 + $0x188] sm:$0xff] %vm277_vm3, %v1791_v49  ;;  %1984 = vst.msk [vmem:[#allocation2 + $0x388] sm:$0xff] %vm277_vm3, %v1855_v50  ;;  %v2376_v3 = vmax.f32 %v2248_v54, 0.0  ;;  %v3894_v6 = vpack.c.bf16 %v2309_v57, %v2309_v57  ;;  %v1860_v17 = vadd.f32 %v4169_v11, %v528_v62  ;;  %v463_v20 = vld [vmem:[#allocation2 + $0x1a8] sm:$0xff]  ;;  %v4106_v28 = vpop.f32.mrb[54].mxu0  ;;  %v4170_v29 = vpop.f32.mrb[54].mxu1 }
 0x198   : > { %v3958_v7 = vpack.c.bf16 %v2373_v58, %v2373_v58  ;;  %v2310_v8 = vmax.f32 %v2182_v59, 0.0  ;;  %2952 = vst.msk [vmem:[%s5077_s20 + $0xb8] sm:$0xf] %vm2905_vm4, %v3896_v63  ;;  %3016 = vst.msk [vmem:[%s5077_s20 + $0x1b8] sm:$0xf] %vm2905_vm4, %v3960_v0  ;;  %v3897_v14 = vpack.c.bf16 %v2312_v2, %v2312_v2  ;;  %v527_v21 = vld [vmem:[#allocation2 + $0x3a8] sm:$0xff]  ;;  %v1858_v27 = vadd.f32 %v1695_v19, %v526_v5 }
 0x199   : > { %v2374_v9 = vmax.f32 %v2246_v60, 0.0  ;;  %v3961_v15 = vpack.c.bf16 %v2376_v3, %v2376_v3  ;;  %2950 = vst.msk [vmem:[%s5077_s20 + $0xb0] sm:$0xf] %vm2905_vm4, %v3894_v6  ;;  %v1797_v34 = vadd.f32 %v4106_v28, %v465_v12  ;;  %v1861_v36 = vadd.f32 %v4170_v29, %v529_v13  ;;  %v1442_v37 = vpop.f32.mrb[55].mxu0  ;;  %v1698_v38 = vpop.f32.mrb[55].mxu1  ;;  %v468_v54 = vld [vmem:[#allocation2 + $0x1d0] sm:$0xff] }
 0x19a   : > { %3014 = vst.msk [vmem:[%s5077_s20 + $0x1b0] sm:$0xf] %vm2905_vm4, %v3958_v7  ;;  %v3895_v22 = vpack.c.bf16 %v2310_v8, %v2310_v8  ;;  %v2052_v24 = vld [vmem:[#allocation2 + $0x190] sm:$0xff]  ;;  %2953 = vst.msk [vmem:[%s5077_s20 + $0xbc] sm:$0xf] %vm2905_vm4, %v3897_v14  ;;  %v1795_v43 = vadd.f32 %v1442_v37, %v463_v20  ;;  %v1859_v44 = vadd.f32 %v1698_v38, %v527_v21  ;;  %v466_v60 = vld [vmem:[#allocation2 + $0x1c0] sm:$0xff] }
 0x19b   : > { %v3959_v23 = vpack.c.bf16 %v2374_v9, %v2374_v9  ;;  %v2116_v25 = vld [vmem:[#allocation2 + $0x390] sm:$0xff]  ;;  %3017 = vst.msk [vmem:[%s5077_s20 + $0x1bc] sm:$0xf] %vm2905_vm4, %v3961_v15  ;;  %v2187_v30 = vadd.f32 %v5286_v1, %v2052_v24  ;;  %v530_v61 = vld [vmem:[#allocation2 + $0x3c0] sm:$0xff]  ;;  %v4109_v3 = vpop.f32.mrb[56].mxu0  ;;  %v4173_v4 = vpop.f32.mrb[56].mxu1 }
 0x19c   : > { %v2251_v31 = vadd.f32 %v5286_v1, %v2116_v25  ;;  %v2050_v32 = vld [vmem:[#allocation2 + $0x180] sm:$0xff]  ;;  %1925 = vst.msk [vmem:[#allocation2 + $0x1b0] sm:$0xff] %vm277_vm3, %v1796_v16  ;;  %1989 = vst.msk [vmem:[#allocation2 + $0x3b0] sm:$0xff] %vm277_vm3, %v1860_v17  ;;  %v532_v55 = vld [vmem:[#allocation2 + $0x3d0] sm:$0xff]  ;;  %v1800_v9 = vadd.f32 %v4109_v3, %v468_v54  ;;  %v1455_v11 = vpop.f32.mrb[57].mxu0  ;;  %v1711_v12 = vpop.f32.mrb[57].mxu1 }
 0x19d   : > { %v2114_v33 = vld [vmem:[#allocation2 + $0x380] sm:$0xff]  ;;  %2951 = vst.msk [vmem:[%s5077_s20 + $0xb4] sm:$0xf] %vm2905_vm4, %v3895_v22  ;;  %3015 = vst.msk [vmem:[%s5077_s20 + $0x1b4] sm:$0xf] %vm2905_vm4, %v3959_v23  ;;  %v2185_v39 = vadd.f32 %v5286_v1, %v2050_v32  ;;  %v2053_v41 = vld [vmem:[#allocation2 + $0x198] sm:$0xff]  ;;  %v1864_v10 = vadd.f32 %v4173_v4, %v532_v55  ;;  %v1798_v19 = vadd.f32 %v1455_v11, %v466_v60 }
 0x19e   : > { %v2249_v40 = vadd.f32 %v5286_v1, %v2114_v33  ;;  %v2117_v42 = vld [vmem:[#allocation2 + $0x398] sm:$0xff]  ;;  %1923 = vst.msk [vmem:[#allocation2 + $0x1a0] sm:$0xff] %vm277_vm3, %v1794_v26  ;;  %1987 = vst.msk [vmem:[#allocation2 + $0x3a0] sm:$0xff] %vm277_vm3, %v1858_v27  ;;  %v2315_v45 = vmax.f32 %v2187_v30, 0.0  ;;  %v2379_v35 = vmax.f32 %v2251_v31, 0.0  ;;  %v2188_v46 = vadd.f32 %v5286_v1, %v2053_v41  ;;  %v2051_v48 = vld [vmem:[#allocation2 + $0x188] sm:$0xff] }
 0x19f   : > { %v2252_v47 = vadd.f32 %v5286_v1, %v2117_v42  ;;  %v2115_v49 = vld [vmem:[#allocation2 + $0x388] sm:$0xff]  ;;  %1926 = vst.msk [vmem:[#allocation2 + $0x1b8] sm:$0xff] %vm277_vm3, %v1797_v34  ;;  %1990 = vst.msk [vmem:[#allocation2 + $0x3b8] sm:$0xff] %vm277_vm3, %v1861_v36  ;;  %v2313_v50 = vmax.f32 %v2185_v39, 0.0  ;;  %v2186_v52 = vadd.f32 %v5286_v1, %v2051_v48  ;;  %v469_v5 = vld [vmem:[#allocation2 + $0x1d8] sm:$0xff]  ;;  %v1862_v20 = vadd.f32 %v1711_v12, %v530_v61  ;;  %v4110_v21 = vpop.f32.mrb[58].mxu0 }
 0x1a0   : > { %v2377_v51 = vmax.f32 %v2249_v40, 0.0  ;;  %v2250_v53 = vadd.f32 %v5286_v1, %v2115_v49  ;;  %1924 = vst.msk [vmem:[#allocation2 + $0x1a8] sm:$0xff] %vm277_vm3, %v1795_v43  ;;  %1988 = vst.msk [vmem:[#allocation2 + $0x3a8] sm:$0xff] %vm277_vm3, %v1859_v44  ;;  %v3900_v56 = vpack.c.bf16 %v2315_v45, %v2315_v45  ;;  %v3964_v57 = vpack.c.bf16 %v2379_v35, %v2379_v35  ;;  %v533_v6 = vld [vmem:[#allocation2 + $0x3d8] sm:$0xff]  ;;  %v467_v13 = vld [vmem:[#allocation2 + $0x1c8] sm:$0xff]  ;;  %v4174_v22 = vpop.f32.mrb[58].mxu1 }
 0x1a1   : > { %v2316_v58 = vmax.f32 %v2188_v46, 0.0  ;;  %v2380_v59 = vmax.f32 %v2252_v47, 0.0  ;;  %v3898_v62 = vpack.c.bf16 %v2313_v50, %v2313_v50  ;;  %v2314_v0 = vmax.f32 %v2186_v52, 0.0  ;;  %v531_v14 = vld [vmem:[#allocation2 + $0x3c8] sm:$0xff]  ;;  %1929 = vst.msk [vmem:[#allocation2 + $0x1d0] sm:$0xff] %vm277_vm3, %v1800_v9  ;;  %1993 = vst.msk [vmem:[#allocation2 + $0x3d0] sm:$0xff] %vm277_vm3, %v1864_v10 }
 0x1a2   : > { %v3962_v63 = vpack.c.bf16 %v2377_v51, %v2377_v51  ;;  %v2378_v2 = vmax.f32 %v2250_v53, 0.0  ;;  %2956 = vst.msk [vmem:[%s5077_s20 + $0xc8] sm:$0xf] %vm2905_vm4, %v3900_v56  ;;  %3020 = vst.msk [vmem:[%s5077_s20 + $0x1c8] sm:$0xf] %vm2905_vm4, %v3964_v57  ;;  %v1801_v27 = vadd.f32 %v4110_v21, %v469_v5  ;;  %v1865_v28 = vadd.f32 %v4174_v22, %v533_v6  ;;  %v1458_v29 = vpop.f32.mrb[59].mxu0 }
 0x1a3   : > { %v3901_v7 = vpack.c.bf16 %v2316_v58, %v2316_v58  ;;  %v3965_v8 = vpack.c.bf16 %v2380_v59, %v2380_v59  ;;  %2954 = vst.msk [vmem:[%s5077_s20 + $0xc0] sm:$0xf] %vm2905_vm4, %v3898_v62  ;;  %v3899_v15 = vpack.c.bf16 %v2314_v0, %v2314_v0  ;;  %v2056_v17 = vld [vmem:[#allocation2 + $0x1b0] sm:$0xff]  ;;  %v1714_v30 = vpop.f32.mrb[59].mxu1  ;;  %v1799_v36 = vadd.f32 %v1458_v29, %v467_v13  ;;  %v470_v53 = vld [vmem:[#allocation2 + $0x1e0] sm:$0xff]  ;;  %v4113_v59 = vpop.f32.mrb[60].mxu0 }
 0x1a4   : > { %3018 = vst.msk [vmem:[%s5077_s20 + $0x1c0] sm:$0xf] %vm2905_vm4, %v3962_v63  ;;  %v3963_v16 = vpack.c.bf16 %v2378_v2, %v2378_v2  ;;  %v2120_v18 = vld [vmem:[#allocation2 + $0x3b0] sm:$0xff]  ;;  %v2191_v23 = vadd.f32 %v5286_v1, %v2056_v17  ;;  %v1863_v37 = vadd.f32 %v1714_v30, %v531_v14  ;;  %v534_v54 = vld [vmem:[#allocation2 + $0x3e0] sm:$0xff]  ;;  %v4177_v60 = vpop.f32.mrb[60].mxu1  ;;  %v473_v61 = vld [vmem:[#allocation2 + $0x1f8] sm:$0xff] }
 0x1a5   : > { %2957 = vst.msk [vmem:[%s5077_s20 + $0xcc] sm:$0xf] %vm2905_vm4, %v3901_v7  ;;  %3021 = vst.msk [vmem:[%s5077_s20 + $0x1cc] sm:$0xf] %vm2905_vm4, %v3965_v8  ;;  %v2255_v24 = vadd.f32 %v5286_v1, %v2120_v18  ;;  %v2054_v25 = vld [vmem:[#allocation2 + $0x1a0] sm:$0xff]  ;;  %v472_v47 = vld [vmem:[#allocation2 + $0x1f0] sm:$0xff] }
 0x1a6   : > { %v2118_v26 = vld [vmem:[#allocation2 + $0x3a0] sm:$0xff]  ;;  %2955 = vst.msk [vmem:[%s5077_s20 + $0xc4] sm:$0xf] %vm2905_vm4, %v3899_v15  ;;  %3019 = vst.msk [vmem:[%s5077_s20 + $0x1c4] sm:$0xf] %vm2905_vm4, %v3963_v16  ;;  %v2189_v31 = vadd.f32 %v5286_v1, %v2054_v25  ;;  %v2057_v33 = vld [vmem:[#allocation2 + $0x1b8] sm:$0xff]  ;;  %v1804_v2 = vadd.f32 %v4113_v59, %v472_v47 }
 0x1a7   : > { %v2253_v32 = vadd.f32 %v5286_v1, %v2118_v26  ;;  %v2121_v34 = vld [vmem:[#allocation2 + $0x3b8] sm:$0xff]  ;;  %1927 = vst.msk [vmem:[#allocation2 + $0x1c0] sm:$0xff] %vm277_vm3, %v1798_v19  ;;  %1991 = vst.msk [vmem:[#allocation2 + $0x3c0] sm:$0xff] %vm277_vm3, %v1862_v20  ;;  %v2319_v38 = vmax.f32 %v2191_v23, 0.0  ;;  %v2383_v39 = vmax.f32 %v2255_v24, 0.0  ;;  %v2192_v40 = vadd.f32 %v5286_v1, %v2057_v33  ;;  %v2055_v42 = vld [vmem:[#allocation2 + $0x1a8] sm:$0xff] }
 0x1a8   : > { %v2256_v41 = vadd.f32 %v5286_v1, %v2121_v34  ;;  %v2119_v43 = vld [vmem:[#allocation2 + $0x3a8] sm:$0xff]  ;;  %1930 = vst.msk [vmem:[#allocation2 + $0x1d8] sm:$0xff] %vm277_vm3, %v1801_v27  ;;  %1994 = vst.msk [vmem:[#allocation2 + $0x3d8] sm:$0xff] %vm277_vm3, %v1865_v28  ;;  %v2317_v44 = vmax.f32 %v2189_v31, 0.0  ;;  %v2190_v35 = vadd.f32 %v5286_v1, %v2055_v42  ;;  %v536_v48 = vld [vmem:[#allocation2 + $0x3f0] sm:$0xff]  ;;  %v1471_v4 = vpop.f32.mrb[61].mxu0 }
 0x1a9   : > { %v2381_v45 = vmax.f32 %v2253_v32, 0.0  ;;  %v2254_v46 = vadd.f32 %v5286_v1, %v2119_v43  ;;  %1928 = vst.msk [vmem:[#allocation2 + $0x1c8] sm:$0xff] %vm277_vm3, %v1799_v36  ;;  %1992 = vst.msk [vmem:[#allocation2 + $0x3c8] sm:$0xff] %vm277_vm3, %v1863_v37  ;;  %v3904_v49 = vpack.c.bf16 %v2319_v38, %v2319_v38  ;;  %v3968_v50 = vpack.c.bf16 %v2383_v39, %v2383_v39  ;;  %v537_v62 = vld [vmem:[#allocation2 + $0x3f8] sm:$0xff]  ;;  %v1727_v5 = vpop.f32.mrb[61].mxu1  ;;  %v471_v6 = vld [vmem:[#allocation2 + $0x1e8] sm:$0xff] }
 0x1aa   : > { %v2320_v51 = vmax.f32 %v2192_v40, 0.0  ;;  %v2384_v52 = vmax.f32 %v2256_v41, 0.0  ;;  %v3902_v55 = vpack.c.bf16 %v2317_v44, %v2317_v44  ;;  %v2318_v57 = vmax.f32 %v2190_v35, 0.0  ;;  %v535_v7 = vld [vmem:[#allocation2 + $0x3e8] sm:$0xff]  ;;  %v2060_v10 = vld [vmem:[#allocation2 + $0x1d0] sm:$0xff]  ;;  %v4114_v14 = vpop.f32.mrb[62].mxu0 }
 0x1ab   : > { %v3966_v56 = vpack.c.bf16 %v2381_v45, %v2381_v45  ;;  %v2382_v58 = vmax.f32 %v2254_v46, 0.0  ;;  %2960 = vst.msk [vmem:[%s5077_s20 + $0xd8] sm:$0xf] %vm2905_vm4, %v3904_v49  ;;  %3024 = vst.msk [vmem:[%s5077_s20 + $0x1d8] sm:$0xf] %vm2905_vm4, %v3968_v50  ;;  %v1868_v3 = vadd.f32 %v4177_v60, %v536_v48  ;;  %v2124_v11 = vld [vmem:[#allocation2 + $0x3d0] sm:$0xff]  ;;  %v1802_v12 = vadd.f32 %v1471_v4, %v470_v53 }
 0x1ac   : > { %v3905_v63 = vpack.c.bf16 %v2320_v51, %v2320_v51  ;;  %v3969_v0 = vpack.c.bf16 %v2384_v52, %v2384_v52  ;;  %2958 = vst.msk [vmem:[%s5077_s20 + $0xd0] sm:$0xf] %vm2905_vm4, %v3902_v55  ;;  %v3903_v8 = vpack.c.bf16 %v2318_v57, %v2318_v57  ;;  %v1866_v13 = vadd.f32 %v1727_v5, %v534_v54  ;;  %v4178_v15 = vpop.f32.mrb[62].mxu1  ;;  %v1474_v22 = vpop.f32.mrb[63].mxu0  ;;  %v4367_v24 = vld [vmem:[%s5770_s2] ss:$0 sm:$0xff] }
 0x1ad   : > { %3022 = vst.msk [vmem:[%s5077_s20 + $0x1d0] sm:$0xf] %vm2905_vm4, %v3966_v56  ;;  %v3967_v9 = vpack.c.bf16 %v2382_v58, %v2382_v58  ;;  %v2195_v16 = vadd.f32 %v5286_v1, %v2060_v10  ;;  %v2259_v17 = vadd.f32 %v5286_v1, %v2124_v11  ;;  %v1805_v20 = vadd.f32 %v4114_v14, %v473_v61  ;;  %v1730_v23 = vpop.f32.mrb[63].mxu1 }
 0x1ae   : > { %2961 = vst.msk [vmem:[%s5077_s20 + $0xdc] sm:$0xf] %vm2905_vm4, %v3905_v63  ;;  %3025 = vst.msk [vmem:[%s5077_s20 + $0x1dc] sm:$0xf] %vm2905_vm4, %v3969_v0  ;;  %v2058_v18 = vld [vmem:[#allocation2 + $0x1c0] sm:$0xff]  ;;  %v1869_v21 = vadd.f32 %v4178_v15, %v537_v62  ;;  %v1803_v28 = vadd.f32 %v1474_v22, %v471_v6  ;;  %v1867_v29 = vadd.f32 %v1730_v23, %v535_v7 }
 0x1af   : > { %v2122_v19 = vld [vmem:[#allocation2 + $0x3c0] sm:$0xff]  ;;  %1933 = vst.msk [vmem:[#allocation2 + $0x1f0] sm:$0xff] %vm277_vm3, %v1804_v2  ;;  %1997 = vst.msk [vmem:[#allocation2 + $0x3f0] sm:$0xff] %vm277_vm3, %v1868_v3  ;;  %v2193_v25 = vadd.f32 %v4367_v24, %v2058_v18  ;;  %v2061_v26 = vld [vmem:[#allocation2 + $0x1d8] sm:$0xff]  ;;  %v2323_v30 = vmax.f32 %v2195_v16, 0.0  ;;  %v2387_v31 = vmax.f32 %v2259_v17, 0.0 }
 0x1b0   : > { %2959 = vst.msk [vmem:[%s5077_s20 + $0xd4] sm:$0xf] %vm2905_vm4, %v3903_v8  ;;  %3023 = vst.msk [vmem:[%s5077_s20 + $0x1d4] sm:$0xf] %vm2905_vm4, %v3967_v9  ;;  %v2257_v1 = vadd.f32 %v4367_v24, %v2122_v19  ;;  %v2125_v27 = vld [vmem:[#allocation2 + $0x3d8] sm:$0xff]  ;;  %v2196_v32 = vadd.f32 %v4367_v24, %v2061_v26  ;;  %v2059_v34 = vld [vmem:[#allocation2 + $0x1c8] sm:$0xff] }
 0x1b1   : > { %1931 = vst.msk [vmem:[#allocation2 + $0x1e0] sm:$0xff] %vm277_vm3, %v1802_v12  ;;  %1995 = vst.msk [vmem:[#allocation2 + $0x3e0] sm:$0xff] %vm277_vm3, %v1866_v13  ;;  %v2260_v33 = vadd.f32 %v4367_v24, %v2125_v27  ;;  %v2123_v36 = vld [vmem:[#allocation2 + $0x3c8] sm:$0xff]  ;;  %v2321_v37 = vmax.f32 %v2193_v25, 0.0  ;;  %v2194_v39 = vadd.f32 %v4367_v24, %v2059_v34  ;;  %v3908_v41 = vpack.c.bf16 %v2323_v30, %v2323_v30 }
 0x1b2   : > { %1934 = vst.msk [vmem:[#allocation2 + $0x1f8] sm:$0xff] %vm277_vm3, %v1805_v20  ;;  %1998 = vst.msk [vmem:[#allocation2 + $0x3f8] sm:$0xff] %vm277_vm3, %v1869_v21  ;;  %v2385_v38 = vmax.f32 %v2257_v1, 0.0  ;;  %v2258_v40 = vadd.f32 %v4367_v24, %v2123_v36  ;;  %v3972_v42 = vpack.c.bf16 %v2387_v31, %v2387_v31  ;;  %v2324_v43 = vmax.f32 %v2196_v32, 0.0 }
 0x1b3   : > { %1932 = vst.msk [vmem:[#allocation2 + $0x1e8] sm:$0xff] %vm277_vm3, %v1803_v28  ;;  %1996 = vst.msk [vmem:[#allocation2 + $0x3e8] sm:$0xff] %vm277_vm3, %v1867_v29  ;;  %v2388_v44 = vmax.f32 %v2260_v33, 0.0  ;;  %v3906_v45 = vpack.c.bf16 %v2321_v37, %v2321_v37  ;;  %v2322_v46 = vmax.f32 %v2194_v39, 0.0 }
 0x1b4   : > { %v3970_v35 = vpack.c.bf16 %v2385_v38, %v2385_v38  ;;  %v2386_v47 = vmax.f32 %v2258_v40, 0.0  ;;  %2964 = vst.msk [vmem:[%s5077_s20 + $0xe8] sm:$0xf] %vm2905_vm4, %v3908_v41  ;;  %3028 = vst.msk [vmem:[%s5077_s20 + $0x1e8] sm:$0xf] %vm2905_vm4, %v3972_v42  ;;  %v3909_v48 = vpack.c.bf16 %v2324_v43, %v2324_v43 }
 0x1b5   : > { %v3973_v49 = vpack.c.bf16 %v2388_v44, %v2388_v44  ;;  %2962 = vst.msk [vmem:[%s5077_s20 + $0xe0] sm:$0xf] %vm2905_vm4, %v3906_v45  ;;  %v3907_v50 = vpack.c.bf16 %v2322_v46, %v2322_v46 }
 0x1b6   : > { %3026 = vst.msk [vmem:[%s5077_s20 + $0x1e0] sm:$0xf] %vm2905_vm4, %v3970_v35  ;;  %v3971_v51 = vpack.c.bf16 %v2386_v47, %v2386_v47  ;;  %v2064_v52 = vld [vmem:[#allocation2 + $0x1f0] sm:$0xff]  ;;  %2965 = vst.msk [vmem:[%s5077_s20 + $0xec] sm:$0xf] %vm2905_vm4, %v3909_v48 }
 0x1b7   : > { %v2128_v53 = vld [vmem:[#allocation2 + $0x3f0] sm:$0xff]  ;;  %3029 = vst.msk [vmem:[%s5077_s20 + $0x1ec] sm:$0xf] %vm2905_vm4, %v3973_v49  ;;  %v2199_v54 = vadd.f32 %v4367_v24, %v2064_v52  ;;  %2963 = vst.msk [vmem:[%s5077_s20 + $0xe4] sm:$0xf] %vm2905_vm4, %v3907_v50 }
 0x1b8   : > { %v2263_v55 = vadd.f32 %v4367_v24, %v2128_v53  ;;  %v2062_v56 = vld [vmem:[#allocation2 + $0x1e0] sm:$0xff]  ;;  %3027 = vst.msk [vmem:[%s5077_s20 + $0x1e4] sm:$0xf] %vm2905_vm4, %v3971_v51 }
 0x1b9   : > { %v2126_v57 = vld [vmem:[#allocation2 + $0x3e0] sm:$0xff]  ;;  %v2197_v58 = vadd.f32 %v4367_v24, %v2062_v56  ;;  %v2065_v60 = vld [vmem:[#allocation2 + $0x1f8] sm:$0xff]  ;;  %v2327_v62 = vmax.f32 %v2199_v54, 0.0 }
 0x1ba   : > { %v2261_v59 = vadd.f32 %v4367_v24, %v2126_v57  ;;  %v2129_v61 = vld [vmem:[#allocation2 + $0x3f8] sm:$0xff]  ;;  %v2391_v63 = vmax.f32 %v2263_v55, 0.0  ;;  %v2200_v0 = vadd.f32 %v4367_v24, %v2065_v60  ;;  %v2063_v3 = vld [vmem:[#allocation2 + $0x1e8] sm:$0xff] }
 0x1bb   : > { %v2264_v2 = vadd.f32 %v4367_v24, %v2129_v61  ;;  %v2127_v4 = vld [vmem:[#allocation2 + $0x3e8] sm:$0xff]  ;;  %v2325_v5 = vmax.f32 %v2197_v58, 0.0  ;;  %v2198_v7 = vadd.f32 %v4367_v24, %v2063_v3  ;;  %v3912_v9 = vpack.c.bf16 %v2327_v62, %v2327_v62 }
 0x1bc   : > { %v2389_v6 = vmax.f32 %v2261_v59, 0.0  ;;  %v2262_v8 = vadd.f32 %v4367_v24, %v2127_v4  ;;  %v3976_v10 = vpack.c.bf16 %v2391_v63, %v2391_v63  ;;  %v2328_v11 = vmax.f32 %v2200_v0, 0.0  ;;  %3040 = sbr.rel (!%p4583_p9) target bundleno = 542 (0x21e), region = 48 }
 0x1bd   : > { %v2392_v12 = vmax.f32 %v2264_v2, 0.0  ;;  %v3910_v13 = vpack.c.bf16 %v2325_v5, %v2325_v5  ;;  %v2326_v15 = vmax.f32 %v2198_v7, 0.0  ;;  %2968 = vst.msk [vmem:[%s5077_s20 + $0xf8] sm:$0xf] %vm2905_vm4, %v3912_v9 }
 0x1be   : > { %v3974_v14 = vpack.c.bf16 %v2389_v6, %v2389_v6  ;;  %v2390_v16 = vmax.f32 %v2262_v8, 0.0  ;;  %3032 = vst.msk [vmem:[%s5077_s20 + $0x1f8] sm:$0xf] %vm2905_vm4, %v3976_v10  ;;  %v3913_v17 = vpack.c.bf16 %v2328_v11, %v2328_v11 }
 0x1bf   : > { %v3977_v18 = vpack.c.bf16 %v2392_v12, %v2392_v12  ;;  %2966 = vst.msk [vmem:[%s5077_s20 + $0xf0] sm:$0xf] %vm2905_vm4, %v3910_v13  ;;  %v3911_v19 = vpack.c.bf16 %v2326_v15, %v2326_v15 }
 0x1c0   : > { %3030 = vst.msk [vmem:[%s5077_s20 + $0x1f0] sm:$0xf] %vm2905_vm4, %v3974_v14  ;;  %v3975_v20 = vpack.c.bf16 %v2390_v16, %v2390_v16  ;;  %2969 = vst.msk [vmem:[%s5077_s20 + $0xfc] sm:$0xf] %vm2905_vm4, %v3913_v17 }
 0x1c1   : > { %3033 = vst.msk [vmem:[%s5077_s20 + $0x1fc] sm:$0xf] %vm2905_vm4, %v3977_v18  ;;  %2967 = vst.msk [vmem:[%s5077_s20 + $0xf4] sm:$0xf] %vm2905_vm4, %v3911_v19 }
 0x1c2   : > { %3031 = vst.msk [vmem:[%s5077_s20 + $0x1f4] sm:$0xf] %vm2905_vm4, %v3975_v20 }
 0x1c3   : > { %s5787_s5 = smov (!%p3043_p8, %s3042_s5), 128 }
 0x1c4   : > { %s3834_s11 = sshll.u32 %s5787_s5, 6 }
 0x1c5   : > { %p3837_p12 = scmp.eq.s32.totalorder %s3834_s11, 0 }
 0x1c6   : > { %s5574_s24 = sshrl.u32 (!%p3837_p12), %s5787_s5, 6 }
 0x1c7   : > { %3052 = sbr.rel (%p3837_p12) target bundleno = 542 (0x21e), region = 52  ;;  %p3838_p9 = scmp.le.s32.totalorder (!%p3837_p12), %s5574_s24, 0 }
 0x1ce   : > { %3481 = sbr.rel (%p3838_p9) target bundleno = 521 (0x209), region = 136  ;;  %s5774_s15 = smov (!%p3838_p9), %s5568_s8 }
 0x1cf   : > { %s5775_s12 = smov (!%p3838_p9), %s5077_s20  ;;  %s5583_s29 = smov (!%p3838_p9), 0  }
 0x1d0   : > { %s5585_s4 = smov (!%p3838_p9), 0  }
 0x1d5 LB: >> { %v3068_v21 = vld [vmem:[%s4486_s12] sm:$0xf]  ;;  %v3070_v22 = vld [vmem:[%s4486_s12 + $0x4] sm:$0xf]  ;;  %v3072_v23 = vld [vmem:[%s4486_s12 + $0x8] sm:$0xf]  ;;  %s4494_s4 = sphi %s5585_s4, %s3062_s4   ;;  %s4490_s29 = sphi %s5583_s29, %s5776_s29   ;;  %s4486_s12 = sphi %s5775_s12, %s3201_s12   ;;  %s4482_s15 = sphi %s5774_s15, %s3202_s15  }
 0x1d6   : >> { %3069 = vst [vmem:[%s4482_s15] sm:$0xf] %v3068_v21  ;;  %3071 = vst [vmem:[%s4482_s15 + $0x4] sm:$0xf] %v3070_v22  ;;  %v3074_v24 = vld [vmem:[%s4486_s12 + $0xc] sm:$0xf]  ;;  %s3196_s9 = sadd.s32 1, %s4490_s29 }
 0x1d7   : >> { %3073 = vst [vmem:[%s4482_s15 + $0x8] sm:$0xf] %v3072_v23  ;;  %v3076_v25 = vld [vmem:[%s4486_s12 + $0x10] sm:$0xf]  ;;  %v3078_v1 = vld [vmem:[%s4486_s12 + $0x14] sm:$0xf]  ;;  %p3197_p7 = scmp.ge.s32.totalorder %s3196_s9, %s5574_s24 }
 0x1d8   : >> { %3075 = vst [vmem:[%s4482_s15 + $0xc] sm:$0xf] %v3074_v24  ;;  %3077 = vst [vmem:[%s4482_s15 + $0x10] sm:$0xf] %v3076_v25  ;;  %v3080_v26 = vld [vmem:[%s4486_s12 + $0x18] sm:$0xf] }
 0x1d9   : >> { %3079 = vst [vmem:[%s4482_s15 + $0x14] sm:$0xf] %v3078_v1  ;;  %v3082_v27 = vld [vmem:[%s4486_s12 + $0x1c] sm:$0xf]  ;;  %v3084_v28 = vld [vmem:[%s4486_s12 + $0x20] sm:$0xf] }
 0x1da   : >> { %3081 = vst [vmem:[%s4482_s15 + $0x18] sm:$0xf] %v3080_v26  ;;  %3083 = vst [vmem:[%s4482_s15 + $0x1c] sm:$0xf] %v3082_v27  ;;  %v3086_v29 = vld [vmem:[%s4486_s12 + $0x24] sm:$0xf] }
 0x1db   : >> { %3085 = vst [vmem:[%s4482_s15 + $0x20] sm:$0xf] %v3084_v28  ;;  %v3088_v30 = vld [vmem:[%s4486_s12 + $0x28] sm:$0xf]  ;;  %v3090_v31 = vld [vmem:[%s4486_s12 + $0x2c] sm:$0xf] }
 0x1dc   : >> { %3087 = vst [vmem:[%s4482_s15 + $0x24] sm:$0xf] %v3086_v29  ;;  %3089 = vst [vmem:[%s4482_s15 + $0x28] sm:$0xf] %v3088_v30  ;;  %v3092_v32 = vld [vmem:[%s4486_s12 + $0x30] sm:$0xf] }
 0x1dd   : >> { %3091 = vst [vmem:[%s4482_s15 + $0x2c] sm:$0xf] %v3090_v31  ;;  %v3094_v33 = vld [vmem:[%s4486_s12 + $0x34] sm:$0xf]  ;;  %v3096_v34 = vld [vmem:[%s4486_s12 + $0x38] sm:$0xf] }
 0x1de   : >> { %3093 = vst [vmem:[%s4482_s15 + $0x30] sm:$0xf] %v3092_v32  ;;  %3095 = vst [vmem:[%s4482_s15 + $0x34] sm:$0xf] %v3094_v33  ;;  %v3098_v36 = vld [vmem:[%s4486_s12 + $0x3c] sm:$0xf] }
 0x1df   : >> { %3097 = vst [vmem:[%s4482_s15 + $0x38] sm:$0xf] %v3096_v34  ;;  %v3100_v37 = vld [vmem:[%s4486_s12 + $0x40] sm:$0xf]  ;;  %v3102_v38 = vld [vmem:[%s4486_s12 + $0x44] sm:$0xf] }
 0x1e0   : >> { %3099 = vst [vmem:[%s4482_s15 + $0x3c] sm:$0xf] %v3098_v36  ;;  %3101 = vst [vmem:[%s4482_s15 + $0x40] sm:$0xf] %v3100_v37  ;;  %v3104_v39 = vld [vmem:[%s4486_s12 + $0x48] sm:$0xf] }
 0x1e1   : >> { %3103 = vst [vmem:[%s4482_s15 + $0x44] sm:$0xf] %v3102_v38  ;;  %v3106_v40 = vld [vmem:[%s4486_s12 + $0x4c] sm:$0xf]  ;;  %v3108_v41 = vld [vmem:[%s4486_s12 + $0x50] sm:$0xf] }
 0x1e2   : >> { %3105 = vst [vmem:[%s4482_s15 + $0x48] sm:$0xf] %v3104_v39  ;;  %3107 = vst [vmem:[%s4482_s15 + $0x4c] sm:$0xf] %v3106_v40  ;;  %v3110_v42 = vld [vmem:[%s4486_s12 + $0x54] sm:$0xf] }
 0x1e3   : >> { %3109 = vst [vmem:[%s4482_s15 + $0x50] sm:$0xf] %v3108_v41  ;;  %v3112_v43 = vld [vmem:[%s4486_s12 + $0x58] sm:$0xf]  ;;  %v3114_v44 = vld [vmem:[%s4486_s12 + $0x5c] sm:$0xf] }
 0x1e4   : >> { %3111 = vst [vmem:[%s4482_s15 + $0x54] sm:$0xf] %v3110_v42  ;;  %3113 = vst [vmem:[%s4482_s15 + $0x58] sm:$0xf] %v3112_v43  ;;  %v3116_v45 = vld [vmem:[%s4486_s12 + $0x60] sm:$0xf] }
 0x1e5   : >> { %3115 = vst [vmem:[%s4482_s15 + $0x5c] sm:$0xf] %v3114_v44  ;;  %v3118_v35 = vld [vmem:[%s4486_s12 + $0x64] sm:$0xf]  ;;  %v3120_v46 = vld [vmem:[%s4486_s12 + $0x68] sm:$0xf] }
 0x1e6   : >> { %3117 = vst [vmem:[%s4482_s15 + $0x60] sm:$0xf] %v3116_v45  ;;  %3119 = vst [vmem:[%s4482_s15 + $0x64] sm:$0xf] %v3118_v35  ;;  %v3122_v47 = vld [vmem:[%s4486_s12 + $0x6c] sm:$0xf] }
 0x1e7   : >> { %3121 = vst [vmem:[%s4482_s15 + $0x68] sm:$0xf] %v3120_v46  ;;  %v3124_v48 = vld [vmem:[%s4486_s12 + $0x70] sm:$0xf]  ;;  %v3126_v49 = vld [vmem:[%s4486_s12 + $0x74] sm:$0xf] }
 0x1e8   : >> { %3123 = vst [vmem:[%s4482_s15 + $0x6c] sm:$0xf] %v3122_v47  ;;  %3125 = vst [vmem:[%s4482_s15 + $0x70] sm:$0xf] %v3124_v48  ;;  %v3128_v50 = vld [vmem:[%s4486_s12 + $0x78] sm:$0xf] }
 0x1e9   : >> { %3127 = vst [vmem:[%s4482_s15 + $0x74] sm:$0xf] %v3126_v49  ;;  %v3130_v51 = vld [vmem:[%s4486_s12 + $0x7c] sm:$0xf]  ;;  %v3132_v52 = vld [vmem:[%s4486_s12 + $0x80] sm:$0xf] }
 0x1ea   : >> { %3129 = vst [vmem:[%s4482_s15 + $0x78] sm:$0xf] %v3128_v50  ;;  %3131 = vst [vmem:[%s4482_s15 + $0x7c] sm:$0xf] %v3130_v51  ;;  %v3134_v53 = vld [vmem:[%s4486_s12 + $0x84] sm:$0xf] }
 0x1eb   : >> { %3133 = vst [vmem:[%s4482_s15 + $0x80] sm:$0xf] %v3132_v52  ;;  %v3136_v54 = vld [vmem:[%s4486_s12 + $0x88] sm:$0xf]  ;;  %v3138_v55 = vld [vmem:[%s4486_s12 + $0x8c] sm:$0xf] }
 0x1ec   : >> { %3135 = vst [vmem:[%s4482_s15 + $0x84] sm:$0xf] %v3134_v53  ;;  %3137 = vst [vmem:[%s4482_s15 + $0x88] sm:$0xf] %v3136_v54  ;;  %v3140_v56 = vld [vmem:[%s4486_s12 + $0x90] sm:$0xf] }
 0x1ed   : >> { %3139 = vst [vmem:[%s4482_s15 + $0x8c] sm:$0xf] %v3138_v55  ;;  %v3142_v57 = vld [vmem:[%s4486_s12 + $0x94] sm:$0xf]  ;;  %v3144_v58 = vld [vmem:[%s4486_s12 + $0x98] sm:$0xf] }
 0x1ee   : >> { %3141 = vst [vmem:[%s4482_s15 + $0x90] sm:$0xf] %v3140_v56  ;;  %3143 = vst [vmem:[%s4482_s15 + $0x94] sm:$0xf] %v3142_v57  ;;  %v3146_v59 = vld [vmem:[%s4486_s12 + $0x9c] sm:$0xf] }
 0x1ef   : >> { %3145 = vst [vmem:[%s4482_s15 + $0x98] sm:$0xf] %v3144_v58  ;;  %v3148_v60 = vld [vmem:[%s4486_s12 + $0xa0] sm:$0xf]  ;;  %v3150_v61 = vld [vmem:[%s4486_s12 + $0xa4] sm:$0xf] }
 0x1f0   : >> { %3147 = vst [vmem:[%s4482_s15 + $0x9c] sm:$0xf] %v3146_v59  ;;  %3149 = vst [vmem:[%s4482_s15 + $0xa0] sm:$0xf] %v3148_v60  ;;  %v3152_v62 = vld [vmem:[%s4486_s12 + $0xa8] sm:$0xf] }
 0x1f1   : >> { %3151 = vst [vmem:[%s4482_s15 + $0xa4] sm:$0xf] %v3150_v61  ;;  %v3154_v63 = vld [vmem:[%s4486_s12 + $0xac] sm:$0xf]  ;;  %v3156_v0 = vld [vmem:[%s4486_s12 + $0xb0] sm:$0xf] }
 0x1f2   : >> { %3153 = vst [vmem:[%s4482_s15 + $0xa8] sm:$0xf] %v3152_v62  ;;  %3155 = vst [vmem:[%s4482_s15 + $0xac] sm:$0xf] %v3154_v63  ;;  %v3158_v2 = vld [vmem:[%s4486_s12 + $0xb4] sm:$0xf] }
 0x1f3   : >> { %3157 = vst [vmem:[%s4482_s15 + $0xb0] sm:$0xf] %v3156_v0  ;;  %v3160_v3 = vld [vmem:[%s4486_s12 + $0xb8] sm:$0xf]  ;;  %v3162_v4 = vld [vmem:[%s4486_s12 + $0xbc] sm:$0xf] }
 0x1f4   : >> { %3159 = vst [vmem:[%s4482_s15 + $0xb4] sm:$0xf] %v3158_v2  ;;  %3161 = vst [vmem:[%s4482_s15 + $0xb8] sm:$0xf] %v3160_v3  ;;  %v3164_v5 = vld [vmem:[%s4486_s12 + $0xc0] sm:$0xf] }
 0x1f5   : >> { %3163 = vst [vmem:[%s4482_s15 + $0xbc] sm:$0xf] %v3162_v4  ;;  %v3166_v6 = vld [vmem:[%s4486_s12 + $0xc4] sm:$0xf]  ;;  %v3168_v7 = vld [vmem:[%s4486_s12 + $0xc8] sm:$0xf] }
 0x1f6   : >> { %3165 = vst [vmem:[%s4482_s15 + $0xc0] sm:$0xf] %v3164_v5  ;;  %3167 = vst [vmem:[%s4482_s15 + $0xc4] sm:$0xf] %v3166_v6  ;;  %v3170_v8 = vld [vmem:[%s4486_s12 + $0xcc] sm:$0xf] }
 0x1f7   : >> { %3169 = vst [vmem:[%s4482_s15 + $0xc8] sm:$0xf] %v3168_v7  ;;  %v3172_v9 = vld [vmem:[%s4486_s12 + $0xd0] sm:$0xf]  ;;  %v3174_v10 = vld [vmem:[%s4486_s12 + $0xd4] sm:$0xf] }
 0x1f8   : >> { %3171 = vst [vmem:[%s4482_s15 + $0xcc] sm:$0xf] %v3170_v8  ;;  %3173 = vst [vmem:[%s4482_s15 + $0xd0] sm:$0xf] %v3172_v9  ;;  %v3176_v11 = vld [vmem:[%s4486_s12 + $0xd8] sm:$0xf] }
 0x1f9   : >> { %3175 = vst [vmem:[%s4482_s15 + $0xd4] sm:$0xf] %v3174_v10  ;;  %v3178_v12 = vld [vmem:[%s4486_s12 + $0xdc] sm:$0xf]  ;;  %v3180_v13 = vld [vmem:[%s4486_s12 + $0xe0] sm:$0xf] }
 0x1fa   : >> { %3177 = vst [vmem:[%s4482_s15 + $0xd8] sm:$0xf] %v3176_v11  ;;  %3179 = vst [vmem:[%s4482_s15 + $0xdc] sm:$0xf] %v3178_v12  ;;  %v3182_v14 = vld [vmem:[%s4486_s12 + $0xe4] sm:$0xf] }
 0x1fb   : >> { %3181 = vst [vmem:[%s4482_s15 + $0xe0] sm:$0xf] %v3180_v13  ;;  %v3184_v15 = vld [vmem:[%s4486_s12 + $0xe8] sm:$0xf]  ;;  %v3186_v16 = vld [vmem:[%s4486_s12 + $0xec] sm:$0xf] }
 0x1fc   : >> { %3183 = vst [vmem:[%s4482_s15 + $0xe4] sm:$0xf] %v3182_v14  ;;  %3185 = vst [vmem:[%s4482_s15 + $0xe8] sm:$0xf] %v3184_v15  ;;  %v3188_v17 = vld [vmem:[%s4486_s12 + $0xf0] sm:$0xf] }
 0x1fd   : >> { %3187 = vst [vmem:[%s4482_s15 + $0xec] sm:$0xf] %v3186_v16  ;;  %v3190_v18 = vld [vmem:[%s4486_s12 + $0xf4] sm:$0xf]  ;;  %v3192_v19 = vld [vmem:[%s4486_s12 + $0xf8] sm:$0xf] }
 0x1fe   : >> { %3189 = vst [vmem:[%s4482_s15 + $0xf0] sm:$0xf] %v3188_v17  ;;  %3191 = vst [vmem:[%s4482_s15 + $0xf4] sm:$0xf] %v3190_v18  ;;  %v3194_v20 = vld [vmem:[%s4486_s12 + $0xfc] sm:$0xf] }
 0x1ff   : >> { %3193 = vst [vmem:[%s4482_s15 + $0xf8] sm:$0xf] %v3192_v19  ;;  %3195 = vst [vmem:[%s4482_s15 + $0xfc] sm:$0xf] %v3194_v20  ;;  %s5789_s9 = smov (%p3197_p7, %s3196_s9), 0  ;;  %s3062_s4 = sadd.s32 1, %s4494_s4  }
 0x200   : >> { %s3839_s10 = sshll.u32 %s5789_s9, 8  ;;  %p3061_p10 = scmp.ge.s32.totalorder %s3062_s4, %s5574_s24 }
 0x201   : >> { %s3201_s12 = scalar_lea.vmem %s5077_s20, %s3839_s10 [#allocation5]   ;;  %s3202_s15 = scalar_lea.vmem %s5568_s8, %s3839_s10  }
 0x202   : >> { %s5776_s29 = smov %s5789_s9  ;;  %3064 = sbr.rel (!%p3061_p10) target bundleno = 469 (0x1d5), region = 142 }
 0x209 PF: > { %s5742_s22 = sand.u32 63, %s5787_s5   ;;  %s3979_s18 = sshll.u32 %s5574_s24, 8 }
 0x20a   : > { %s3207_s21 = scalar_lea.vmem %s5077_s20, %s3979_s18 [#allocation5]   ;;  %s3209_s25 = scalar_lea.vmem %s5568_s8, %s3979_s18  }
 0x20b   : > { %p3844_p11 = scmp.le.s32.totalorder %s5742_s22, 0 }
 0x20c   : > { %s4496_s26 = smov (!%p3844_p11), %s3209_s25   ;;  %s4500_s27 = smov (!%p3844_p11), %s3207_s21  }
 0x20d   : > { %3495 = sbr.rel (%p3844_p11) target bundleno = 542 (0x21e), region = 147  ;;  %s4504_s28 = smov (!%p3844_p11), 0  }
 0x20e   : > { %s4508_s30 = smov (!%p3844_p11), 0  }
 0x214 LB: >> { %v3219_v21 = vld [vmem:[%s4502_s27] sm:$0xf]  ;;  %s3221_s5 = sadd.s32 1, %s4506_s28  ;;  %s3213_s30 = sadd.s32 1, %s4510_s30   ;;  %s4510_s30 = sphi %s4508_s30, %s3213_s30   ;;  %s4506_s28 = sphi %s4504_s28, %s4505_s28   ;;  %s4502_s27 = sphi %s4500_s27, %s3226_s27   ;;  %s4498_s26 = sphi %s4496_s26, %s3227_s26  }
 0x215   : >> { %3220 = vst [vmem:[%s4498_s26] sm:$0xf] %v3219_v21  ;;  %p3222_p13 = scmp.ge.s32.totalorder %s3221_s5, %s5742_s22  ;;  %p3212_p0 = scmp.ge.s32.totalorder %s3213_s30, %s5742_s22 }
 0x217   : >> { %s5791_s5 = smov (%p3222_p13, %s3221_s5), 0  ;;  %3215 = sbr.rel (!%p3212_p0) target bundleno = 532 (0x214), region = 153 }
 0x218   : >> { %s3845_s20 = sshll.u32 %s5791_s5, 2  ;;  %s4505_s28 = smov %s5791_s5  }
 0x219   : >> { %s3226_s27 = scalar_lea.vmem %s3207_s21, %s3845_s20 [#allocation5]   ;;  %s3227_s26 = scalar_lea.vmem %s3209_s25, %s3845_s20  }
 0x21e PF: > { %s16_s17 = sadd.s32 1, %s4478_s17   ;;  %s5777_s12 = smov %s4462_s13 }
 0x21f   : > { %p13_p2 = scmp.ge.s32.totalorder %s16_s17, 54   ;;  %s5778_s13 = smov %s4466_s14 }
 0x220   : > { %s5779_s14 = smov %s4581_s23  ;;  %s5780_s15 = smov %s4474_s16 }
 0x221   : > { %s5781_s16 = smov %s5783_s19  ;;  %15 = sbr.rel (!%p13_p2) target bundleno = 4 (0x4), region = 164 }
 0x228   :  { %3414 = vsyncpa [#allocation4], 1 }
 0x229   :  { %3416 = vsyncpa [#allocation4 + $0x1], 1 }

</bundles_post_ra>
